<compile_context>
chip_gen: v7x
topology: tpu7x:2x2x1
jax: 0.10.0
libtpu: 0.0.40
codegen_flags: <defaults>
</compile_context>

<pallas_src>
import functools

import numpy as np
import jax
import jax.numpy as jnp
from jax.experimental import pallas as pl
from jax.experimental.pallas import tpu as pltpu


def _round_up(x, m):
    return ((x + m - 1) // m) * m


def ngram_kernel(x_ref, w1_ref, b1_ref, w2_ref, b2_ref, o_ref):
    # x: (TB, F) input dtype; w1: (F, H) bf16; b1: (1, H) f32;
    # w2: (H, V) bf16; b2: (1, V) f32; o: (TB, V) out dtype.
    x = x_ref[...].astype(jnp.bfloat16)  # VPU cast, MXU-native input dtype
    # linear1 + relu (f32 accumulation on the MXU)
    h = jnp.dot(x, w1_ref[...], preferred_element_type=jnp.float32) + b1_ref[...]
    h = jnp.maximum(h, 0.0)
    # linear2 (bf16 activations back into the MXU, accumulate f32)
    logits = (
        jnp.dot(h.astype(jnp.bfloat16), w2_ref[...],
                preferred_element_type=jnp.float32)
        + b2_ref[...]
    )
    # numerically stable log_softmax along the vocab dim (row-local, f32)
    m = jnp.max(logits, axis=-1, keepdims=True)
    lse = m + jnp.log(jnp.sum(jnp.exp(logits - m), axis=-1, keepdims=True))
    o_ref[...] = (logits - lse).astype(o_ref.dtype)


def prepare_params(w1, b1, w2, b2):
    """Cast/reshape parameters ONCE (hoisted out of the per-call path).

    Weights are stored (in_features, out_features); biases become (1, out).
    """
    hidden = w1.shape[1]
    vocab = w2.shape[1]
    return (
        jnp.asarray(w1, jnp.bfloat16),                            # (F, H)
        jnp.reshape(jnp.asarray(b1, jnp.float32), (1, hidden)),   # (1, H)
        jnp.asarray(w2, jnp.bfloat16),                            # (H, V)
        jnp.reshape(jnp.asarray(b2, jnp.float32), (1, vocab)),    # (1, V)
    )


def _pick_tile(batch, block_b):
    """Row-tile selection.

    * >= 16 rows (bf16 sublane packing), capped at block_b (512-1024 amortizes
      the ~0.35 us/step pipeline cost on single-TC v5e/v6e).
    * If the whole batch collapses to a single >=512-row tile, split it so
      grid >= 2 and v7x's two TensorCores both get a >=256-row tile.
    """
    tb = min(block_b, _round_up(batch, 16))
    batch_p = _round_up(batch, tb)
    if batch_p == tb and tb >= 512:
        tb = _round_up(tb // 2, 16)
        batch_p = _round_up(batch, tb)
    return tb, batch_p


@functools.partial(jax.jit, static_argnames=("block_b", "out_dtype"))
def ngram_forward(inputs, params, *, block_b=512, out_dtype=jnp.float32):
    """Batched forward.

    inputs: (B, context_size, embedding_dim), or any array with
            context_size*embedding_dim elements for a single context
            (matching the PyTorch `.view((1, -1))` semantics).
    params: tuple from prepare_params() (cast once, reused every call).
    Returns (B, vocab_size) log-probs (or (1, vocab_size) for a single input).
    """
    w1_bf, b1_f, w2_bf, b2_f = params

    if inputs.ndim >= 3:
        batch = inputs.shape[0]
        x = jnp.reshape(inputs, (batch, -1))
    else:
        batch = 1
        x = jnp.reshape(inputs, (1, -1))

    feat = x.shape[1]
    hidden = w1_bf.shape[1]
    vocab = w2_bf.shape[1]

    tb, batch_p = _pick_tile(batch, block_b)
    if batch_p != batch:
        x = jnp.pad(x, ((0, batch_p - batch), (0, 0)))

    grid = (batch_p // tb,)

    out_itemsize = np.dtype(out_dtype).itemsize
    cost = pl.CostEstimate(
        flops=2 * batch_p * (feat * hidden + hidden * vocab),
        transcendentals=batch_p * (vocab + 1),  # exp per logit + log per row
        bytes_accessed=(
            x.size * x.dtype.itemsize
            + w1_bf.size * 2 + w2_bf.size * 2
            + b1_f.size * 4 + b2_f.size * 4
            + batch_p * vocab * out_itemsize
        ),
    )

    out = pl.pallas_call(
        ngram_kernel,
        out_shape=jax.ShapeDtypeStruct((batch_p, vocab), out_dtype),
        grid_spec=pltpu.PrefetchScalarGridSpec(
            num_scalar_prefetch=0,
            grid=grid,
            in_specs=[
                pl.BlockSpec((tb, feat), lambda i: (i, 0)),       # x: batch-tiled
                pl.BlockSpec((feat, hidden), lambda i: (0, 0)),   # w1: resident
                pl.BlockSpec((1, hidden), lambda i: (0, 0)),      # b1
                pl.BlockSpec((hidden, vocab), lambda i: (0, 0)),  # w2: resident
                pl.BlockSpec((1, vocab), lambda i: (0, 0)),       # b2
            ],
            out_specs=pl.BlockSpec((tb, vocab), lambda i: (i, 0)),
        ),
        compiler_params=pltpu.CompilerParams(
            # Batch axis is embarrassingly parallel -> v7x's 2 TCs split it;
            # no-op on single-TC v5e/v6e. Scoped-VMEM default is ample (<2 MiB
            # working set), so no vmem_limit_bytes override.
            dimension_semantics=("parallel",),
        ),
        cost_estimate=cost,
    )(x, w1_bf, b1_f, w2_bf, b2_f)

    if batch_p != batch:
        out = out[:batch]
    return out
    # TODO(synk): if vocab grows to 30k+, tile V with a second grid axis and a
    # two-pass log-softmax (running max/sum in VMEM scratch via pl.when).


def init_params(key, vocab_size, embedding_dim, context_size, hidden=128):
    """Deterministic init mimicking nn.Linear's uniform(-1/sqrt(fan_in), ...)."""
    in1 = context_size * embedding_dim
    k1, k2, k3, k4 = jax.random.split(key, 4)
    bound1 = 1.0 / jnp.sqrt(in1)
    bound2 = 1.0 / jnp.sqrt(hidden)
    # stored as (in_features, out_features)
    w1 = jax.random.uniform(k1, (in1, hidden), jnp.float32, -bound1, bound1)
    b1 = jax.random.uniform(k2, (1, hidden), jnp.float32, -bound1, bound1)
    w2 = jax.random.uniform(k3, (hidden, vocab_size), jnp.float32, -bound2, bound2)
    b2 = jax.random.uniform(k4, (1, vocab_size), jnp.float32, -bound2, bound2)
    return w1, b1, w2, b2


if __name__ == "__main__":
    vocab_size = 256
    embedding_dim = 64
    context_size = 2
    hidden = 128
    batch = 1024  # many n-gram contexts per kernel call

    key = jax.random.PRNGKey(0)
    kp, kx = jax.random.split(key)
    w1, b1, w2, b2 = init_params(kp, vocab_size, embedding_dim, context_size, hidden)
    params = prepare_params(w1, b1, w2, b2)  # cast once, reused on every call

    # Batched contexts: each (context_size, embedding_dim) row is exactly what
    # the PyTorch forward's .view((1, -1)) would flatten for one example.
    inputs = jax.random.normal(kx, (batch, context_size, embedding_dim), jnp.float32)

    log_probs = jax.block_until_ready(ngram_forward(inputs, params))
    assert log_probs.shape == (batch, vocab_size)

    # pure-JAX f32 reference
    xf = inputs.reshape(batch, -1)
    h_ref = jnp.maximum(xf @ w1 + b1, 0.0)
    ref = jax.nn.log_softmax(h_ref @ w2 + b2, axis=-1)

    # rows are valid log-probs and match the f32 reference within bf16 tolerance
    assert jnp.allclose(jnp.sum(jnp.exp(log_probs), axis=1), 1.0, atol=1e-3)
    assert float(jnp.max(jnp.abs(log_probs - ref))) < 5e-2

    # single-context path (the literal original forward, B=1) still works
    single = jax.block_until_ready(ngram_forward(inputs[0], params))
    assert single.shape == (1, vocab_size)
    assert float(jnp.max(jnp.abs(single - ref[:1]))) < 5e-2

    print("KERNEL_OK")
</pallas_src>

<mosaic_0001>
module attributes {stable_mosaic.version = 11 : i64} {
  func.func @ngram_kernel(%arg0: i32, %arg1: memref<512x128xf32, #tpu.memory_space<vmem>>, %arg2: memref<128x128xbf16, #tpu.memory_space<vmem>>, %arg3: memref<1x128xf32, #tpu.memory_space<vmem>>, %arg4: memref<128x256xbf16, #tpu.memory_space<vmem>>, %arg5: memref<1x256xf32, #tpu.memory_space<vmem>>, %arg6: memref<512x256xf32, #tpu.memory_space<vmem>>) attributes {dimension_semantics = [#tpu.dimension_semantics<parallel>], iteration_bounds = array<i64: 2>, scalar_prefetch = 0 : i64, scratch_operands = 0 : i64, tpu.core_type = #tpu.core_type<tc>, window_params = [{transform_indices = @transform_0, window_bounds = array<i64: 512, 128>}, {pipeline_mode = #tpu.pipeline_mode<synchronous>, transform_indices = @transform_1, window_bounds = array<i64: 128, 128>}, {pipeline_mode = #tpu.pipeline_mode<synchronous>, transform_indices = @transform_2, window_bounds = array<i64: 1, 128>}, {pipeline_mode = #tpu.pipeline_mode<synchronous>, transform_indices = @transform_3, window_bounds = array<i64: 128, 256>}, {pipeline_mode = #tpu.pipeline_mode<synchronous>, transform_indices = @transform_4, window_bounds = array<i64: 1, 256>}, {transform_indices = @transform_5, window_bounds = array<i64: 512, 256>}]} {
    %c0 = arith.constant 0 : index
    %c0_0 = arith.constant 0 : index
    %0 = vector.load %arg1[%c0, %c0_0] : memref<512x128xf32, #tpu.memory_space<vmem>>, vector<512x128xf32>
    %1 = arith.truncf %0 : vector<512x128xf32> to vector<512x128xbf16>
    %c0_1 = arith.constant 0 : index
    %c0_2 = arith.constant 0 : index
    %2 = vector.load %arg2[%c0_1, %c0_2] : memref<128x128xbf16, #tpu.memory_space<vmem>>, vector<128x128xbf16>
    %cst = arith.constant dense<0.000000e+00> : vector<512x128xf32>
    %3 = tpu.matmul %1, %2, %cst {dimension_numbers = #tpu.dot_dimension_numbers<[1], [0], [0], [1], [0, 0, 1, 1], [], []>} : vector<512x128xbf16>, vector<128x128xbf16>, vector<512x128xf32> -> vector<512x128xf32>
    %c0_3 = arith.constant 0 : index
    %c0_4 = arith.constant 0 : index
    %4 = vector.load %arg3[%c0_3, %c0_4] : memref<1x128xf32, #tpu.memory_space<vmem>>, vector<1x128xf32>
    %5 = vector.broadcast %4 : vector<1x128xf32> to vector<512x128xf32>
    %6 = arith.addf %3, %5 : vector<512x128xf32>
    %cst_5 = arith.constant 0.000000e+00 : f32
    %7 = vector.broadcast %cst_5 : f32 to vector<512x128xf32>
    %8 = arith.maximumf %6, %7 : vector<512x128xf32>
    %9 = arith.truncf %8 : vector<512x128xf32> to vector<512x128xbf16>
    %c0_6 = arith.constant 0 : index
    %c0_7 = arith.constant 0 : index
    %10 = vector.load %arg4[%c0_6, %c0_7] : memref<128x256xbf16, #tpu.memory_space<vmem>>, vector<128x256xbf16>
    %cst_8 = arith.constant dense<0.000000e+00> : vector<512x256xf32>
    %11 = tpu.matmul %9, %10, %cst_8 {dimension_numbers = #tpu.dot_dimension_numbers<[1], [0], [0], [1], [0, 0, 1, 1], [], []>} : vector<512x128xbf16>, vector<128x256xbf16>, vector<512x256xf32> -> vector<512x256xf32>
    %c0_9 = arith.constant 0 : index
    %c0_10 = arith.constant 0 : index
    %12 = vector.load %arg5[%c0_9, %c0_10] : memref<1x256xf32, #tpu.memory_space<vmem>>, vector<1x256xf32>
    %13 = vector.broadcast %12 : vector<1x256xf32> to vector<512x256xf32>
    %14 = arith.addf %11, %13 : vector<512x256xf32>
    %cst_11 = arith.constant dense<0xFF800000> : vector<512xf32>
    %15 = vector.multi_reduction <maximumf>, %14, %cst_11 [1] : vector<512x256xf32> to vector<512xf32>
    %16 = vector.shape_cast %15 : vector<512xf32> to vector<512x1xf32>
    %17 = vector.broadcast %16 : vector<512x1xf32> to vector<512x256xf32>
    %18 = arith.subf %14, %17 : vector<512x256xf32>
    %19 = math.exp %18 : vector<512x256xf32>
    %cst_12 = arith.constant dense<0.000000e+00> : vector<512xf32>
    %20 = vector.multi_reduction <add>, %19, %cst_12 [1] : vector<512x256xf32> to vector<512xf32>
    %21 = vector.shape_cast %20 : vector<512xf32> to vector<512x1xf32>
    %22 = math.log %21 : vector<512x1xf32>
    %23 = arith.addf %16, %22 : vector<512x1xf32>
    %24 = vector.broadcast %23 : vector<512x1xf32> to vector<512x256xf32>
    %25 = arith.subf %14, %24 : vector<512x256xf32>
    %c0_13 = arith.constant 0 : index
    %c0_14 = arith.constant 0 : index
    %26 = vector.load %arg6[%c0_13, %c0_14] : memref<512x256xf32, #tpu.memory_space<vmem>>, vector<512x256xf32>
    tpu.vector_store %arg6[%c0_13, %c0_14], %25 {strides = array<i32>} : memref<512x256xf32, #tpu.memory_space<vmem>>, vector<512x256xf32>,
    return
  }
  func.func @transform_0(%arg0: i32) -> (i32, i32) {
    %c0_i32 = arith.constant 0 : i32
    %c0_i32_0 = arith.constant 0 : i32
    return %arg0, %c0_i32 : i32, i32
  }
  func.func @transform_1(%arg0: i32) -> (i32, i32) {
    %c0_i32 = arith.constant 0 : i32
    %c0_i32_0 = arith.constant 0 : i32
    %c0_i32_1 = arith.constant 0 : i32
    return %c0_i32, %c0_i32_0 : i32, i32
  }
  func.func @transform_2(%arg0: i32) -> (i32, i32) {
    %c0_i32 = arith.constant 0 : i32
    %c0_i32_0 = arith.constant 0 : i32
    %c0_i32_1 = arith.constant 0 : i32
    return %c0_i32, %c0_i32_0 : i32, i32
  }
  func.func @transform_3(%arg0: i32) -> (i32, i32) {
    %c0_i32 = arith.constant 0 : i32
    %c0_i32_0 = arith.constant 0 : i32
    %c0_i32_1 = arith.constant 0 : i32
    return %c0_i32, %c0_i32_0 : i32, i32
  }
  func.func @transform_4(%arg0: i32) -> (i32, i32) {
    %c0_i32 = arith.constant 0 : i32
    %c0_i32_0 = arith.constant 0 : i32
    %c0_i32_1 = arith.constant 0 : i32
    return %c0_i32, %c0_i32_0 : i32, i32
  }
  func.func @transform_5(%arg0: i32) -> (i32, i32) {
    %c0_i32 = arith.constant 0 : i32
    %c0_i32_0 = arith.constant 0 : i32
    return %arg0, %c0_i32 : i32, i32
  }
}

</mosaic_0001>

<bundles_post_ra>
// kernel: ngram_forward.1
= control target key start
LH: loop header
LB: loop body
LE: loop exit
PB: predicated region body
PF: predicated region fallthrough
CT: control target
= control target key end

     0   :  { %10 = vsyncpa [#allocation3], 0  ;;  %s4875_s0 = inlined_call_operand.vmem [shape: f32[1024,128], index: 0, kind: input, shape index: {}]   ;;  %s4876_s1 = inlined_call_operand.vmem [shape: bf16[128,128], index: 1, kind: input, shape index: {}]   ;;  %s4877_s2 = inlined_call_operand.vmem [shape: f32[1,128], index: 2, kind: input, shape index: {}]   ;;  %s4878_s3 = inlined_call_operand.vmem [shape: bf16[128,256], index: 3, kind: input, shape index: {}]   ;;  %s4879_s4 = inlined_call_operand.vmem [shape: f32[1,256], index: 4, kind: input, shape index: {}]   ;;  %s4880_s5 = inlined_call_operand.hbm [shape: f32[1024,256], index: 5, kind: output, shape index: {}]  }
   0x1   :  { %12 = vsyncpa [#allocation3 + $0x1], 0  ;;  %s3265_s18 = smov 0   ;;  %s3267_s19 = smov 0  }
   0x2   :  { %s3269_s20 = smov 0   ;;  %s3271_s21 = smov 0  }
   0x3 LB: > { %s3286_s22 = sadd.s32 4294967295, %s3229_s21   ;;  %s2533_s23 = sadd.s32 4294967294, %s3229_s21   ;;  %s3229_s21 = sphi %s3271_s21, %s5443_s21   ;;  %s3225_s20 = sphi %s3269_s20, %s5442_s20   ;;  %s3221_s19 = sphi %s3267_s19, %s5441_s19   ;;  %s3217_s18 = sphi %s3265_s18, %s5440_s18  }
   0x4   : > { %s3290_s24 = sadd.s32 1, %s3229_s21   ;;  %s135_s25 = sadd.s32 1, %s3225_s20 }
   0x5   : > { %s132_s26 = ssub.s32 %s3229_s21, %s3290_s24  ;;  %p145_p0 = scmp.ne.s32.totalorder %s3225_s20, %s3221_s19 }
   0x6   : > { %p133_p1 = scmp.eq.s32.totalorder %s132_s26, 0  ;;  %p146_p2 = scmp.eq.s32.totalorder %s3286_s22, 1 }
   0x7   : > { %p151_p3 = scmp.ne.s32.totalorder %s3221_s19, %s3217_s18  ;;  %p152_p4 = scmp.eq.s32.totalorder %s2533_s23, 1 }
   0x8   : > { %s3301_s27 = scalar_select %p133_p1, %s3225_s20, %s135_s25  }
   0x9   : > { %p3303_p5 = por %p146_p2, %p145_p0  ;;  %p3307_p6 = por %p152_p4, %p151_p3 }
   0xa   : > { %p2536_p7 = scmp.ge.s32.totalorder %s3229_s21, 1  ;;  %p191_p8 = scmp.lt.s32.totalorder %s3229_s21, 3 }
   0xc   : > { %p192_p9 = pnand %p2536_p7, %p191_p8 }
   0xe   : > { %195 = sbr.rel (%p192_p9) target bundleno = 1055 (0x41f), region = 40 }
  0x15   : > { %v2751_v0 = vld [vmem:[%s4876_s1] sm:$0xff]   ;;  %s2538_s7 = sshll.u32 %s3286_s22, 6  ;;  %v2752_v1 = vld [vmem:[%s4876_s1 + $0x8] sm:$0xff]   ;;  %v2753_v2 = vld [vmem:[%s4876_s1 + $0x10] sm:$0xff]   ;;  %s216_s16 = sand.u32 1, %s3221_s19  }
  0x16   : > { %p220_p10 = scmp.lt.s32.totalorder %s2538_s7, 127  ;;  %2613 = vmatprep.subr.bf16.mxu0 %v2751_v0  ;;  %v2754_v3 = vld [vmem:[%s4876_s1 + $0x18] sm:$0xff]   ;;  %v2755_v7 = vld [vmem:[%s4876_s1 + $0x20] sm:$0xff]   ;;  %v2756_v8 = vld [vmem:[%s4876_s1 + $0x28] sm:$0xff]   ;;  %s2537_s17 = sshll.u32 %s216_s16, 10 }
  0x17   : > { %2614 = vmatpush3.bf16.msra.mxu0 %v2751_v0  ;;  %v2761_v9 = vld [vmem:[%s4878_s3 + $0x4] ss:$8 sps:$4 sm:$0xff]   ;;  %v2757_v10 = vld [vmem:[%s4876_s1 + $0x30] sm:$0xff]   ;;  %v2759_v11 = vld [vmem:[%s4878_s3] ss:$8 sps:$4 sm:$0xff]   ;;  %s4433_s23 = scalar_lea.vmem [#allocation2], %s2537_s17 }
  0x18   : > { %s5445_s7 = smov (!%p220_p10, %s2538_s7), 127  ;;  %2615 = vmatprep.subr.bf16.mxu0 %v2752_v1  ;;  %2693 = vmatprep.subr.bf16.mxu1 %v2761_v9  ;;  %v2764_v12 = vld [vmem:[%s4878_s3 + $0x14] ss:$8 sps:$4 sm:$0xff]   ;;  %v2762_v14 = vld [vmem:[%s4878_s3 + $0x10] ss:$8 sps:$4 sm:$0xff]   ;;  %s2572_s25 = sshll.u32 %s3286_s22, 14 }
  0x19   : > { %s2539_s12 = sshll.u32 %s5445_s7, 3  ;;  %2701 = vmatpush1.bf16.msra.mxu1 %v2759_v11  ;;  %v2758_v13 = vld [vmem:[%s4876_s1 + $0x38] sm:$0xff]   ;;  %v2767_v15 = vld [vmem:[%s4878_s3 + $0x24] ss:$8 sps:$4 sm:$0xff]   ;;  %v2765_v20 = vld [vmem:[%s4878_s3 + $0x20] ss:$8 sps:$4 sm:$0xff]   ;;  %s4824_s7 = scalar_lea.hbm %s4880_s5, %s2572_s25 }
  0x1a   : > { %s3326_s15 = scalar_lea.vmem %s4875_s0, %s2539_s12  ;;  %2694 = vmatprep.subr.bf16.mxu1 %v2764_v12  ;;  %v2770_v21 = vld [vmem:[%s4878_s3 + $0x34] ss:$8 sps:$4 sm:$0xff]   ;;  %v2768_v24 = vld [vmem:[%s4878_s3 + $0x30] ss:$8 sps:$4 sm:$0xff]   ;;  %v2773_v25 = vld [vmem:[%s4878_s3 + $0x44] ss:$8 sps:$4 sm:$0xff]  }
  0x1b   : > { %2616 = vmatpush3.bf16.msra.mxu0 %v2752_v1  ;;  %v227_v4 = vld [vmem:[%s3326_s15] sm:$0xff]  ;;  %v228_v5 = vld [vmem:[%s3326_s15 + $0x8] sm:$0xff]  ;;  %v229_v16 = vld [vmem:[%s3326_s15 + $0x10] sm:$0xff]  ;;  %s2471_s26 = sshll.u32 %s4433_s23, 4  ;;  %s4834_s22 = scalar_lea.sflag [#allocation3], %s216_s16  ;;  %s4826_s26 = int_to_ptr.vmem [resolvable:$true] %s2471_s26 }
  0x1c   : > { %2617 = vmatprep.subr.bf16.mxu0 %v2753_v2  ;;  %v291_v6 = vpack.c.bf16 %v228_v5, %v227_v4  ;;  %v230_v17 = vld [vmem:[%s3326_s15 + $0x18] sm:$0xff]  ;;  %v231_v18 = vld [vmem:[%s3326_s15 + $0x20] sm:$0xff]  ;;  %v232_v19 = vld [vmem:[%s3326_s15 + $0x28] sm:$0xff]  ;;  %s3167_s8 = scalar_lea.vmem %s4826_s26, 16384  ;;  %s3232_s9 = smov [#allocation2]  }
  0x1d   : > { %2702 = vmatpush1.bf16.msra.mxu1 %v2762_v14  ;;  %v292_v22 = vpack.c.bf16 %v230_v17, %v229_v16  ;;  %v293_v23 = vpack.c.bf16 %v232_v19, %v231_v18  ;;  %v233_v26 = vld [vmem:[%s3326_s15 + $0x30] sm:$0xff]  ;;  %v234_v27 = vld [vmem:[%s3326_s15 + $0x38] sm:$0xff]  ;;  %v235_v28 = vld [vmem:[%s3326_s15 + $0x40] sm:$0xff]  ;;  %p3168_p11 = scmp.ne.s32.totalorder %s4826_s26, %s3167_s8  ;;  %s3171_s10 = sshll.u32 %s3232_s9, 4  ;;  %s3172_s10 = int_to_ptr.vmem [resolvable:$false] %s3171_s10 }
  0x1e   : > { %2629 = vmatprep.mubr.bf16.mxu0 %v291_v6  ;;  %2695 = vmatprep.subr.bf16.mxu1 %v2767_v15  ;;  %v236_v29 = vld [vmem:[%s3326_s15 + $0x48] sm:$0xff]  ;;  %v2776_v31 = vld [vmem:[%s4878_s3 + $0x54] ss:$8 sps:$4 sm:$0xff]   ;;  %v294_v32 = vpack.c.bf16 %v234_v27, %v233_v26  ;;  %v2774_v34 = vld [vmem:[%s4878_s3 + $0x50] ss:$8 sps:$4 sm:$0xff]   ;;  %s3173_s11 = scalar_lea.vmem %s3172_s10, 32768  ;;  %p3174_p0 = scmp.lt.s32.totalorder %s4826_s26, %s3172_s10 }
  0x1f   : > { %2618 = vmatpush3.bf16.msra.mxu0 %v2753_v2  ;;  %v2771_v30 = vld [vmem:[%s4878_s3 + $0x40] ss:$8 sps:$4 sm:$0xff]   ;;  %v295_v33 = vpack.c.bf16 %v236_v29, %v235_v28  ;;  %v2779_v35 = vld [vmem:[%s4878_s3 + $0x64] ss:$8 sps:$4 sm:$0xff]   ;;  %v237_v36 = vld [vmem:[%s3326_s15 + $0x50] sm:$0xff]  ;;  %p3169_p12 = pnand %p3168_p11, %p3303_p5  ;;  %p3175_p1 = scmp.lt.s32.totalorder %s3173_s11, %s3167_s8 }
  0x20   : > { %2619 = vmatprep.subr.bf16.mxu0 %v2754_v3  ;;  %v238_v37 = vld [vmem:[%s3326_s15 + $0x58] sm:$0xff]  ;;  %v239_v38 = vld [vmem:[%s3326_s15 + $0x60] sm:$0xff]  ;;  %v240_v39 = vld [vmem:[%s3326_s15 + $0x68] sm:$0xff] }
  0x21   : > { %2703 = vmatpush1.bf16.msra.mxu1 %v2765_v20  ;;  %v2777_v40 = vld [vmem:[%s4878_s3 + $0x60] ss:$8 sps:$4 sm:$0xff]   ;;  %v2782_v41 = vld [vmem:[%s4878_s3 + $0x74] ss:$8 sps:$4 sm:$0xff]   ;;  %v296_v42 = vpack.c.bf16 %v238_v37, %v237_v36  ;;  %v297_v43 = vpack.c.bf16 %v240_v39, %v239_v38  ;;  %v2780_v44 = vld [vmem:[%s4878_s3 + $0x70] ss:$8 sps:$4 sm:$0xff]   ;;  %p3170_p13 = pneg %p3169_p12  ;;  %p3176_p2 = por %p3175_p1, %p3174_p0 }
  0x22   : > { %2696 = vmatprep.subr.bf16.mxu1 %v2770_v21  ;;  %v241_v45 = vld [vmem:[%s3326_s15 + $0x70] sm:$0xff]  ;;  %v242_v46 = vld [vmem:[%s3326_s15 + $0x78] sm:$0xff]  ;;  %v243_v47 = vld [vmem:[%s3326_s15 + $0x80] sm:$0xff] }
  0x23   : > { %2620 = vmatpush3.bf16.msra.mxu0 %v2754_v3  ;;  %v244_v48 = vld [vmem:[%s3326_s15 + $0x88] sm:$0xff]  ;;  %v298_v49 = vpack.c.bf16 %v242_v46, %v241_v45  ;;  %v245_v51 = vld [vmem:[%s3326_s15 + $0x90] sm:$0xff]  ;;  %v246_v52 = vld [vmem:[%s3326_s15 + $0x98] sm:$0xff]  ;;  %p3177_p3 = pnand %p3176_p2, %p3170_p13 }
  0x24   : > { %2621 = vmatprep.subr.bf16.mxu0 %v2755_v7  ;;  %v299_v50 = vpack.c.bf16 %v244_v48, %v243_v47  ;;  %v247_v53 = vld [vmem:[%s3326_s15 + $0xa0] sm:$0xff]  ;;  %v248_v54 = vld [vmem:[%s3326_s15 + $0xa8] sm:$0xff]  ;;  %v300_v55 = vpack.c.bf16 %v246_v52, %v245_v51  ;;  %v249_v57 = vld [vmem:[%s3326_s15 + $0xb0] sm:$0xff] }
  0x25   : > { %2704 = vmatpush1.bf16.msra.mxu1 %v2768_v24  ;;  %v301_v56 = vpack.c.bf16 %v248_v54, %v247_v53  ;;  %v250_v58 = vld [vmem:[%s3326_s15 + $0xb8] sm:$0xff]  ;;  %v251_v59 = vld [vmem:[%s3326_s15 + $0xc0] sm:$0xff]  ;;  %v252_v60 = vld [vmem:[%s3326_s15 + $0xc8] sm:$0xff] }
  0x26   : > { %2697 = vmatprep.subr.bf16.mxu1 %v2773_v25  ;;  %v302_v61 = vpack.c.bf16 %v250_v58, %v249_v57  ;;  %v303_v62 = vpack.c.bf16 %v252_v60, %v251_v59  ;;  %v253_v63 = vld [vmem:[%s3326_s15 + $0xd0] sm:$0xff]  ;;  %v254_v0 = vld [vmem:[%s3326_s15 + $0xd8] sm:$0xff]  ;;  %v255_v1 = vld [vmem:[%s3326_s15 + $0xe0] sm:$0xff] }
  0x27   : > { %2622 = vmatpush3.bf16.msra.mxu0 %v2755_v7  ;;  %v256_v2 = vld [vmem:[%s3326_s15 + $0xe8] sm:$0xff]  ;;  %v304_v3 = vpack.c.bf16 %v254_v0, %v253_v63  ;;  %v257_v5 = vld [vmem:[%s3326_s15 + $0xf0] sm:$0xff]  ;;  %v258_v6 = vld [vmem:[%s3326_s15 + $0xf8] sm:$0xff] }
  0x28   : > { %2623 = vmatprep.subr.bf16.mxu0 %v2756_v8  ;;  %v305_v4 = vpack.c.bf16 %v256_v2, %v255_v1  ;;  %v259_v7 = vld [vmem:[%s3326_s15 + $0x100] sm:$0xff]  ;;  %v265_v17 = vld [vmem:[%s3326_s15 + $0x130] sm:$0xff]  ;;  %v266_v18 = vld [vmem:[%s3326_s15 + $0x138] sm:$0xff] }
  0x29   : > { %2705 = vmatpush1.bf16.msra.mxu1 %v2771_v30  ;;  %v267_v19 = vld [vmem:[%s3326_s15 + $0x140] sm:$0xff]  ;;  %v272_v26 = vld [vmem:[%s3326_s15 + $0x168] sm:$0xff]  ;;  %v273_v29 = vld [vmem:[%s3326_s15 + $0x170] sm:$0xff] }
  0x2a   : > { %2698 = vmatprep.subr.bf16.mxu1 %v2776_v31  ;;  %v278_v36 = vld [vmem:[%s3326_s15 + $0x198] sm:$0xff]  ;;  %v279_v37 = vld [vmem:[%s3326_s15 + $0x1a0] sm:$0xff]  ;;  %v280_v38 = vld [vmem:[%s3326_s15 + $0x1a8] sm:$0xff] }
  0x2b   : > { %2624 = vmatpush3.bf16.msra.mxu0 %v2756_v8  ;;  %v260_v8 = vld [vmem:[%s3326_s15 + $0x108] sm:$0xff]  ;;  %v285_v48 = vld [vmem:[%s3326_s15 + $0x1d0] sm:$0xff]  ;;  %v3460_v57 = vld [vmem:[%s4877_s2] ss:$0 sm:$0xff] }
  0x2c   : > { %2625 = vmatprep.subr.bf16.mxu0 %v2757_v10  ;;  %v284_v45 = vld [vmem:[%s3326_s15 + $0x1c8] sm:$0xff]  ;;  %v289_v54 = vld [vmem:[%s3326_s15 + $0x1f0] sm:$0xff] }
  0x2d   : > { %2706 = vmatpush1.bf16.msra.mxu1 %v2774_v34  ;;  %v288_v51 = vld [vmem:[%s3326_s15 + $0x1e8] sm:$0xff] }
  0x2e   : > { %2699 = vmatprep.subr.bf16.mxu1 %v2779_v35 }
  0x2f   : > { %2626 = vmatpush3.bf16.msra.mxu0 %v2757_v10  ;;  %v307_v10 = vpack.c.bf16 %v260_v8, %v259_v7 }
  0x30   : > { %2627 = vmatprep.subr.bf16.mxu0 %v2758_v13 }
  0x31   : > { %2707 = vmatpush1.bf16.msra.mxu1 %v2777_v40 }
  0x32   : > { %2700 = vmatprep.subr.bf16.mxu1 %v2782_v41 }
  0x33   : > { %2628 = vmatpush3.bf16.msra.mxu0 %v2758_v13  ;;  %v263_v13 = vld [vmem:[%s3326_s15 + $0x120] sm:$0xff] }
  0x34   : > { %887 = vmatprep.subr.bf16.mxu0 %v2761_v9  ;;  %v306_v9 = vpack.c.bf16 %v258_v6, %v257_v5 }
  0x35   : > { %2708 = vmatpush1.bf16.msra.mxu1 %v2780_v44 }
  0x36   : > { %2630 = vmatmul.mubr.bf16.vlgmr.msra.gmra.mrb[0].mxu0 %v292_v22 }
  0x37   : > { %2633 = vmatprep.mubr.bf16.mxu0 %v293_v23  ;;  %888 = vmatpush1.bf16.msra.mxu0 %v2759_v11  ;;  %v261_v11 = vld [vmem:[%s3326_s15 + $0x110] sm:$0xff] }
  0x38   : > { %889 = vmatprep.subr.bf16.mxu0 %v2764_v12  ;;  %v262_v12 = vld [vmem:[%s3326_s15 + $0x118] sm:$0xff]  ;;  %v269_v23 = vld [vmem:[%s3326_s15 + $0x150] sm:$0xff] }
  0x3b   : > { %890 = vmatpush1.bf16.msra.mxu0 %v2762_v14  ;;  %v264_v14 = vld [vmem:[%s3326_s15 + $0x128] sm:$0xff] }
  0x3c   : > { %891 = vmatprep.subr.bf16.mxu0 %v2767_v15  ;;  %v308_v15 = vpack.c.bf16 %v262_v12, %v261_v11  ;;  %v309_v16 = vpack.c.bf16 %v264_v14, %v263_v13 }
  0x3e   : > { %2634 = vmatmul.mubr.bf16.gmra.mrb[4].mxu0 %v294_v32  ;;  %v276_v32 = vld [vmem:[%s3326_s15 + $0x188] sm:$0xff] }
  0x3f   : > { %2637 = vmatprep.mubr.bf16.mxu0 %v295_v33  ;;  %892 = vmatpush1.bf16.msra.mxu0 %v2765_v20  ;;  %v268_v20 = vld [vmem:[%s3326_s15 + $0x148] sm:$0xff] }
  0x40   : > { %893 = vmatprep.subr.bf16.mxu0 %v2770_v21  ;;  %v310_v21 = vpack.c.bf16 %v266_v18, %v265_v17  ;;  %v311_v22 = vpack.c.bf16 %v268_v20, %v267_v19 }
  0x43   : > { %894 = vmatpush1.bf16.msra.mxu0 %v2768_v24  ;;  %v270_v24 = vld [vmem:[%s3326_s15 + $0x158] sm:$0xff] }
  0x44   : > { %895 = vmatprep.subr.bf16.mxu0 %v2773_v25  ;;  %v271_v25 = vld [vmem:[%s3326_s15 + $0x160] sm:$0xff]  ;;  %v312_v27 = vpack.c.bf16 %v270_v24, %v269_v23 }
  0x45   : > { %v313_v28 = vpack.c.bf16 %v272_v26, %v271_v25 }
  0x46   : > { %2638 = vmatmul.mubr.bf16.gmra.mrb[8].mxu0 %v296_v42  ;;  %v281_v42 = vld [vmem:[%s3326_s15 + $0x1b0] sm:$0xff] }
  0x47   : > { %2641 = vmatprep.mubr.bf16.mxu0 %v297_v43  ;;  %896 = vmatpush1.bf16.msra.mxu0 %v2771_v30  ;;  %v274_v30 = vld [vmem:[%s3326_s15 + $0x178] sm:$0xff] }
  0x48   : > { %897 = vmatprep.subr.bf16.mxu0 %v2776_v31  ;;  %v275_v31 = vld [vmem:[%s3326_s15 + $0x180] sm:$0xff]  ;;  %v314_v33 = vpack.c.bf16 %v274_v30, %v273_v29  ;;  %v282_v43 = vld [vmem:[%s3326_s15 + $0x1b8] sm:$0xff] }
  0x49   : > { %v318_v46 = vpack.c.bf16 %v282_v43, %v281_v42 }
  0x4b   : > { %898 = vmatpush1.bf16.msra.mxu0 %v2774_v34  ;;  %v315_v34 = vpack.c.bf16 %v276_v32, %v275_v31 }
  0x4c   : > { %899 = vmatprep.subr.bf16.mxu0 %v2779_v35  ;;  %v277_v35 = vld [vmem:[%s3326_s15 + $0x190] sm:$0xff] }
  0x4d   : > { %v316_v39 = vpack.c.bf16 %v278_v36, %v277_v35 }
  0x4e   : > { %2642 = vmatmul.mubr.bf16.gmra.mrb[12].mxu0 %v298_v49  ;;  %v286_v49 = vld [vmem:[%s3326_s15 + $0x1d8] sm:$0xff] }
  0x4f   : > { %2645 = vmatprep.mubr.bf16.mxu0 %v299_v50  ;;  %900 = vmatpush1.bf16.msra.mxu0 %v2777_v40  ;;  %v3231_v40 = vmov 0   ;;  %v287_v50 = vld [vmem:[%s3326_s15 + $0x1e0] sm:$0xff]  ;;  %v320_v52 = vpack.c.bf16 %v286_v49, %v285_v48 }
  0x50   : > { %901 = vmatprep.subr.bf16.mxu0 %v2782_v41  ;;  %999 = vmatprep.mubr.bf16.mxu1 %v3231_v40  ;;  %v317_v41 = vpack.c.bf16 %v280_v38, %v279_v37  ;;  %v321_v53 = vpack.c.bf16 %v288_v51, %v287_v50 }
  0x53   : > { %902 = vmatpush1.bf16.msra.mxu0 %v2780_v44  ;;  %v283_v44 = vld [vmem:[%s3326_s15 + $0x1c0] sm:$0xff] }
  0x54   : > { %v319_v47 = vpack.c.bf16 %v284_v45, %v283_v44 }
  0x56   : > { %2646 = vmatmul.mubr.bf16.gmra.mrb[16].mxu0 %v300_v55  ;;  %v290_v55 = vld [vmem:[%s3326_s15 + $0x1f8] sm:$0xff] }
  0x57   : > { %2649 = vmatprep.mubr.bf16.mxu0 %v301_v56  ;;  %v322_v56 = vpack.c.bf16 %v290_v55, %v289_v54 }
  0x5e   : > { %2650 = vmatmul.mubr.bf16.gmra.mrb[20].mxu0 %v302_v61 }
  0x5f   : > { %2653 = vmatprep.mubr.bf16.mxu0 %v303_v62 }
  0x66   : > { %2654 = vmatmul.mubr.bf16.gmra.mrb[24].mxu0 %v304_v3 }
  0x67   : > { %2657 = vmatprep.mubr.bf16.mxu0 %v305_v4 }
  0x6e   : > { %2658 = vmatmul.mubr.bf16.gmra.mrb[28].mxu0 %v306_v9 }
  0x6f   : > { %2661 = vmatprep.mubr.bf16.mxu0 %v307_v10 }
  0x76   : > { %2662 = vmatmul.mubr.bf16.gmra.mrb[32].mxu0 %v308_v15 }
  0x77   : > { %2665 = vmatprep.mubr.bf16.mxu0 %v309_v16 }
  0x7e   : > { %2666 = vmatmul.mubr.bf16.gmra.mrb[36].mxu0 %v310_v21 }
  0x7f   : > { %2669 = vmatprep.mubr.bf16.mxu0 %v311_v22 }
  0x86   : > { %2670 = vmatmul.mubr.bf16.gmra.mrb[40].mxu0 %v312_v27 }
  0x87   : > { %2673 = vmatprep.mubr.bf16.mxu0 %v313_v28 }
  0x8e   : > { %2674 = vmatmul.mubr.bf16.gmra.mrb[44].mxu0 %v314_v33 }
  0x8f   : > { %2677 = vmatprep.mubr.bf16.mxu0 %v315_v34 }
  0x96   : > { %2678 = vmatmul.mubr.bf16.gmra.mrb[48].mxu0 %v316_v39 }
  0x97   : > { %2681 = vmatprep.mubr.bf16.mxu0 %v317_v41 }
  0x9e   : > { %2682 = vmatmul.mubr.bf16.gmra.mrb[52].mxu0 %v318_v46 }
  0x9f   : > { %2685 = vmatprep.mubr.bf16.mxu0 %v319_v47 }
  0xa6   : > { %2686 = vmatmul.mubr.bf16.gmra.mrb[56].mxu0 %v320_v52 }
  0xa7   : > { %2689 = vmatprep.mubr.bf16.mxu0 %v321_v53 }
  0xae   : > { %2690 = vmatmul.mubr.bf16.gmra.mrb[60].mxu0 %v322_v56 }
  0xaf   : > { %919 = vmatprep.mubr.bf16.mxu0 %v3231_v40 }
 0x109   : > { %v2631_v58 = vpop.f32.mrb[0].mxu0 }
 0x10a   : > { %v437_v59 = vadd.f32 %v2631_v58, %v3460_v57  ;;  %v428_v60 = vpop.f32.mrb[1].mxu0 }
 0x10b   : > { %v429_v61 = vadd.f32 %v3460_v57, %v428_v60  ;;  %v2632_v62 = vpop.f32.mrb[2].mxu0 }
 0x10c   : > { %v440_v63 = vadd.f32 %v2632_v62, %v3460_v57  ;;  %v431_v0 = vpop.f32.mrb[3].mxu0  ;;  %v685_v2 = vmax.f32 %v437_v59, 0.0 }
 0x10d   : > { %v432_v1 = vadd.f32 %v3460_v57, %v431_v0  ;;  %v683_v4 = vmax.f32 %v429_v61, 0.0 }
 0x10e   : > { %v686_v3 = vmax.f32 %v440_v63, 0.0 }
 0x10f   : > { %v684_v5 = vmax.f32 %v432_v1, 0.0 }
 0x110   : > { %v748_v6 = vpack.c.bf16 %v686_v3, %v685_v2 }
 0x111   : > { %v747_v7 = vpack.c.bf16 %v684_v5, %v683_v4  ;;  %v2635_v8 = vpop.f32.mrb[4].mxu0 }
 0x112   : > { %v453_v9 = vadd.f32 %v2635_v8, %v3460_v57  ;;  %v444_v10 = vpop.f32.mrb[5].mxu0 }
 0x113   : > { %920 = vmatmul.mubr.bf16.vlgmr.msra.gmra.mrb[64].mxu0 %v747_v7  ;;  %v445_v11 = vadd.f32 %v3460_v57, %v444_v10  ;;  %v2636_v12 = vpop.f32.mrb[6].mxu0 }
 0x114   : > { %v689_v13 = vmax.f32 %v453_v9, 0.0  ;;  %v456_v14 = vadd.f32 %v2636_v12, %v3460_v57  ;;  %v447_v15 = vpop.f32.mrb[7].mxu0  ;;  %929 = vmatprep.mubr.bf16.mxu0 %v3231_v40 }
 0x115   : > { %v687_v16 = vmax.f32 %v445_v11, 0.0  ;;  %v448_v17 = vadd.f32 %v3460_v57, %v447_v15 }
 0x116   : > { %v690_v18 = vmax.f32 %v456_v14, 0.0 }
 0x117   : > { %v688_v19 = vmax.f32 %v448_v17, 0.0 }
 0x118   : > { %v750_v20 = vpack.c.bf16 %v690_v18, %v689_v13 }
 0x119   : > { %v749_v21 = vpack.c.bf16 %v688_v19, %v687_v16  ;;  %v2639_v22 = vpop.f32.mrb[8].mxu0 }
 0x11a   : > { %v469_v23 = vadd.f32 %v2639_v22, %v3460_v57  ;;  %v460_v24 = vpop.f32.mrb[9].mxu0 }
 0x11b   : > { %930 = vmatmul.mubr.bf16.gmra.mrb[68].mxu0 %v748_v6  ;;  %v461_v25 = vadd.f32 %v3460_v57, %v460_v24  ;;  %v2640_v26 = vpop.f32.mrb[10].mxu0 }
 0x11c   : > { %v693_v27 = vmax.f32 %v469_v23, 0.0  ;;  %v472_v28 = vadd.f32 %v2640_v26, %v3460_v57  ;;  %v463_v29 = vpop.f32.mrb[11].mxu0  ;;  %939 = vmatprep.mubr.bf16.mxu0 %v3231_v40 }
 0x11d   : > { %v691_v30 = vmax.f32 %v461_v25, 0.0  ;;  %v464_v31 = vadd.f32 %v3460_v57, %v463_v29 }
 0x11e   : > { %v694_v32 = vmax.f32 %v472_v28, 0.0 }
 0x11f   : > { %v692_v33 = vmax.f32 %v464_v31, 0.0 }
 0x120   : > { %v752_v34 = vpack.c.bf16 %v694_v32, %v693_v27 }
 0x121   : > { %v751_v35 = vpack.c.bf16 %v692_v33, %v691_v30  ;;  %v2643_v36 = vpop.f32.mrb[12].mxu0 }
 0x122   : > { %v485_v37 = vadd.f32 %v2643_v36, %v3460_v57  ;;  %v476_v38 = vpop.f32.mrb[13].mxu0 }
 0x123   : > { %940 = vmatmul.mubr.bf16.gmra.mrb[72].mxu0 %v749_v21  ;;  %v477_v39 = vadd.f32 %v3460_v57, %v476_v38  ;;  %v2644_v41 = vpop.f32.mrb[14].mxu0 }
 0x124   : > { %v697_v42 = vmax.f32 %v485_v37, 0.0  ;;  %v488_v43 = vadd.f32 %v2644_v41, %v3460_v57  ;;  %v479_v44 = vpop.f32.mrb[15].mxu0  ;;  %949 = vmatprep.mubr.bf16.mxu0 %v3231_v40 }
 0x125   : > { %v695_v45 = vmax.f32 %v477_v39, 0.0  ;;  %v480_v46 = vadd.f32 %v3460_v57, %v479_v44 }
 0x126   : > { %v698_v47 = vmax.f32 %v488_v43, 0.0 }
 0x127   : > { %v696_v48 = vmax.f32 %v480_v46, 0.0 }
 0x128   : > { %v3481_v49 = vpack.c.bf16 %v698_v47, %v697_v42 }
 0x129   : > { %v753_v50 = vpack.c.bf16 %v696_v48, %v695_v45  ;;  %v2647_v51 = vpop.f32.mrb[16].mxu0 }
 0x12a   : > { %v501_v52 = vadd.f32 %v2647_v51, %v3460_v57  ;;  %v492_v53 = vpop.f32.mrb[17].mxu0 }
 0x12b   : > { %v493_v54 = vadd.f32 %v3460_v57, %v492_v53  ;;  %v2648_v55 = vpop.f32.mrb[18].mxu0  ;;  %950 = vmatmul.mubr.bf16.gmra.mrb[76].mxu0 %v750_v20 }
 0x12c   : > { %v701_v56 = vmax.f32 %v501_v52, 0.0  ;;  %v504_v58 = vadd.f32 %v2648_v55, %v3460_v57  ;;  %v495_v59 = vpop.f32.mrb[19].mxu0  ;;  %959 = vmatprep.mubr.bf16.mxu0 %v3231_v40 }
 0x12d   : > { %v699_v60 = vmax.f32 %v493_v54, 0.0  ;;  %v496_v61 = vadd.f32 %v3460_v57, %v495_v59 }
 0x12e   : > { %v702_v62 = vmax.f32 %v504_v58, 0.0 }
 0x12f   : > { %v700_v63 = vmax.f32 %v496_v61, 0.0 }
 0x130   : > { %v756_v0 = vpack.c.bf16 %v702_v62, %v701_v56 }
 0x131   : > { %v755_v1 = vpack.c.bf16 %v700_v63, %v699_v60  ;;  %v2651_v2 = vpop.f32.mrb[20].mxu0 }
 0x132   : > { %v517_v3 = vadd.f32 %v2651_v2, %v3460_v57  ;;  %v508_v4 = vpop.f32.mrb[21].mxu0 }
 0x133   : > { %960 = vmatmul.mubr.bf16.gmra.mrb[80].mxu0 %v751_v35  ;;  %1000 = vmatmul.mubr.bf16.vlgmr.msra.gmra.mrb[0].mxu1 %v755_v1  ;;  %v509_v5 = vadd.f32 %v3460_v57, %v508_v4  ;;  %v2652_v6 = vpop.f32.mrb[22].mxu0 }
 0x134   : > { %v705_v7 = vmax.f32 %v517_v3, 0.0  ;;  %969 = vmatprep.mubr.bf16.mxu0 %v3231_v40  ;;  %1009 = vmatprep.mubr.bf16.mxu1 %v3231_v40  ;;  %v520_v8 = vadd.f32 %v2652_v6, %v3460_v57  ;;  %v511_v9 = vpop.f32.mrb[23].mxu0 }
 0x135   : > { %v703_v10 = vmax.f32 %v509_v5, 0.0  ;;  %v512_v11 = vadd.f32 %v3460_v57, %v511_v9 }
 0x136   : > { %v706_v12 = vmax.f32 %v520_v8, 0.0 }
 0x137   : > { %v704_v13 = vmax.f32 %v512_v11, 0.0 }
 0x138   : > { %v758_v14 = vpack.c.bf16 %v706_v12, %v705_v7 }
 0x139   : > { %v757_v15 = vpack.c.bf16 %v704_v13, %v703_v10  ;;  %v2655_v16 = vpop.f32.mrb[24].mxu0 }
 0x13a   : > { %v533_v17 = vadd.f32 %v2655_v16, %v3460_v57  ;;  %v524_v18 = vpop.f32.mrb[25].mxu0 }
 0x13b   : > { %970 = vmatmul.mubr.bf16.gmra.mrb[84].mxu0 %v752_v34  ;;  %1010 = vmatmul.mubr.bf16.gmra.mrb[4].mxu1 %v756_v0  ;;  %v525_v19 = vadd.f32 %v3460_v57, %v524_v18  ;;  %v2656_v20 = vpop.f32.mrb[26].mxu0 }
 0x13c   : > { %979 = vmatprep.mubr.bf16.mxu0 %v3231_v40  ;;  %1019 = vmatprep.mubr.bf16.mxu1 %v3231_v40  ;;  %v709_v21 = vmax.f32 %v533_v17, 0.0  ;;  %v536_v22 = vadd.f32 %v2656_v20, %v3460_v57  ;;  %v527_v23 = vpop.f32.mrb[27].mxu0 }
 0x13d   : > { %v707_v24 = vmax.f32 %v525_v19, 0.0  ;;  %v528_v25 = vadd.f32 %v3460_v57, %v527_v23 }
 0x13e   : > { %v710_v26 = vmax.f32 %v536_v22, 0.0 }
 0x13f   : > { %v708_v27 = vmax.f32 %v528_v25, 0.0 }
 0x140   : > { %v760_v28 = vpack.c.bf16 %v710_v26, %v709_v21 }
 0x141   : > { %v759_v29 = vpack.c.bf16 %v708_v27, %v707_v24  ;;  %v2659_v30 = vpop.f32.mrb[28].mxu0 }
 0x142   : > { %v549_v31 = vadd.f32 %v2659_v30, %v3460_v57  ;;  %v540_v32 = vpop.f32.mrb[29].mxu0 }
 0x143   : > { %980 = vmatmul.mubr.bf16.gmra.mrb[88].mxu0 %v753_v50  ;;  %1020 = vmatmul.mubr.bf16.gmra.mrb[8].mxu1 %v757_v15  ;;  %v541_v33 = vadd.f32 %v3460_v57, %v540_v32  ;;  %v2660_v34 = vpop.f32.mrb[30].mxu0 }
 0x144   : > { %989 = vmatprep.mubr.bf16.mxu0 %v3231_v40  ;;  %1029 = vmatprep.mubr.bf16.mxu1 %v3231_v40  ;;  %v713_v35 = vmax.f32 %v549_v31, 0.0  ;;  %v552_v36 = vadd.f32 %v2660_v34, %v3460_v57  ;;  %v543_v37 = vpop.f32.mrb[31].mxu0 }
 0x145   : > { %v711_v38 = vmax.f32 %v541_v33, 0.0  ;;  %v544_v39 = vadd.f32 %v3460_v57, %v543_v37 }
 0x146   : > { %v714_v41 = vmax.f32 %v552_v36, 0.0 }
 0x147   : > { %v712_v42 = vmax.f32 %v544_v39, 0.0 }
 0x148   : > { %v3506_v43 = vpack.c.bf16 %v714_v41, %v713_v35 }
 0x149   : > { %v761_v44 = vpack.c.bf16 %v712_v42, %v711_v38  ;;  %v2663_v45 = vpop.f32.mrb[32].mxu0 }
 0x14a   : > { %v565_v46 = vadd.f32 %v2663_v45, %v3460_v57  ;;  %v556_v47 = vpop.f32.mrb[33].mxu0 }
 0x14b   : > { %990 = vmatmul.mubr.bf16.gmra.mrb[92].mxu0 %v3481_v49  ;;  %1030 = vmatmul.mubr.bf16.gmra.mrb[12].mxu1 %v758_v14  ;;  %v557_v48 = vadd.f32 %v3460_v57, %v556_v47  ;;  %v2664_v50 = vpop.f32.mrb[34].mxu0 }
 0x14c   : > { %1039 = vmatprep.mubr.bf16.mxu1 %v3231_v40  ;;  %v717_v51 = vmax.f32 %v565_v46, 0.0  ;;  %v568_v52 = vadd.f32 %v2664_v50, %v3460_v57  ;;  %v559_v53 = vpop.f32.mrb[35].mxu0 }
 0x14d   : > { %v715_v54 = vmax.f32 %v557_v48, 0.0  ;;  %v560_v55 = vadd.f32 %v3460_v57, %v559_v53 }
 0x14e   : > { %v718_v56 = vmax.f32 %v568_v52, 0.0 }
 0x14f   : > { %v716_v58 = vmax.f32 %v560_v55, 0.0 }
 0x150   : > { %v3514_v59 = vpack.c.bf16 %v718_v56, %v717_v51 }
 0x151   : > { %v3516_v60 = vpack.c.bf16 %v716_v58, %v715_v54  ;;  %v2667_v49 = vpop.f32.mrb[36].mxu0 }
 0x152   : > { %v581_v61 = vadd.f32 %v2667_v49, %v3460_v57  ;;  %v572_v62 = vpop.f32.mrb[37].mxu0 }
 0x153   : > { %1040 = vmatmul.mubr.bf16.gmra.mrb[16].mxu1 %v759_v29  ;;  %v573_v63 = vadd.f32 %v3460_v57, %v572_v62  ;;  %v2668_v0 = vpop.f32.mrb[38].mxu0 }
 0x154   : > { %1049 = vmatprep.mubr.bf16.mxu1 %v3231_v40  ;;  %v721_v1 = vmax.f32 %v581_v61, 0.0  ;;  %v584_v2 = vadd.f32 %v2668_v0, %v3460_v57  ;;  %v575_v3 = vpop.f32.mrb[39].mxu0 }
 0x155   : > { %v719_v4 = vmax.f32 %v573_v63, 0.0  ;;  %v576_v5 = vadd.f32 %v3460_v57, %v575_v3 }
 0x156   : > { %v722_v6 = vmax.f32 %v584_v2, 0.0 }
 0x157   : > { %v720_v7 = vmax.f32 %v576_v5, 0.0 }
 0x158   : > { %v3523_v8 = vpack.c.bf16 %v722_v6, %v721_v1 }
 0x159   : > { %v3525_v9 = vpack.c.bf16 %v720_v7, %v719_v4  ;;  %v2671_v10 = vpop.f32.mrb[40].mxu0 }
 0x15a   : > { %v597_v11 = vadd.f32 %v2671_v10, %v3460_v57  ;;  %v588_v12 = vpop.f32.mrb[41].mxu0 }
 0x15b   : > { %1050 = vmatmul.mubr.bf16.gmra.mrb[20].mxu1 %v760_v28  ;;  %v589_v13 = vadd.f32 %v3460_v57, %v588_v12  ;;  %v2672_v14 = vpop.f32.mrb[42].mxu0 }
 0x15c   : > { %1059 = vmatprep.mubr.bf16.mxu1 %v3231_v40  ;;  %v725_v15 = vmax.f32 %v597_v11, 0.0  ;;  %v600_v16 = vadd.f32 %v2672_v14, %v3460_v57  ;;  %v591_v17 = vpop.f32.mrb[43].mxu0 }
 0x15d   : > { %v723_v18 = vmax.f32 %v589_v13, 0.0  ;;  %v592_v19 = vadd.f32 %v3460_v57, %v591_v17 }
 0x15e   : > { %v726_v20 = vmax.f32 %v600_v16, 0.0 }
 0x15f   : > { %v724_v21 = vmax.f32 %v592_v19, 0.0 }
 0x160   : > { %v3532_v22 = vpack.c.bf16 %v726_v20, %v725_v15 }
 0x161   : > { %v3534_v23 = vpack.c.bf16 %v724_v21, %v723_v18  ;;  %v2675_v24 = vpop.f32.mrb[44].mxu0 }
 0x162   : > { %v613_v25 = vadd.f32 %v2675_v24, %v3460_v57  ;;  %v604_v26 = vpop.f32.mrb[45].mxu0 }
 0x163   : > { %1060 = vmatmul.mubr.bf16.gmra.mrb[24].mxu1 %v761_v44  ;;  %v605_v27 = vadd.f32 %v3460_v57, %v604_v26  ;;  %v2676_v28 = vpop.f32.mrb[46].mxu0 }
 0x164   : > { %1069 = vmatprep.mubr.bf16.mxu1 %v3231_v40  ;;  %v729_v29 = vmax.f32 %v613_v25, 0.0  ;;  %v616_v30 = vadd.f32 %v2676_v28, %v3460_v57  ;;  %v607_v31 = vpop.f32.mrb[47].mxu0 }
 0x165   : > { %v727_v32 = vmax.f32 %v605_v27, 0.0  ;;  %v608_v33 = vadd.f32 %v3460_v57, %v607_v31 }
 0x166   : > { %v730_v34 = vmax.f32 %v616_v30, 0.0 }
 0x167   : > { %v728_v35 = vmax.f32 %v608_v33, 0.0 }
 0x168   : > { %v3541_v36 = vpack.c.bf16 %v730_v34, %v729_v29 }
 0x169   : > { %v3543_v37 = vpack.c.bf16 %v728_v35, %v727_v32  ;;  %v2679_v38 = vpop.f32.mrb[48].mxu0 }
 0x16a   : > { %v629_v39 = vadd.f32 %v2679_v38, %v3460_v57  ;;  %v620_v41 = vpop.f32.mrb[49].mxu0 }
 0x16b   : > { %1070 = vmatmul.mubr.bf16.gmra.mrb[28].mxu1 %v3506_v43  ;;  %v621_v42 = vadd.f32 %v3460_v57, %v620_v41  ;;  %v2680_v44 = vpop.f32.mrb[50].mxu0 }
 0x16c   : > { %1079 = vmatprep.mubr.bf16.mxu1 %v3231_v40  ;;  %v733_v45 = vmax.f32 %v629_v39, 0.0  ;;  %v632_v46 = vadd.f32 %v2680_v44, %v3460_v57  ;;  %v623_v47 = vpop.f32.mrb[51].mxu0 }
 0x16d   : > { %v731_v48 = vmax.f32 %v621_v42, 0.0  ;;  %v624_v50 = vadd.f32 %v3460_v57, %v623_v47 }
 0x16e   : > { %v734_v51 = vmax.f32 %v632_v46, 0.0 }
 0x16f   : > { %v732_v52 = vmax.f32 %v624_v50, 0.0 }
 0x170   : > { %v772_v53 = vpack.c.bf16 %v734_v51, %v733_v45 }
 0x171   : > { %v771_v54 = vpack.c.bf16 %v732_v52, %v731_v48  ;;  %v2683_v55 = vpop.f32.mrb[52].mxu0 }
 0x172   : > { %v645_v56 = vadd.f32 %v2683_v55, %v3460_v57  ;;  %v636_v43 = vpop.f32.mrb[53].mxu0 }
 0x173   : > { %1080 = vmatmul.mubr.bf16.gmra.mrb[32].mxu1 %v3516_v60  ;;  %v637_v58 = vadd.f32 %v3460_v57, %v636_v43  ;;  %v2684_v49 = vpop.f32.mrb[54].mxu0 }
 0x174   : > { %1089 = vmatprep.mubr.bf16.mxu1 %v3231_v40  ;;  %v737_v61 = vmax.f32 %v645_v56, 0.0  ;;  %v648_v62 = vadd.f32 %v2684_v49, %v3460_v57  ;;  %v639_v63 = vpop.f32.mrb[55].mxu0 }
 0x175   : > { %v735_v0 = vmax.f32 %v637_v58, 0.0  ;;  %v640_v1 = vadd.f32 %v3460_v57, %v639_v63 }
 0x176   : > { %v738_v2 = vmax.f32 %v648_v62, 0.0 }
 0x177   : > { %v736_v3 = vmax.f32 %v640_v1, 0.0 }
 0x178   : > { %v774_v4 = vpack.c.bf16 %v738_v2, %v737_v61 }
 0x179   : > { %v773_v5 = vpack.c.bf16 %v736_v3, %v735_v0  ;;  %v2687_v6 = vpop.f32.mrb[56].mxu0 }
 0x17a   : > { %v661_v7 = vadd.f32 %v2687_v6, %v3460_v57  ;;  %v652_v60 = vpop.f32.mrb[57].mxu0 }
 0x17b   : > { %1090 = vmatmul.mubr.bf16.gmra.mrb[36].mxu1 %v3514_v59  ;;  %v653_v10 = vadd.f32 %v3460_v57, %v652_v60  ;;  %v2688_v11 = vpop.f32.mrb[58].mxu0 }
 0x17c   : > { %1099 = vmatprep.mubr.bf16.mxu1 %v3231_v40  ;;  %v741_v12 = vmax.f32 %v661_v7, 0.0  ;;  %v664_v13 = vadd.f32 %v2688_v11, %v3460_v57  ;;  %v655_v14 = vpop.f32.mrb[59].mxu0 }
 0x17d   : > { %v739_v15 = vmax.f32 %v653_v10, 0.0  ;;  %v656_v16 = vadd.f32 %v3460_v57, %v655_v14 }
 0x17e   : > { %v742_v17 = vmax.f32 %v664_v13, 0.0 }
 0x17f   : > { %v740_v18 = vmax.f32 %v656_v16, 0.0 }
 0x180   : > { %v776_v19 = vpack.c.bf16 %v742_v17, %v741_v12 }
 0x181   : > { %v775_v20 = vpack.c.bf16 %v740_v18, %v739_v15  ;;  %v2691_v21 = vpop.f32.mrb[60].mxu0 }
 0x182   : > { %v677_v24 = vadd.f32 %v2691_v21, %v3460_v57  ;;  %v668_v59 = vpop.f32.mrb[61].mxu0 }
 0x183   : > { %1100 = vmatmul.mubr.bf16.gmra.mrb[40].mxu1 %v3525_v9  ;;  %v669_v25 = vadd.f32 %v3460_v57, %v668_v59  ;;  %v2692_v26 = vpop.f32.mrb[62].mxu0 }
 0x184   : > { %1109 = vmatprep.mubr.bf16.mxu1 %v3231_v40  ;;  %v745_v27 = vmax.f32 %v677_v24, 0.0  ;;  %v680_v28 = vadd.f32 %v2692_v26, %v3460_v57  ;;  %v671_v29 = vpop.f32.mrb[63].mxu0 }
 0x185   : > { %v743_v30 = vmax.f32 %v669_v25, 0.0  ;;  %v672_v31 = vadd.f32 %v3460_v57, %v671_v29  ;;  %v797_v57 = vlaneseq }
 0x186   : > { %v746_v32 = vmax.f32 %v680_v28, 0.0 }
 0x187   : > { %v744_v33 = vmax.f32 %v672_v31, 0.0 }
 0x188   : > { %v778_v34 = vpack.c.bf16 %v746_v32, %v745_v27 }
 0x189   : > { %v777_v35 = vpack.c.bf16 %v744_v33, %v743_v30 }
 0x18b   : > { %1110 = vmatmul.mubr.bf16.gmra.mrb[44].mxu1 %v3523_v8  ;;  %v798_v8 = vshrl.u32 %v797_v57, 7 }
 0x18c   : > { %1119 = vmatprep.mubr.bf16.mxu1 %v3231_v40 }
 0x18d   : > { %v799_v9 = vsub.s32 0, %v798_v8 }
 0x193   : > { %1120 = vmatmul.mubr.bf16.gmra.mrb[48].mxu1 %v3534_v23  ;;  %v803_v23 = vsub.s32 1, %v798_v8 }
 0x194   : > { %1129 = vmatprep.mubr.bf16.mxu1 %v3231_v40 }
 0x19b   : > { %1130 = vmatmul.mubr.bf16.gmra.mrb[52].mxu1 %v3532_v22  ;;  %v795_v22 = vld [vmem:[%s4879_s4] sm:$0x3] }
 0x19c   : > { %1139 = vmatprep.mubr.bf16.mxu1 %v3231_v40 }
 0x1a3   : > { %1140 = vmatmul.mubr.bf16.gmra.mrb[56].mxu1 %v3543_v37  ;;  %v3590_v37 = vrot.slane %v795_v22, %v803_v23 }
 0x1a4   : > { %1149 = vmatprep.mubr.bf16.mxu1 %v3231_v40 }
 0x1ab   : > { %1150 = vmatmul.mubr.bf16.gmra.mrb[60].mxu1 %v3541_v36  ;;  %v3588_v36 = vrot.slane %v795_v22, %v799_v9 }
 0x1ac   : > { %1159 = vmatprep.mubr.bf16.mxu1 %v3231_v40 }
 0x1b3   : > { %1160 = vmatmul.mubr.bf16.gmra.mrb[64].mxu1 %v771_v54 }
 0x1b4   : > { %1169 = vmatprep.mubr.bf16.mxu1 %v3231_v40 }
 0x1bb   : > { %1170 = vmatmul.mubr.bf16.gmra.mrb[68].mxu1 %v772_v53 }
 0x1bc   : > { %1179 = vmatprep.mubr.bf16.mxu1 %v3231_v40 }
 0x1c3   : > { %1180 = vmatmul.mubr.bf16.gmra.mrb[72].mxu1 %v773_v5 }
 0x1c4   : > { %1189 = vmatprep.mubr.bf16.mxu1 %v3231_v40 }
 0x1cb   : > { %1190 = vmatmul.mubr.bf16.gmra.mrb[76].mxu1 %v774_v4 }
 0x1cc   : > { %1199 = vmatprep.mubr.bf16.mxu1 %v3231_v40 }
 0x1d3   : > { %1200 = vmatmul.mubr.bf16.gmra.mrb[80].mxu1 %v775_v20 }
 0x1d4   : > { %1209 = vmatprep.mubr.bf16.mxu1 %v3231_v40 }
 0x1db   : > { %1210 = vmatmul.mubr.bf16.gmra.mrb[84].mxu1 %v776_v19 }
 0x1dc   : > { %1219 = vmatprep.mubr.bf16.mxu1 %v3231_v40 }
 0x1e3   : > { %1220 = vmatmul.mubr.bf16.gmra.mrb[88].mxu1 %v777_v35 }
 0x1e4   : > { %1229 = vmatprep.mubr.bf16.mxu1 %v3231_v40 }
 0x1e6   : > { %v921_v38 = vpop.f32.mrb[64].mxu0 }
 0x1e7   : > { %v3594_v39 = vadd.f32 %v921_v38, %v3588_v36  ;;  %v923_v41 = vpop.f32.mrb[65].mxu0 }
 0x1e8   : > { %v3597_v42 = vadd.f32 %v923_v41, %v3590_v37  ;;  %v925_v44 = vpop.f32.mrb[66].mxu0 }
 0x1e9   : > { %5086 = vst [vmem:[#allocation5_spill] sm:$0xff] %v3594_v39  ;;  %v927_v45 = vpop.f32.mrb[67].mxu0  ;;  %v3600_v46 = vadd.f32 %v925_v44, %v3588_v36 }
 0x1ea   : > { %5087 = vst [vmem:[#allocation6_spill] sm:$0xff] %v3597_v42  ;;  %v3603_v47 = vadd.f32 %v927_v45, %v3590_v37  ;;  %v1240_v48 = vmax.f32 %v3594_v39, %v3597_v42 }
 0x1eb   : > { %5088 = vst [vmem:[#allocation7_spill] sm:$0xff] %v3600_v46  ;;  %1230 = vmatmul.mubr.bf16.gmra.mrb[92].mxu1 %v778_v34 }
 0x1ec   : > { %5089 = vst [vmem:[#allocation8_spill] sm:$0xff] %v3603_v47  ;;  %1241 = vmax.xlane.f32.xlu0 %v1240_v48  ;;  %v1243_v50 = vmax.f32 %v3600_v46, %v3603_v47 }
 0x1ee   : > { %v931_v40 = vpop.f32.mrb[68].mxu0 }
 0x1ef   : > { %v3610_v51 = vadd.f32 %v931_v40, %v3588_v36  ;;  %v933_v52 = vpop.f32.mrb[69].mxu0 }
 0x1f0   : > { %v3613_v53 = vadd.f32 %v933_v52, %v3590_v37  ;;  %v935_v54 = vpop.f32.mrb[70].mxu0  ;;  %1244 = vmax.xlane.f32.xlu0 %v1243_v50 }
 0x1f1   : > { %5090 = vst [vmem:[#allocation9_spill] sm:$0xff] %v3610_v51  ;;  %v937_v55 = vpop.f32.mrb[71].mxu0  ;;  %v3616_v56 = vadd.f32 %v935_v54, %v3588_v36 }
 0x1f2   : > { %5091 = vst [vmem:[#allocation10_spill] sm:$0xff] %v3613_v53  ;;  %v3619_v43 = vadd.f32 %v937_v55, %v3590_v37  ;;  %v1246_v58 = vmax.f32 %v3610_v51, %v3613_v53 }
 0x1f3   : > { %5092 = vst [vmem:[#allocation11_spill] sm:$0xff] %v3616_v56 }
 0x1f4   : > { %5093 = vst [vmem:[#allocation12_spill] sm:$0xff] %v3619_v43  ;;  %1247 = vmax.xlane.f32.xlu1 %v1246_v58  ;;  %v1249_v61 = vmax.f32 %v3616_v56, %v3619_v43 }
 0x1f6   : > { %v941_v49 = vpop.f32.mrb[72].mxu0 }
 0x1f7   : > { %v3626_v62 = vadd.f32 %v941_v49, %v3588_v36  ;;  %v943_v63 = vpop.f32.mrb[73].mxu0 }
 0x1f8   : > { %v3629_v0 = vadd.f32 %v943_v63, %v3590_v37  ;;  %v945_v1 = vpop.f32.mrb[74].mxu0  ;;  %1250 = vmax.xlane.f32.xlu1 %v1249_v61 }
 0x1f9   : > { %5094 = vst [vmem:[#allocation13_spill] sm:$0xff] %v3626_v62  ;;  %v3632_v2 = vadd.f32 %v945_v1, %v3588_v36  ;;  %v947_v3 = vpop.f32.mrb[75].mxu0 }
 0x1fa   : > { %5095 = vst [vmem:[#allocation14_spill] sm:$0xff] %v3629_v0  ;;  %v3635_v4 = vadd.f32 %v947_v3, %v3590_v37  ;;  %v1252_v5 = vmax.f32 %v3626_v62, %v3629_v0 }
 0x1fb   : > { %5096 = vst [vmem:[#allocation15_spill] sm:$0xff] %v3632_v2 }
 0x1fc   : > { %5097 = vst [vmem:[#allocation16_spill] sm:$0xff] %v3635_v4  ;;  %1253 = vmax.xlane.f32.xlu0 %v1252_v5  ;;  %v1255_v6 = vmax.f32 %v3632_v2, %v3635_v4 }
 0x1fe   : > { %v951_v7 = vpop.f32.mrb[76].mxu0  ;;  %1256 = vmax.xlane.f32.xlu1 %v1255_v6 }
 0x1ff   : > { %v3642_v60 = vadd.f32 %v951_v7, %v3588_v36  ;;  %v953_v10 = vpop.f32.mrb[77].mxu0 }
 0x200   : > { %v3645_v11 = vadd.f32 %v953_v10, %v3590_v37  ;;  %v955_v12 = vpop.f32.mrb[78].mxu0 }
 0x201   : > { %5098 = vst [vmem:[#allocation17_spill] sm:$0xff] %v3642_v60  ;;  %v3648_v13 = vadd.f32 %v955_v12, %v3588_v36  ;;  %v957_v14 = vpop.f32.mrb[79].mxu0 }
 0x202   : > { %5099 = vst [vmem:[#allocation18_spill] sm:$0xff] %v3645_v11  ;;  %v3651_v15 = vadd.f32 %v957_v14, %v3590_v37  ;;  %v1258_v16 = vmax.f32 %v3642_v60, %v3645_v11 }
 0x203   : > { %5100 = vst [vmem:[#allocation19_spill] sm:$0xff] %v3648_v13 }
 0x204   : > { %5101 = vst [vmem:[#allocation20_spill] sm:$0xff] %v3651_v15  ;;  %1259 = vmax.xlane.f32.xlu0 %v1258_v16  ;;  %v1261_v17 = vmax.f32 %v3648_v13, %v3651_v15 }
 0x206   : > { %v961_v18 = vpop.f32.mrb[80].mxu0  ;;  %v1001_v19 = vpop.f32.mrb[0].mxu1  ;;  %1262 = vmax.xlane.f32.xlu1 %v1261_v17 }
 0x207   : > { %v3658_v20 = vadd.f32 %v961_v18, %v3588_v36  ;;  %v963_v21 = vpop.f32.mrb[81].mxu0  ;;  %v1003_v24 = vpop.f32.mrb[1].mxu1  ;;  %v3667_v30 = vadd.f32 %v1001_v19, %v3588_v36 }
 0x208   : > { %v3661_v59 = vadd.f32 %v963_v21, %v3590_v37  ;;  %v965_v25 = vpop.f32.mrb[82].mxu0  ;;  %v1005_v26 = vpop.f32.mrb[2].mxu1  ;;  %v3670_v31 = vadd.f32 %v1003_v24, %v3590_v37 }
 0x209   : > { %5102 = vst [vmem:[#allocation21_spill] sm:$0xff] %v3658_v20  ;;  %v3664_v27 = vadd.f32 %v965_v25, %v3588_v36  ;;  %v967_v28 = vpop.f32.mrb[83].mxu0  ;;  %v1007_v29 = vpop.f32.mrb[3].mxu1  ;;  %5105 = vst [vmem:[#allocation24_spill] sm:$0xff] %v3667_v30  ;;  %v3678_v34 = vadd.f32 %v1005_v26, %v3588_v36 }
 0x20a   : > { %5103 = vst [vmem:[#allocation22_spill] sm:$0xff] %v3661_v59  ;;  %5106 = vst [vmem:[#allocation25_spill] sm:$0xff] %v3670_v31  ;;  %v3673_v32 = vadd.f32 %v967_v28, %v3590_v37  ;;  %v1264_v33 = vmax.f32 %v3658_v20, %v3661_v59  ;;  %v3681_v35 = vadd.f32 %v1007_v29, %v3590_v37 }
 0x20b   : > { %5104 = vst [vmem:[#allocation23_spill] sm:$0xff] %v3664_v27  ;;  %5108 = vst [vmem:[#allocation27_spill] sm:$0xff] %v3678_v34  ;;  %v1288_v22 = vmax.f32 %v3667_v30, %v3670_v31 }
 0x20c   : > { %5107 = vst [vmem:[#allocation26_spill] sm:$0xff] %v3673_v32  ;;  %5109 = vst [vmem:[#allocation28_spill] sm:$0xff] %v3681_v35  ;;  %1265 = vmax.xlane.f32.xlu0 %v1264_v33  ;;  %v1267_v57 = vmax.f32 %v3664_v27, %v3673_v32  ;;  %v1291_v40 = vmax.f32 %v3678_v34, %v3681_v35 }
 0x20e   : > { %v971_v8 = vpop.f32.mrb[84].mxu0  ;;  %v1011_v9 = vpop.f32.mrb[4].mxu1  ;;  %1268 = vmax.xlane.f32.xlu1 %v1267_v57 }
 0x20f   : > { %v3688_v23 = vadd.f32 %v971_v8, %v3588_v36  ;;  %v973_v38 = vpop.f32.mrb[85].mxu0  ;;  %v1013_v41 = vpop.f32.mrb[5].mxu1  ;;  %v3699_v55 = vadd.f32 %v1011_v9, %v3588_v36 }
 0x210   : > { %v3691_v44 = vadd.f32 %v973_v38, %v3590_v37  ;;  %v975_v45 = vpop.f32.mrb[86].mxu0  ;;  %v1015_v48 = vpop.f32.mrb[6].mxu1  ;;  %1289 = vmax.xlane.f32.xlu0 %v1288_v22  ;;  %v3702_v58 = vadd.f32 %v1013_v41, %v3590_v37 }
 0x211   : > { %5110 = vst [vmem:[#allocation29_spill] sm:$0xff] %v3688_v23  ;;  %v3696_v50 = vadd.f32 %v975_v45, %v3588_v36  ;;  %v977_v52 = vpop.f32.mrb[87].mxu0  ;;  %v1017_v54 = vpop.f32.mrb[7].mxu1  ;;  %5113 = vst [vmem:[#allocation32_spill] sm:$0xff] %v3699_v55  ;;  %v3710_v63 = vadd.f32 %v1015_v48, %v3588_v36 }
 0x212   : > { %5111 = vst [vmem:[#allocation30_spill] sm:$0xff] %v3691_v44  ;;  %5114 = vst [vmem:[#allocation33_spill] sm:$0xff] %v3702_v58  ;;  %v3705_v49 = vadd.f32 %v977_v52, %v3590_v37  ;;  %1292 = vmax.xlane.f32.xlu1 %v1291_v40  ;;  %v1270_v61 = vmax.f32 %v3688_v23, %v3691_v44  ;;  %v3713_v1 = vadd.f32 %v1017_v54, %v3590_v37 }
 0x213   : > { %5112 = vst [vmem:[#allocation31_spill] sm:$0xff] %v3696_v50  ;;  %5116 = vst [vmem:[#allocation35_spill] sm:$0xff] %v3710_v63  ;;  %v1294_v7 = vmax.f32 %v3699_v55, %v3702_v58 }
 0x214   : > { %5115 = vst [vmem:[#allocation34_spill] sm:$0xff] %v3705_v49  ;;  %5117 = vst [vmem:[#allocation36_spill] sm:$0xff] %v3713_v1  ;;  %1271 = vmax.xlane.f32.xlu0 %v1270_v61  ;;  %v1273_v3 = vmax.f32 %v3696_v50, %v3705_v49  ;;  %v1297_v19 = vmax.f32 %v3710_v63, %v3713_v1 }
 0x216   : > { %v981_v5 = vpop.f32.mrb[88].mxu0  ;;  %v1021_v6 = vpop.f32.mrb[8].mxu1  ;;  %1274 = vmax.xlane.f32.xlu1 %v1273_v3 }
 0x217   : > { %v3720_v10 = vadd.f32 %v981_v5, %v3588_v36  ;;  %v983_v12 = vpop.f32.mrb[89].mxu0  ;;  %v1023_v14 = vpop.f32.mrb[9].mxu1  ;;  %v3731_v26 = vadd.f32 %v1021_v6, %v3588_v36 }
 0x218   : > { %v3723_v16 = vadd.f32 %v983_v12, %v3590_v37  ;;  %v985_v17 = vpop.f32.mrb[90].mxu0  ;;  %v1025_v18 = vpop.f32.mrb[10].mxu1  ;;  %1295 = vmax.xlane.f32.xlu0 %v1294_v7  ;;  %v3734_v28 = vadd.f32 %v1023_v14, %v3590_v37 }
 0x219   : > { %5118 = vst [vmem:[#allocation37_spill] sm:$0xff] %v3720_v10  ;;  %v3728_v21 = vadd.f32 %v985_v17, %v3588_v36  ;;  %v987_v24 = vpop.f32.mrb[91].mxu0  ;;  %v1027_v25 = vpop.f32.mrb[11].mxu1  ;;  %5121 = vst [vmem:[#allocation40_spill] sm:$0xff] %v3731_v26  ;;  %v3742_v57 = vadd.f32 %v1025_v18, %v3588_v36 }
 0x21a   : > { %5119 = vst [vmem:[#allocation38_spill] sm:$0xff] %v3723_v16  ;;  %5122 = vst [vmem:[#allocation41_spill] sm:$0xff] %v3734_v28  ;;  %v3737_v29 = vadd.f32 %v987_v24, %v3590_v37  ;;  %1298 = vmax.xlane.f32.xlu1 %v1297_v19  ;;  %v1276_v33 = vmax.f32 %v3720_v10, %v3723_v16  ;;  %v3745_v8 = vadd.f32 %v1027_v25, %v3590_v37 }
 0x21b   : > { %5120 = vst [vmem:[#allocation39_spill] sm:$0xff] %v3728_v21  ;;  %5124 = vst [vmem:[#allocation43_spill] sm:$0xff] %v3742_v57  ;;  %v1300_v41 = vmax.f32 %v3731_v26, %v3734_v28 }
 0x21c   : > { %5123 = vst [vmem:[#allocation42_spill] sm:$0xff] %v3737_v29  ;;  %5125 = vst [vmem:[#allocation44_spill] sm:$0xff] %v3745_v8  ;;  %1277 = vmax.xlane.f32.xlu0 %v1276_v33  ;;  %v1279_v9 = vmax.f32 %v3728_v21, %v3737_v29  ;;  %v1303_v3 = vmax.f32 %v3742_v57, %v3745_v8 }
 0x21e   : > { %v991_v22 = vpop.f32.mrb[92].mxu0  ;;  %v1031_v38 = vpop.f32.mrb[12].mxu1  ;;  %1280 = vmax.xlane.f32.xlu1 %v1279_v9 }
 0x21f   : > { %v3752_v45 = vadd.f32 %v991_v22, %v3588_v36  ;;  %v993_v48 = vpop.f32.mrb[93].mxu0  ;;  %v1033_v40 = vpop.f32.mrb[13].mxu1  ;;  %v3763_v12 = vadd.f32 %v1031_v38, %v3588_v36 }
 0x220   : > { %v3755_v52 = vadd.f32 %v993_v48, %v3590_v37  ;;  %v995_v54 = vpop.f32.mrb[94].mxu0  ;;  %v1035_v61 = vpop.f32.mrb[14].mxu1  ;;  %1301 = vmax.xlane.f32.xlu0 %v1300_v41  ;;  %v3766_v14 = vadd.f32 %v1033_v40, %v3590_v37 }
 0x221   : > { %5126 = vst [vmem:[#allocation45_spill] sm:$0xff] %v3752_v45  ;;  %v3760_v5 = vadd.f32 %v995_v54, %v3588_v36  ;;  %v997_v6 = vpop.f32.mrb[95].mxu0  ;;  %v1037_v7 = vpop.f32.mrb[15].mxu1  ;;  %5129 = vst [vmem:[#allocation48_spill] sm:$0xff] %v3763_v12  ;;  %v3774_v19 = vadd.f32 %v1035_v61, %v3588_v36 }
 0x222   : > { %5127 = vst [vmem:[#allocation46_spill] sm:$0xff] %v3755_v52  ;;  %5130 = vst [vmem:[#allocation49_spill] sm:$0xff] %v3766_v14  ;;  %v3769_v17 = vadd.f32 %v997_v6, %v3590_v37  ;;  %1304 = vmax.xlane.f32.xlu1 %v1303_v3  ;;  %v1282_v18 = vmax.f32 %v3752_v45, %v3755_v52  ;;  %v3777_v24 = vadd.f32 %v1037_v7, %v3590_v37 }
 0x223   : > { %5128 = vst [vmem:[#allocation47_spill] sm:$0xff] %v3760_v5  ;;  %5132 = vst [vmem:[#allocation51_spill] sm:$0xff] %v3774_v19  ;;  %v1306_v9 = vmax.f32 %v3763_v12, %v3766_v14 }
 0x224   : > { %5131 = vst [vmem:[#allocation50_spill] sm:$0xff] %v3769_v17  ;;  %5133 = vst [vmem:[#allocation52_spill] sm:$0xff] %v3777_v24  ;;  %1283 = vmax.xlane.f32.xlu0 %v1282_v18  ;;  %v1285_v25 = vmax.f32 %v3760_v5, %v3769_v17  ;;  %v1309_v40 = vmax.f32 %v3774_v19, %v3777_v24 }
 0x226   : > { %v1041_v33 = vpop.f32.mrb[16].mxu1  ;;  %1286 = vmax.xlane.f32.xlu1 %v1285_v25 }
 0x227   : > { %v3784_v22 = vadd.f32 %v1041_v33, %v3588_v36  ;;  %v1043_v38 = vpop.f32.mrb[17].mxu1 }
 0x228   : > { %v3787_v41 = vadd.f32 %v1043_v38, %v3590_v37  ;;  %v1045_v48 = vpop.f32.mrb[18].mxu1  ;;  %1307 = vmax.xlane.f32.xlu0 %v1306_v9 }
 0x229   : > { %5134 = vst [vmem:[#allocation53_spill] sm:$0xff] %v3784_v22  ;;  %v3792_v54 = vadd.f32 %v1045_v48, %v3588_v36  ;;  %v1047_v61 = vpop.f32.mrb[19].mxu1 }
 0x22a   : > { %5135 = vst [vmem:[#allocation54_spill] sm:$0xff] %v3787_v41  ;;  %v3795_v3 = vadd.f32 %v1047_v61, %v3590_v37  ;;  %1310 = vmax.xlane.f32.xlu1 %v1309_v40  ;;  %v1312_v6 = vmax.f32 %v3784_v22, %v3787_v41 }
 0x22b   : > { %5136 = vst [vmem:[#allocation55_spill] sm:$0xff] %v3792_v54 }
 0x22c   : > { %5137 = vst [vmem:[#allocation56_spill] sm:$0xff] %v3795_v3  ;;  %1313 = vmax.xlane.f32.xlu0 %v1312_v6  ;;  %v1315_v7 = vmax.f32 %v3792_v54, %v3795_v3 }
 0x22e   : > { %v1051_v18 = vpop.f32.mrb[20].mxu1  ;;  %1316 = vmax.xlane.f32.xlu1 %v1315_v7 }
 0x22f   : > { %v3802_v25 = vadd.f32 %v1051_v18, %v3588_v36  ;;  %v1053_v33 = vpop.f32.mrb[21].mxu1 }
 0x230   : > { %v3805_v9 = vadd.f32 %v1053_v33, %v3590_v37  ;;  %v1055_v38 = vpop.f32.mrb[22].mxu1 }
 0x231   : > { %5138 = vst [vmem:[#allocation57_spill] sm:$0xff] %v3802_v25  ;;  %v3808_v48 = vadd.f32 %v1055_v38, %v3588_v36  ;;  %v1057_v40 = vpop.f32.mrb[23].mxu1 }
 0x232   : > { %5139 = vst [vmem:[#allocation58_spill] sm:$0xff] %v3805_v9  ;;  %v3811_v61 = vadd.f32 %v1057_v40, %v3590_v37  ;;  %v1318_v6 = vmax.f32 %v3802_v25, %v3805_v9 }
 0x233   : > { %5140 = vst [vmem:[#allocation59_spill] sm:$0xff] %v3808_v48 }
 0x234   : > { %5141 = vst [vmem:[#allocation60_spill] sm:$0xff] %v3811_v61  ;;  %1319 = vmax.xlane.f32.xlu0 %v1318_v6  ;;  %v1321_v7 = vmax.f32 %v3808_v48, %v3811_v61 }
 0x236   : > { %v1061_v18 = vpop.f32.mrb[24].mxu1  ;;  %1322 = vmax.xlane.f32.xlu1 %v1321_v7 }
 0x237   : > { %v3818_v33 = vadd.f32 %v1061_v18, %v3588_v36  ;;  %v1063_v3 = vpop.f32.mrb[25].mxu1 }
 0x238   : > { %v3821_v38 = vadd.f32 %v1063_v3, %v3590_v37  ;;  %v1065_v54 = vpop.f32.mrb[26].mxu1 }
 0x239   : > { %5142 = vst [vmem:[#allocation61_spill] sm:$0xff] %v3818_v33  ;;  %v3824_v40 = vadd.f32 %v1065_v54, %v3588_v36  ;;  %v1067_v41 = vpop.f32.mrb[27].mxu1 }
 0x23a   : > { %5143 = vst [vmem:[#allocation62_spill] sm:$0xff] %v3821_v38  ;;  %v3827_v9 = vadd.f32 %v1067_v41, %v3590_v37  ;;  %v1324_v6 = vmax.f32 %v3818_v33, %v3821_v38 }
 0x23b   : > { %5144 = vst [vmem:[#allocation63_spill] sm:$0xff] %v3824_v40 }
 0x23c   : > { %5145 = vst [vmem:[#allocation64_spill] sm:$0xff] %v3827_v9  ;;  %1325 = vmax.xlane.f32.xlu0 %v1324_v6  ;;  %v1327_v7 = vmax.f32 %v3824_v40, %v3827_v9 }
 0x23e   : > { %v1071_v18 = vpop.f32.mrb[28].mxu1  ;;  %1328 = vmax.xlane.f32.xlu1 %v1327_v7 }
 0x23f   : > { %v3834_v3 = vadd.f32 %v1071_v18, %v3588_v36  ;;  %v1073_v61 = vpop.f32.mrb[29].mxu1 }
 0x240   : > { %v3837_v54 = vadd.f32 %v1073_v61, %v3590_v37  ;;  %v1075_v48 = vpop.f32.mrb[30].mxu1 }
 0x241   : > { %5146 = vst [vmem:[#allocation65_spill] sm:$0xff] %v3834_v3  ;;  %v3840_v41 = vadd.f32 %v1075_v48, %v3588_v36  ;;  %v1077_v25 = vpop.f32.mrb[31].mxu1 }
 0x242   : > { %5147 = vst [vmem:[#allocation66_spill] sm:$0xff] %v3837_v54  ;;  %v3843_v38 = vadd.f32 %v1077_v25, %v3590_v37  ;;  %v1330_v6 = vmax.f32 %v3834_v3, %v3837_v54 }
 0x243   : > { %5148 = vst [vmem:[#allocation67_spill] sm:$0xff] %v3840_v41 }
 0x244   : > { %5149 = vst [vmem:[#allocation68_spill] sm:$0xff] %v3843_v38  ;;  %1331 = vmax.xlane.f32.xlu0 %v1330_v6  ;;  %v1333_v7 = vmax.f32 %v3840_v41, %v3843_v38 }
 0x246   : > { %v1081_v18 = vpop.f32.mrb[32].mxu1  ;;  %1334 = vmax.xlane.f32.xlu1 %v1333_v7 }
 0x247   : > { %v3850_v61 = vadd.f32 %v1081_v18, %v3588_v36  ;;  %v1083_v9 = vpop.f32.mrb[33].mxu1 }
 0x248   : > { %v3853_v48 = vadd.f32 %v1083_v9, %v3590_v37  ;;  %v1085_v40 = vpop.f32.mrb[34].mxu1 }
 0x249   : > { %5150 = vst [vmem:[#allocation69_spill] sm:$0xff] %v3850_v61  ;;  %v3856_v25 = vadd.f32 %v1085_v40, %v3588_v36  ;;  %v1087_v33 = vpop.f32.mrb[35].mxu1 }
 0x24a   : > { %5151 = vst [vmem:[#allocation70_spill] sm:$0xff] %v3853_v48  ;;  %v3859_v54 = vadd.f32 %v1087_v33, %v3590_v37  ;;  %v1336_v6 = vmax.f32 %v3850_v61, %v3853_v48 }
 0x24b   : > { %5152 = vst [vmem:[#allocation71_spill] sm:$0xff] %v3856_v25 }
 0x24c   : > { %5153 = vst [vmem:[#allocation72_spill] sm:$0xff] %v3859_v54  ;;  %1337 = vmax.xlane.f32.xlu0 %v1336_v6  ;;  %v1339_v7 = vmax.f32 %v3856_v25, %v3859_v54 }
 0x24e   : > { %v1091_v18 = vpop.f32.mrb[36].mxu1  ;;  %1340 = vmax.xlane.f32.xlu1 %v1339_v7 }
 0x24f   : > { %v3866_v9 = vadd.f32 %v1091_v18, %v3588_v36  ;;  %v1093_v38 = vpop.f32.mrb[37].mxu1 }
 0x250   : > { %v3869_v40 = vadd.f32 %v1093_v38, %v3590_v37  ;;  %v1095_v41 = vpop.f32.mrb[38].mxu1 }
 0x251   : > { %5154 = vst [vmem:[#allocation73_spill] sm:$0xff] %v3866_v9  ;;  %v3872_v33 = vadd.f32 %v1095_v41, %v3588_v36  ;;  %v1097_v3 = vpop.f32.mrb[39].mxu1 }
 0x252   : > { %5155 = vst [vmem:[#allocation74_spill] sm:$0xff] %v3869_v40  ;;  %v3875_v48 = vadd.f32 %v1097_v3, %v3590_v37  ;;  %v1342_v6 = vmax.f32 %v3866_v9, %v3869_v40 }
 0x253   : > { %5156 = vst [vmem:[#allocation75_spill] sm:$0xff] %v3872_v33 }
 0x254   : > { %5157 = vst [vmem:[#allocation76_spill] sm:$0xff] %v3875_v48  ;;  %1343 = vmax.xlane.f32.xlu0 %v1342_v6  ;;  %v1345_v7 = vmax.f32 %v3872_v33, %v3875_v48 }
 0x256   : > { %v1101_v18 = vpop.f32.mrb[40].mxu1  ;;  %1346 = vmax.xlane.f32.xlu1 %v1345_v7 }
 0x257   : > { %v3882_v38 = vadd.f32 %v1101_v18, %v3588_v36  ;;  %v1103_v54 = vpop.f32.mrb[41].mxu1 }
 0x258   : > { %v3885_v41 = vadd.f32 %v1103_v54, %v3590_v37  ;;  %v1105_v25 = vpop.f32.mrb[42].mxu1 }
 0x259   : > { %5158 = vst [vmem:[#allocation77_spill] sm:$0xff] %v3882_v38  ;;  %v3888_v3 = vadd.f32 %v1105_v25, %v3588_v36  ;;  %v1107_v61 = vpop.f32.mrb[43].mxu1 }
 0x25a   : > { %5159 = vst [vmem:[#allocation78_spill] sm:$0xff] %v3885_v41  ;;  %v3891_v40 = vadd.f32 %v1107_v61, %v3590_v37  ;;  %v1348_v6 = vmax.f32 %v3882_v38, %v3885_v41 }
 0x25b   : > { %5160 = vst [vmem:[#allocation79_spill] sm:$0xff] %v3888_v3 }
 0x25c   : > { %5161 = vst [vmem:[#allocation80_spill] sm:$0xff] %v3891_v40  ;;  %1349 = vmax.xlane.f32.xlu0 %v1348_v6  ;;  %v1351_v7 = vmax.f32 %v3888_v3, %v3891_v40 }
 0x25e   : > { %v1111_v18 = vpop.f32.mrb[44].mxu1  ;;  %1352 = vmax.xlane.f32.xlu1 %v1351_v7 }
 0x25f   : > { %v3898_v54 = vadd.f32 %v1111_v18, %v3588_v36  ;;  %v1113_v48 = vpop.f32.mrb[45].mxu1 }
 0x260   : > { %v3901_v25 = vadd.f32 %v1113_v48, %v3590_v37  ;;  %v1115_v33 = vpop.f32.mrb[46].mxu1 }
 0x261   : > { %5162 = vst [vmem:[#allocation81_spill] sm:$0xff] %v3898_v54  ;;  %v3904_v61 = vadd.f32 %v1115_v33, %v3588_v36  ;;  %v1117_v9 = vpop.f32.mrb[47].mxu1 }
 0x262   : > { %5163 = vst [vmem:[#allocation82_spill] sm:$0xff] %v3901_v25  ;;  %v3907_v41 = vadd.f32 %v1117_v9, %v3590_v37  ;;  %v1354_v6 = vmax.f32 %v3898_v54, %v3901_v25 }
 0x263   : > { %5164 = vst [vmem:[#allocation83_spill] sm:$0xff] %v3904_v61 }
 0x264   : > { %5165 = vst [vmem:[#allocation84_spill] sm:$0xff] %v3907_v41  ;;  %1355 = vmax.xlane.f32.xlu0 %v1354_v6  ;;  %v1357_v7 = vmax.f32 %v3904_v61, %v3907_v41 }
 0x266   : > { %v1121_v18 = vpop.f32.mrb[48].mxu1  ;;  %1358 = vmax.xlane.f32.xlu1 %v1357_v7 }
 0x267   : > { %v3914_v48 = vadd.f32 %v1121_v18, %v3588_v36  ;;  %v1123_v40 = vpop.f32.mrb[49].mxu1 }
 0x268   : > { %v3917_v33 = vadd.f32 %v1123_v40, %v3590_v37  ;;  %v1125_v3 = vpop.f32.mrb[50].mxu1 }
 0x269   : > { %5166 = vst [vmem:[#allocation85_spill] sm:$0xff] %v3914_v48  ;;  %v3920_v9 = vadd.f32 %v1125_v3, %v3588_v36  ;;  %v1127_v38 = vpop.f32.mrb[51].mxu1 }
 0x26a   : > { %5167 = vst [vmem:[#allocation86_spill] sm:$0xff] %v3917_v33  ;;  %v3923_v25 = vadd.f32 %v1127_v38, %v3590_v37  ;;  %v1360_v6 = vmax.f32 %v3914_v48, %v3917_v33 }
 0x26b   : > { %5168 = vst [vmem:[#allocation87_spill] sm:$0xff] %v3920_v9 }
 0x26c   : > { %5169 = vst [vmem:[#allocation88_spill] sm:$0xff] %v3923_v25  ;;  %1361 = vmax.xlane.f32.xlu0 %v1360_v6  ;;  %v1363_v7 = vmax.f32 %v3920_v9, %v3923_v25 }
 0x26e   : > { %v1131_v18 = vpop.f32.mrb[52].mxu1  ;;  %1364 = vmax.xlane.f32.xlu1 %v1363_v7 }
 0x26f   : > { %v3930_v40 = vadd.f32 %v1131_v18, %v3588_v36  ;;  %v1133_v41 = vpop.f32.mrb[53].mxu1 }
 0x270   : > { %v3933_v3 = vadd.f32 %v1133_v41, %v3590_v37  ;;  %v1135_v61 = vpop.f32.mrb[54].mxu1 }
 0x271   : > { %5170 = vst [vmem:[#allocation89_spill] sm:$0xff] %v3930_v40  ;;  %v3936_v38 = vadd.f32 %v1135_v61, %v3588_v36  ;;  %v1137_v54 = vpop.f32.mrb[55].mxu1 }
 0x272   : > { %5171 = vst [vmem:[#allocation90_spill] sm:$0xff] %v3933_v3  ;;  %v3939_v33 = vadd.f32 %v1137_v54, %v3590_v37  ;;  %v1366_v6 = vmax.f32 %v3930_v40, %v3933_v3 }
 0x273   : > { %5172 = vst [vmem:[#allocation91_spill] sm:$0xff] %v3936_v38 }
 0x274   : > { %5173 = vst [vmem:[#allocation92_spill] sm:$0xff] %v3939_v33  ;;  %1367 = vmax.xlane.f32.xlu0 %v1366_v6  ;;  %v1369_v7 = vmax.f32 %v3936_v38, %v3939_v33 }
 0x276   : > { %v1141_v18 = vpop.f32.mrb[56].mxu1  ;;  %1370 = vmax.xlane.f32.xlu1 %v1369_v7 }
 0x277   : > { %v3946_v41 = vadd.f32 %v1141_v18, %v3588_v36  ;;  %v1143_v25 = vpop.f32.mrb[57].mxu1 }
 0x278   : > { %v3949_v61 = vadd.f32 %v1143_v25, %v3590_v37  ;;  %v1145_v9 = vpop.f32.mrb[58].mxu1 }
 0x279   : > { %5174 = vst [vmem:[#allocation93_spill] sm:$0xff] %v3946_v41  ;;  %v3952_v54 = vadd.f32 %v1145_v9, %v3588_v36  ;;  %v1147_v48 = vpop.f32.mrb[59].mxu1  ;;  %v3954_v22 = vpop.xlane.xlu0 %1241 }
 0x27a   : > { %5175 = vst [vmem:[#allocation94_spill] sm:$0xff] %v3949_v61  ;;  %5177 = vst [vmem:[#allocation96_spill] sm:$0xff] %v3954_v22  ;;  %v3957_v6 = vadd.f32 %v1147_v48, %v3590_v37  ;;  %v1432_v7 = vsub.f32 %v3594_v39, %v3954_v22  ;;  %v1433_v18 = vsub.f32 %v3597_v42, %v3954_v22 }
 0x27b   : > { %5176 = vst [vmem:[#allocation95_spill] sm:$0xff] %v3952_v54  ;;  %v1372_v25 = vmax.f32 %v3946_v41, %v3949_v61 }
 0x27c   : > { %5178 = vst [vmem:[#allocation97_spill] sm:$0xff] %v3957_v6  ;;  %v1560_v33 = vmul.f32 1.442695, %v1432_v7  ;;  %v1562_v38 = vmul.f32 1.442695, %v1433_v18  ;;  %v1375_v9 = vmax.f32 %v3952_v54, %v3957_v6 }
 0x27d   : > { %1373 = vmax.xlane.f32.xlu0 %v1372_v25  ;;  %v3967_v3 = vpop.xlane.xlu0 %1244 }
 0x27e   : > { %5179 = vst [vmem:[#allocation98_spill] sm:$0xff] %v3967_v3  ;;  %2783 = vpow2.f32 %v1560_v33  ;;  %v1434_v48 = vsub.f32 %v3600_v46, %v3967_v3  ;;  %v1435_v39 = vsub.f32 %v3603_v47, %v3967_v3  ;;  %v1151_v40 = vpop.f32.mrb[60].mxu1  ;;  %1376 = vmax.xlane.f32.xlu1 %v1375_v9 }
 0x27f   : > { %2785 = vpow2.f32 %v1562_v38  ;;  %v3974_v42 = vadd.f32 %v1151_v40, %v3588_v36  ;;  %v1153_v7 = vpop.f32.mrb[61].mxu1 }
 0x280   : > { %v1564_v18 = vmul.f32 1.442695, %v1434_v48  ;;  %v1566_v25 = vmul.f32 1.442695, %v1435_v39  ;;  %v3977_v22 = vadd.f32 %v1153_v7, %v3590_v37  ;;  %v1155_v6 = vpop.f32.mrb[62].mxu1 }
 0x281   : > { %5180 = vst [vmem:[#allocation99_spill] sm:$0xff] %v3974_v42  ;;  %v3980_v33 = vadd.f32 %v1155_v6, %v3588_v36  ;;  %v1157_v46 = vpop.f32.mrb[63].mxu1  ;;  %v3982_v54 = vpop.xlane.xlu1 %1247 }
 0x282   : > { %5181 = vst [vmem:[#allocation100_spill] sm:$0xff] %v3977_v22  ;;  %5183 = vst [vmem:[#allocation102_spill] sm:$0xff] %v3982_v54  ;;  %2787 = vpow2.f32 %v1564_v18  ;;  %v3985_v9 = vadd.f32 %v1157_v46, %v3590_v37  ;;  %v1436_v40 = vsub.f32 %v3610_v51, %v3982_v54  ;;  %v1437_v39 = vsub.f32 %v3613_v53, %v3982_v54 }
 0x283   : > { %5182 = vst [vmem:[#allocation101_spill] sm:$0xff] %v3980_v33  ;;  %2789 = vpow2.f32 %v1566_v25  ;;  %v1378_v38 = vmax.f32 %v3974_v42, %v3977_v22 }
 0x284   : > { %5184 = vst [vmem:[#allocation103_spill] sm:$0xff] %v3985_v9  ;;  %v1568_v48 = vmul.f32 1.442695, %v1436_v40  ;;  %v1570_v6 = vmul.f32 1.442695, %v1437_v39  ;;  %v1381_v7 = vmax.f32 %v3980_v33, %v3985_v9 }
 0x285   : > { %1379 = vmax.xlane.f32.xlu0 %v1378_v38  ;;  %v3995_v18 = vpop.xlane.xlu1 %1250 }
 0x286   : > { %5185 = vst [vmem:[#allocation104_spill] sm:$0xff] %v3995_v18  ;;  %2791 = vpow2.f32 %v1568_v48  ;;  %v1438_v46 = vsub.f32 %v3616_v56, %v3995_v18  ;;  %v1439_v51 = vsub.f32 %v3619_v43, %v3995_v18  ;;  %v1161_v53 = vpop.f32.mrb[64].mxu1  ;;  %1382 = vmax.xlane.f32.xlu1 %v1381_v7 }
 0x287   : > { %2793 = vpow2.f32 %v1570_v6  ;;  %v1163_v25 = vpop.f32.mrb[65].mxu1  ;;  %v4008_v7 = vadd.f32 %v1161_v53, %v3588_v36 }
 0x288   : > { %v2784_v54 = vpop.eup %2783  ;;  %v1572_v40 = vmul.f32 1.442695, %v1438_v46  ;;  %v1574_v39 = vmul.f32 1.442695, %v1439_v51  ;;  %v1165_v47 = vpop.f32.mrb[66].mxu1  ;;  %v4011_v6 = vadd.f32 %v1163_v25, %v3590_v37 }
 0x289   : > { %v2786_v3 = vpop.eup %2785  ;;  %v1167_v9 = vpop.f32.mrb[67].mxu1 }
 0x28a   : > { %v4001_v38 = vpop.xlane.xlu0 %1253  ;;  %2795 = vpow2.f32 %v1572_v40  ;;  %v1816_v46 = vadd.f32 %v2786_v3, %v2784_v54  ;;  %v4023_v53 = vadd.f32 %v1167_v9, %v3590_v37 }
 0x28b   : > { %5186 = vst [vmem:[#allocation105_spill] sm:$0xff] %v4001_v38  ;;  %v1440_v48 = vsub.f32 %v3626_v62, %v4001_v38  ;;  %v1441_v56 = vsub.f32 %v3629_v0, %v4001_v38  ;;  %2797 = vpow2.f32 %v1574_v39  ;;  %v4013_v51 = vpop.xlane.xlu1 %1256  ;;  %v4020_v39 = vadd.f32 %v1165_v47, %v3588_v36 }
 0x28c   : > { %5187 = vst [vmem:[#allocation106_spill] sm:$0xff] %v4013_v51  ;;  %v2788_v43 = vpop.eup %2787  ;;  %v1442_v40 = vsub.f32 %v3632_v2, %v4013_v51  ;;  %v1443_v62 = vsub.f32 %v3635_v4, %v4013_v51  ;;  %5189 = vst [vmem:[#allocation108_spill] sm:$0xff] %v4023_v53  ;;  %1817 = vadd.xlane.f32.xlu0 %v1816_v46  ;;  %v1384_v2 = vmax.f32 %v4008_v7, %v4011_v6 }
 0x28d   : > { %v1576_v18 = vmul.f32 1.442695, %v1440_v48  ;;  %v1578_v33 = vmul.f32 1.442695, %v1441_v56  ;;  %v2790_v0 = vpop.eup %2789  ;;  %5188 = vst [vmem:[#allocation107_spill] sm:$0xff] %v4020_v39 }
 0x28e   : > { %v1580_v25 = vmul.f32 1.442695, %v1442_v40  ;;  %v1582_v3 = vmul.f32 1.442695, %v1443_v62  ;;  %v1171_v54 = vpop.f32.mrb[68].mxu1  ;;  %v1819_v48 = vadd.f32 %v2790_v0, %v2788_v43 }
 0x28f   : > { %2799 = vpow2.f32 %v1576_v18  ;;  %v1173_v56 = vpop.f32.mrb[69].mxu1  ;;  %v4036_v18 = vadd.f32 %v1171_v54, %v3588_v36 }
 0x290   : > { %2801 = vpow2.f32 %v1578_v33  ;;  %v2792_v38 = vpop.eup %2791  ;;  %1820 = vadd.xlane.f32.xlu1 %v1819_v48  ;;  %v1175_v4 = vpop.f32.mrb[70].mxu1  ;;  %1385 = vmax.xlane.f32.xlu0 %v1384_v2  ;;  %v1387_v33 = vmax.f32 %v4020_v39, %v4023_v53  ;;  %v4039_v46 = vadd.f32 %v1173_v56, %v3590_v37 }
 0x291   : > { %2803 = vpow2.f32 %v1580_v25  ;;  %v2794_v47 = vpop.eup %2793  ;;  %v1177_v9 = vpop.f32.mrb[71].mxu1  ;;  %5191 = vst [vmem:[#allocation110_spill] sm:$0xff] %v4036_v18 }
 0x292   : > { %2805 = vpow2.f32 %v1582_v3  ;;  %v4027_v51 = vpop.xlane.xlu0 %1259  ;;  %v1822_v0 = vadd.f32 %v2794_v47, %v2792_v38  ;;  %5192 = vst [vmem:[#allocation111_spill] sm:$0xff] %v4039_v46  ;;  %v4051_v54 = vadd.f32 %v1177_v9, %v3590_v37 }
 0x293   : > { %5190 = vst [vmem:[#allocation109_spill] sm:$0xff] %v4027_v51  ;;  %v1444_v62 = vsub.f32 %v3642_v60, %v4027_v51  ;;  %v1445_v43 = vsub.f32 %v3645_v11, %v4027_v51  ;;  %v4041_v2 = vpop.xlane.xlu1 %1262  ;;  %v4048_v11 = vadd.f32 %v1175_v4, %v3588_v36 }
 0x294   : > { %5193 = vst [vmem:[#allocation112_spill] sm:$0xff] %v4041_v2  ;;  %v2796_v40 = vpop.eup %2795  ;;  %v1446_v48 = vsub.f32 %v3648_v13, %v4041_v2  ;;  %v1447_v38 = vsub.f32 %v3651_v15, %v4041_v2  ;;  %1388 = vmax.xlane.f32.xlu1 %v1387_v33  ;;  %5194 = vst [vmem:[#allocation113_spill] sm:$0xff] %v4051_v54  ;;  %1823 = vadd.xlane.f32.xlu0 %v1822_v0 }
 0x295   : > { %v1584_v25 = vmul.f32 1.442695, %v1444_v62  ;;  %v1586_v3 = vmul.f32 1.442695, %v1445_v43  ;;  %v2798_v47 = vpop.eup %2797  ;;  %v1390_v13 = vmax.f32 %v4036_v18, %v4039_v46 }
 0x296   : > { %v1588_v56 = vmul.f32 1.442695, %v1446_v48  ;;  %v1590_v60 = vmul.f32 1.442695, %v1447_v38  ;;  %v1181_v62 = vpop.f32.mrb[72].mxu1  ;;  %v1825_v43 = vadd.f32 %v2798_v47, %v2796_v40 }
 0x297   : > { %2807 = vpow2.f32 %v1584_v25  ;;  %v1183_v51 = vpop.f32.mrb[73].mxu1  ;;  %v4064_v47 = vadd.f32 %v1181_v62, %v3588_v36 }
 0x298   : > { %2809 = vpow2.f32 %v1586_v3  ;;  %1826 = vadd.xlane.f32.xlu1 %v1825_v43  ;;  %v1185_v33 = vpop.f32.mrb[74].mxu1  ;;  %1391 = vmax.xlane.f32.xlu0 %v1390_v13  ;;  %v1393_v3 = vmax.f32 %v4048_v11, %v4051_v54 }
 0x299   : > { %v2800_v15 = vpop.eup %2799  ;;  %2811 = vpow2.f32 %v1588_v56  ;;  %v1187_v9 = vpop.f32.mrb[75].mxu1  ;;  %5196 = vst [vmem:[#allocation115_spill] sm:$0xff] %v4064_v47  ;;  %v4070_v13 = vadd.f32 %v1185_v33, %v3588_v36 }
 0x29a   : > { %v2802_v4 = vpop.eup %2801  ;;  %2813 = vpow2.f32 %v1590_v60  ;;  %v4055_v2 = vpop.xlane.xlu0 %1265  ;;  %v4067_v60 = vadd.f32 %v1183_v51, %v3590_v37  ;;  %v4073_v56 = vadd.f32 %v1187_v9, %v3590_v37 }
 0x29b   : > { %5195 = vst [vmem:[#allocation114_spill] sm:$0xff] %v4055_v2  ;;  %v2804_v0 = vpop.eup %2803  ;;  %v1448_v25 = vsub.f32 %v3658_v20, %v4055_v2  ;;  %v1449_v40 = vsub.f32 %v3661_v59, %v4055_v2  ;;  %v1828_v48 = vadd.f32 %v2802_v4, %v2800_v15  ;;  %5198 = vst [vmem:[#allocation117_spill] sm:$0xff] %v4070_v13  ;;  %v4075_v43 = vpop.xlane.xlu1 %1268 }
 0x29c   : > { %v2806_v38 = vpop.eup %2805  ;;  %5197 = vst [vmem:[#allocation116_spill] sm:$0xff] %v4067_v60  ;;  %5199 = vst [vmem:[#allocation118_spill] sm:$0xff] %v4073_v56  ;;  %v1450_v15 = vsub.f32 %v3664_v27, %v4075_v43  ;;  %v1451_v62 = vsub.f32 %v3673_v32, %v4075_v43  ;;  %1394 = vmax.xlane.f32.xlu1 %v1393_v3  ;;  %v1396_v3 = vmax.f32 %v4064_v47, %v4067_v60 }
 0x29d   : > { %5200 = vst [vmem:[#allocation119_spill] sm:$0xff] %v4075_v43  ;;  %v1592_v59 = vmul.f32 1.442695, %v1448_v25  ;;  %v1594_v20 = vmul.f32 1.442695, %v1449_v40  ;;  %1829 = vadd.xlane.f32.xlu0 %v1828_v48  ;;  %v1831_v4 = vadd.f32 %v2806_v38, %v2804_v0 }
 0x29e   : > { %v4081_v51 = vpop.xlane.xlu0 %1289  ;;  %v1596_v33 = vmul.f32 1.442695, %v1450_v15  ;;  %v1598_v2 = vmul.f32 1.442695, %v1451_v62  ;;  %v1191_v54 = vpop.f32.mrb[76].mxu1 }
 0x29f   : > { %5201 = vst [vmem:[#allocation120_spill] sm:$0xff] %v4081_v51  ;;  %2815 = vpow2.f32 %v1592_v59  ;;  %v1464_v9 = vsub.f32 %v3667_v30, %v4081_v51  ;;  %v1465_v25 = vsub.f32 %v3670_v31, %v4081_v51  ;;  %v1193_v40 = vpop.f32.mrb[77].mxu1  ;;  %v4087_v27 = vpop.xlane.xlu1 %1292  ;;  %v4096_v31 = vadd.f32 %v1191_v54, %v3588_v36 }
 0x2a0   : > { %2817 = vpow2.f32 %v1594_v20  ;;  %5202 = vst [vmem:[#allocation121_spill] sm:$0xff] %v4087_v27  ;;  %v1466_v59 = vsub.f32 %v3678_v34, %v4087_v27  ;;  %1832 = vadd.xlane.f32.xlu1 %v1831_v4  ;;  %v1195_v38 = vpop.f32.mrb[78].mxu1  ;;  %v1399_v20 = vmax.f32 %v4070_v13, %v4073_v56  ;;  %v1467_v30 = vsub.f32 %v3681_v35, %v4087_v27 }
 0x2a1   : > { %v2808_v48 = vpop.eup %2807  ;;  %2819 = vpow2.f32 %v1596_v33  ;;  %v1624_v0 = vmul.f32 1.442695, %v1464_v9  ;;  %v1626_v62 = vmul.f32 1.442695, %v1465_v25  ;;  %1397 = vmax.xlane.f32.xlu0 %v1396_v3  ;;  %v1197_v33 = vpop.f32.mrb[79].mxu1  ;;  %v4103_v4 = vadd.f32 %v1193_v40, %v3590_v37 }
 0x2a2   : > { %v2810_v15 = vpop.eup %2809  ;;  %2821 = vpow2.f32 %v1598_v2  ;;  %v4100_v9 = vpop.xlane.xlu0 %1271  ;;  %v1628_v34 = vmul.f32 1.442695, %v1466_v59  ;;  %v1630_v54 = vmul.f32 1.442695, %v1467_v30  ;;  %v4112_v27 = vadd.f32 %v1195_v38, %v3588_v36 }
 0x2a3   : > { %5203 = vst [vmem:[#allocation122_spill] sm:$0xff] %v4100_v9  ;;  %v2812_v32 = vpop.eup %2811  ;;  %2823 = vpow2.f32 %v1624_v0  ;;  %5204 = vst [vmem:[#allocation123_spill] sm:$0xff] %v4103_v4  ;;  %v1452_v2 = vsub.f32 %v3688_v23, %v4100_v9  ;;  %v1453_v51 = vsub.f32 %v3691_v44, %v4100_v9  ;;  %v4109_v35 = vpop.xlane.xlu1 %1274  ;;  %v1834_v3 = vadd.f32 %v2810_v15, %v2808_v48 }
 0x2a4   : > { %v2814_v25 = vpop.eup %2813  ;;  %2825 = vpow2.f32 %v1626_v62  ;;  %5205 = vst [vmem:[#allocation124_spill] sm:$0xff] %v4109_v35  ;;  %5206 = vst [vmem:[#allocation125_spill] sm:$0xff] %v4112_v27  ;;  %1400 = vmax.xlane.f32.xlu1 %v1399_v20  ;;  %v4115_v40 = vadd.f32 %v1197_v33, %v3590_v37  ;;  %v1454_v59 = vsub.f32 %v3696_v50, %v4109_v35 }
 0x2a5   : > { %2827 = vpow2.f32 %v1628_v34  ;;  %v1600_v0 = vmul.f32 1.442695, %v1452_v2  ;;  %1835 = vadd.xlane.f32.xlu0 %v1834_v3  ;;  %v1602_v62 = vmul.f32 1.442695, %v1453_v51  ;;  %v1455_v48 = vsub.f32 %v3705_v49, %v4109_v35 }
 0x2a6   : > { %5207 = vst [vmem:[#allocation126_spill] sm:$0xff] %v4115_v40  ;;  %v4119_v30 = vpop.xlane.xlu0 %1295  ;;  %2829 = vpow2.f32 %v1630_v54  ;;  %v1837_v15 = vadd.f32 %v2814_v25, %v2812_v32  ;;  %v1201_v38 = vpop.f32.mrb[80].mxu1  ;;  %v1402_v34 = vmax.f32 %v4096_v31, %v4103_v4  ;;  %v1604_v3 = vmul.f32 1.442695, %v1454_v59 }
 0x2a7   : > { %5208 = vst [vmem:[#allocation127_spill] sm:$0xff] %v4119_v30  ;;  %v4123_v44 = vpop.xlane.xlu1 %1298  ;;  %v1203_v20 = vpop.f32.mrb[81].mxu1  ;;  %2831 = vpow2.f32 %v1600_v0  ;;  %v1606_v32 = vmul.f32 1.442695, %v1455_v48  ;;  %v1405_v49 = vmax.f32 %v4112_v27, %v4115_v40 }
 0x2a8   : > { %5209 = vst [vmem:[#allocation128_spill] sm:$0xff] %v4123_v44  ;;  %1838 = vadd.xlane.f32.xlu1 %v1837_v15  ;;  %v1205_v2 = vpop.f32.mrb[82].mxu1  ;;  %2833 = vpow2.f32 %v1602_v62 }
 0x2a9   : > { %v2816_v33 = vpop.eup %2815  ;;  %1403 = vmax.xlane.f32.xlu0 %v1402_v34  ;;  %v1207_v51 = vpop.f32.mrb[83].mxu1  ;;  %v1468_v34 = vsub.f32 %v3699_v55, %v4119_v30  ;;  %2835 = vpow2.f32 %v1604_v3  ;;  %v4146_v55 = vadd.f32 %v1201_v38, %v3588_v36 }
 0x2aa   : > { %v2818_v50 = vpop.eup %2817  ;;  %v4127_v54 = vpop.xlane.xlu0 %1277  ;;  %2837 = vpow2.f32 %v1606_v32  ;;  %v1469_v32 = vsub.f32 %v3702_v58, %v4119_v30  ;;  %v4163_v58 = vadd.f32 %v1207_v51, %v3590_v37 }
 0x2ab   : > { %5210 = vst [vmem:[#allocation129_spill] sm:$0xff] %v4127_v54  ;;  %v2820_v23 = vpop.eup %2819  ;;  %v1456_v25 = vsub.f32 %v3720_v10, %v4127_v54  ;;  %v1457_v15 = vsub.f32 %v3723_v16, %v4127_v54  ;;  %v4135_v9 = vpop.xlane.xlu1 %1280  ;;  %v1840_v0 = vadd.f32 %v2818_v50, %v2816_v33 }
 0x2ac   : > { %v2822_v35 = vpop.eup %2821  ;;  %5211 = vst [vmem:[#allocation130_spill] sm:$0xff] %v4135_v9  ;;  %1406 = vmax.xlane.f32.xlu1 %v1405_v49  ;;  %v1458_v10 = vsub.f32 %v3728_v21, %v4135_v9  ;;  %v1459_v16 = vsub.f32 %v3737_v29, %v4135_v9  ;;  %v4149_v49 = vadd.f32 %v1203_v20, %v3590_v37 }
 0x2ad   : > { %v2824_v59 = vpop.eup %2823  ;;  %v1608_v48 = vmul.f32 1.442695, %v1456_v25  ;;  %1841 = vadd.xlane.f32.xlu0 %v1840_v0  ;;  %v1610_v40 = vmul.f32 1.442695, %v1457_v15  ;;  %v1843_v33 = vadd.f32 %v2822_v35, %v2820_v23  ;;  %v1632_v15 = vmul.f32 1.442695, %v1468_v34 }
 0x2ae   : > { %v2826_v62 = vpop.eup %2825  ;;  %v4141_v43 = vpop.xlane.xlu0 %1301  ;;  %v1612_v35 = vmul.f32 1.442695, %v1458_v10  ;;  %v4158_v20 = vadd.f32 %v1205_v2, %v3588_v36  ;;  %v1614_v9 = vmul.f32 1.442695, %v1459_v16  ;;  %v1634_v2 = vmul.f32 1.442695, %v1469_v32 }
 0x2af   : > { %5212 = vst [vmem:[#allocation131_spill] sm:$0xff] %v4141_v43  ;;  %v1211_v50 = vpop.f32.mrb[84].mxu1  ;;  %v2828_v54 = vpop.eup %2827  ;;  %v1864_v0 = vadd.f32 %v2826_v62, %v2824_v59  ;;  %2839 = vpow2.f32 %v1608_v48  ;;  %v1470_v16 = vsub.f32 %v3710_v63, %v4123_v44 }
 0x2b0   : > { %v1213_v3 = vpop.f32.mrb[85].mxu1  ;;  %v4151_v25 = vpop.xlane.xlu1 %1304  ;;  %1844 = vadd.xlane.f32.xlu1 %v1843_v33  ;;  %2841 = vpow2.f32 %v1610_v40  ;;  %5215 = vst [vmem:[#allocation134_spill] sm:$0xff] %v4158_v20  ;;  %v1408_v40 = vmax.f32 %v4146_v55, %v4149_v49 }
 0x2b1   : > { %5213 = vst [vmem:[#allocation132_spill] sm:$0xff] %v4151_v25  ;;  %v2830_v21 = vpop.eup %2829  ;;  %v1215_v29 = vpop.f32.mrb[86].mxu1  ;;  %1865 = vadd.xlane.f32.xlu0 %v1864_v0  ;;  %2843 = vpow2.f32 %v1632_v15  ;;  %v4178_v15 = vadd.f32 %v1211_v50, %v3588_v36  ;;  %v4181_v32 = vadd.f32 %v1213_v3, %v3590_v37 }
 0x2b2   : > { %v1217_v23 = vpop.f32.mrb[87].mxu1  ;;  %v4155_v38 = vpop.xlane.xlu0 %1283  ;;  %v1867_v48 = vadd.f32 %v2830_v21, %v2828_v54  ;;  %2845 = vpow2.f32 %v1612_v35 }
 0x2b3   : > { %5214 = vst [vmem:[#allocation133_spill] sm:$0xff] %v4155_v38  ;;  %v1460_v59 = vsub.f32 %v3752_v45, %v4155_v38  ;;  %v2832_v62 = vpop.eup %2831  ;;  %v1461_v34 = vsub.f32 %v3755_v52, %v4155_v38  ;;  %2847 = vpow2.f32 %v1614_v9  ;;  %5217 = vst [vmem:[#allocation136_spill] sm:$0xff] %v4178_v15  ;;  %v1471_v9 = vsub.f32 %v3713_v1, %v4123_v44  ;;  %v5243_v45 = vld [vmem:[#allocation63_spill] sm:$0xff] }
 0x2b4   : > { %v4167_v10 = vpop.xlane.xlu1 %1286  ;;  %v2834_v33 = vpop.eup %2833  ;;  %1868 = vadd.xlane.f32.xlu1 %v1867_v48  ;;  %5218 = vst [vmem:[#allocation137_spill] sm:$0xff] %v4181_v32  ;;  %2849 = vpow2.f32 %v1634_v2  ;;  %v4192_v2 = vadd.f32 %v1215_v29, %v3588_v36  ;;  %v1475_v29 = vsub.f32 %v3745_v8, %v4151_v25 }
 0x2b5   : > { %5216 = vst [vmem:[#allocation135_spill] sm:$0xff] %v4167_v10  ;;  %v1616_v0 = vmul.f32 1.442695, %v1460_v59  ;;  %v1462_v51 = vsub.f32 %v3760_v5, %v4167_v10  ;;  %1409 = vmax.xlane.f32.xlu0 %v1408_v40  ;;  %v1618_v30 = vmul.f32 1.442695, %v1461_v34  ;;  %v1463_v21 = vsub.f32 %v3769_v17, %v4167_v10  ;;  %v2836_v52 = vpop.eup %2835 }
 0x2b6   : > { %v1221_v54 = vpop.f32.mrb[88].mxu1  ;;  %v1411_v59 = vmax.f32 %v4158_v20, %v4163_v58  ;;  %v1846_v63 = vadd.f32 %v2834_v33, %v2832_v62  ;;  %v2838_v48 = vpop.eup %2837  ;;  %v1636_v34 = vmul.f32 1.442695, %v1470_v16  ;;  %v1472_v17 = vsub.f32 %v3731_v26, %v4141_v43 }
 0x2b7   : > { %v1223_v35 = vpop.f32.mrb[89].mxu1  ;;  %2851 = vpow2.f32 %v1616_v0  ;;  %v1620_v50 = vmul.f32 1.442695, %v1462_v51  ;;  %v1473_v5 = vsub.f32 %v3734_v28, %v4141_v43  ;;  %v1622_v62 = vmul.f32 1.442695, %v1463_v21  ;;  %v4197_v1 = vpop.xlane.xlu0 %1307 }
 0x2b8   : > { %v1225_v40 = vpop.f32.mrb[90].mxu1  ;;  %1412 = vmax.xlane.f32.xlu1 %v1411_v59  ;;  %2853 = vpow2.f32 %v1618_v30  ;;  %v4195_v16 = vadd.f32 %v1217_v23, %v3590_v37  ;;  %5219 = vst [vmem:[#allocation138_spill] sm:$0xff] %v4197_v1  ;;  %v1849_v26 = vadd.f32 %v2838_v48, %v2836_v52  ;;  %v1414_v0 = vmax.f32 %v4178_v15, %v4181_v32  ;;  %v4205_v59 = vpop.xlane.xlu1 %1310 }
 0x2b9   : > { %1847 = vadd.xlane.f32.xlu0 %v1846_v63  ;;  %v1227_v3 = vpop.f32.mrb[91].mxu1  ;;  %v2840_v33 = vpop.eup %2839  ;;  %2855 = vpow2.f32 %v1636_v34  ;;  %v1638_v51 = vmul.f32 1.442695, %v1471_v9  ;;  %v1474_v30 = vsub.f32 %v3742_v57, %v4151_v25  ;;  %v1640_v21 = vmul.f32 1.442695, %v1472_v17  ;;  %5220 = vst [vmem:[#allocation139_spill] sm:$0xff] %v4205_v59 }
 0x2ba   : > { %v2842_v63 = vpop.eup %2841  ;;  %2857 = vpow2.f32 %v1620_v50  ;;  %v1642_v52 = vmul.f32 1.442695, %v1473_v5  ;;  %v1476_v48 = vsub.f32 %v3763_v12, %v4197_v1  ;;  %v4212_v57 = vadd.f32 %v1221_v54, %v3588_v36 }
 0x2bb   : > { %v4207_v23 = vpop.eup %2843  ;;  %2859 = vpow2.f32 %v1622_v62  ;;  %v4215_v17 = vadd.f32 %v1223_v35, %v3590_v37  ;;  %v1644_v5 = vmul.f32 1.442695, %v1474_v30  ;;  %v1477_v62 = vsub.f32 %v3766_v14, %v4197_v1  ;;  %v4223_v25 = vpop.xlane.xlu0 %1313 }
 0x2bc   : > { %1850 = vadd.xlane.f32.xlu1 %v1849_v26  ;;  %v2846_v34 = vpop.eup %2845  ;;  %5221 = vst [vmem:[#allocation140_spill] sm:$0xff] %v4212_v57  ;;  %v1417_v26 = vmax.f32 %v4192_v2, %v4195_v16  ;;  %2861 = vpow2.f32 %v1638_v51  ;;  %v1646_v28 = vmul.f32 1.442695, %v1475_v29  ;;  %v1478_v54 = vsub.f32 %v3774_v19, %v4205_v59  ;;  %5223 = vst [vmem:[#allocation142_spill] sm:$0xff] %v4223_v25  ;;  %v4235_v29 = vpop.xlane.xlu1 %1316 }
 0x2bd   : > { %1415 = vmax.xlane.f32.xlu0 %v1414_v0  ;;  %5222 = vst [vmem:[#allocation141_spill] sm:$0xff] %v4215_v17  ;;  %v1852_v0 = vadd.f32 %v2842_v63, %v2840_v33  ;;  %v2848_v8 = vpop.eup %2847  ;;  %2863 = vpow2.f32 %v1640_v21  ;;  %v1648_v33 = vmul.f32 1.442695, %v1476_v48  ;;  %v1479_v63 = vsub.f32 %v3777_v24, %v4205_v59  ;;  %5225 = vst [vmem:[#allocation144_spill] sm:$0xff] %v4235_v29  ;;  %v5226_v48 = vld [vmem:[#allocation53_spill] sm:$0xff] }
 0x2be   : > { %v1231_v9 = vpop.f32.mrb[92].mxu1  ;;  %v4225_v43 = vpop.eup %2849  ;;  %2865 = vpow2.f32 %v1642_v52  ;;  %v4230_v30 = vadd.f32 %v1225_v40, %v3588_v36  ;;  %v4233_v21 = vadd.f32 %v1227_v3, %v3590_v37  ;;  %v1855_v19 = vadd.f32 %v2848_v8, %v2846_v34  ;;  %v5227_v40 = vld [vmem:[#allocation54_spill] sm:$0xff]  ;;  %v5228_v34 = vld [vmem:[#allocation55_spill] sm:$0xff] }
 0x2bf   : > { %v1233_v50 = vpop.f32.mrb[93].mxu1  ;;  %2867 = vpow2.f32 %v1644_v5  ;;  %v1650_v52 = vmul.f32 1.442695, %v1477_v62  ;;  %v1480_v14 = vsub.f32 %v5226_v48, %v4223_v25  ;;  %v1652_v24 = vmul.f32 1.442695, %v1478_v54 }
 0x2c0   : > { %v1235_v12 = vpop.f32.mrb[94].mxu1  ;;  %1418 = vmax.xlane.f32.xlu1 %v1417_v26  ;;  %5224 = vst [vmem:[#allocation143_spill] sm:$0xff] %v4230_v30  ;;  %v1420_v26 = vmax.f32 %v4212_v57, %v4215_v17  ;;  %2869 = vpow2.f32 %v1646_v28  ;;  %v1481_v59 = vsub.f32 %v5227_v40, %v4223_v25  ;;  %v1654_v8 = vmul.f32 1.442695, %v1479_v63  ;;  %v5231_v63 = vld [vmem:[#allocation56_spill] sm:$0xff] }
 0x2c1   : > { %1853 = vadd.xlane.f32.xlu0 %v1852_v0  ;;  %v1237_v35 = vpop.f32.mrb[95].mxu1  ;;  %v2852_v51 = vpop.eup %2851  ;;  %2871 = vpow2.f32 %v1648_v33  ;;  %v1482_v1 = vsub.f32 %v5228_v34, %v4235_v29  ;;  %v4250_v62 = vadd.f32 %v1231_v9, %v3588_v36  ;;  %v4253_v28 = vadd.f32 %v1233_v50, %v3590_v37  ;;  %v5233_v9 = vld [vmem:[#allocation57_spill] sm:$0xff] }
 0x2c2   : > { %v2854_v0 = vpop.eup %2853  ;;  %v4247_v44 = vpop.xlane.xlu0 %1319  ;;  %2873 = vpow2.f32 %v1650_v52  ;;  %v1656_v33 = vmul.f32 1.442695, %v1480_v14  ;;  %v1483_v40 = vsub.f32 %v5231_v63, %v4235_v29  ;;  %v1658_v48 = vmul.f32 1.442695, %v1481_v59  ;;  %v5235_v14 = vld [vmem:[#allocation58_spill] sm:$0xff]  ;;  %v5238_v59 = vld [vmem:[#allocation59_spill] sm:$0xff] }
 0x2c3   : > { %v4243_v3 = vpop.eup %2855  ;;  %5229 = vst [vmem:[#allocation145_spill] sm:$0xff] %v4247_v44  ;;  %5230 = vst [vmem:[#allocation146_spill] sm:$0xff] %v4253_v28  ;;  %v1858_v54 = vadd.f32 %v2854_v0, %v2852_v51  ;;  %v4259_v34 = vpop.xlane.xlu1 %1322  ;;  %2875 = vpow2.f32 %v1652_v24  ;;  %v1484_v25 = vsub.f32 %v5233_v9, %v4247_v44  ;;  %v1660_v10 = vmul.f32 1.442695, %v1482_v1 }
 0x2c4   : > { %1856 = vadd.xlane.f32.xlu1 %v1855_v19  ;;  %v2858_v5 = vpop.eup %2857  ;;  %v1423_v19 = vmax.f32 %v4230_v30, %v4233_v21  ;;  %5232 = vst [vmem:[#allocation147_spill] sm:$0xff] %v4259_v34  ;;  %2877 = vpow2.f32 %v1654_v8  ;;  %v4264_v51 = vadd.f32 %v1235_v12, %v3588_v36  ;;  %v1485_v0 = vsub.f32 %v5235_v14, %v4247_v44  ;;  %v5239_v12 = vld [vmem:[#allocation60_spill] sm:$0xff] }
 0x2c5   : > { %1421 = vmax.xlane.f32.xlu0 %v1420_v26  ;;  %v2860_v26 = vpop.eup %2859  ;;  %v4271_v24 = vadd.f32 %v1237_v35, %v3590_v37  ;;  %v1486_v9 = vsub.f32 %v5238_v59, %v4259_v34  ;;  %v1426_v8 = vmax.f32 %v4250_v62, %v4253_v28  ;;  %2879 = vpow2.f32 %v1656_v33  ;;  %v5241_v37 = vld [vmem:[#allocation61_spill] sm:$0xff] }
 0x2c6   : > { %v2862_v50 = vpop.eup %2861  ;;  %5234 = vst [vmem:[#allocation148_spill] sm:$0xff] %v4264_v51  ;;  %v1662_v36 = vmul.f32 1.442695, %v1483_v40  ;;  %2881 = vpow2.f32 %v1658_v48  ;;  %v1664_v44 = vmul.f32 1.442695, %v1484_v25  ;;  %v1870_v25 = vadd.f32 %v4225_v43, %v4207_v23  ;;  %v5246_v43 = vld [vmem:[#allocation66_spill] sm:$0xff] }
 0x2c7   : > { %v2864_v63 = vpop.eup %2863  ;;  %5237 = vst [vmem:[#allocation150_spill] sm:$0xff] %v4271_v24  ;;  %2883 = vpow2.f32 %v1660_v10  ;;  %v1668_v40 = vmul.f32 1.442695, %v1486_v9  ;;  %v1429_v48 = vmax.f32 %v4264_v51, %v4271_v24  ;;  %v5244_v10 = vld [vmem:[#allocation64_spill] sm:$0xff] }
 0x2c8   : > { %1424 = vmax.xlane.f32.xlu1 %v1423_v19  ;;  %v1861_v19 = vadd.f32 %v2860_v26, %v2858_v5  ;;  %v2866_v1 = vpop.eup %2865  ;;  %v1666_v5 = vmul.f32 1.442695, %v1485_v0  ;;  %v5242_v26 = vld [vmem:[#allocation62_spill] sm:$0xff]  ;;  %2885 = vpow2.f32 %v1662_v36 }
 0x2c9   : > { %1859 = vadd.xlane.f32.xlu0 %v1858_v54  ;;  %v4268_v52 = vpop.xlane.xlu0 %1325  ;;  %v1487_v54 = vsub.f32 %v5239_v12, %v4259_v34  ;;  %v2868_v59 = vpop.eup %2867  ;;  %2887 = vpow2.f32 %v1664_v44  ;;  %v1873_v44 = vadd.f32 %v2862_v50, %v4243_v3 }
 0x2ca   : > { %5236 = vst [vmem:[#allocation149_spill] sm:$0xff] %v4268_v52  ;;  %v1488_v35 = vsub.f32 %v5241_v37, %v4268_v52  ;;  %v1489_v29 = vsub.f32 %v5242_v26, %v4268_v52  ;;  %v2870_v33 = vpop.eup %2869  ;;  %2889 = vpow2.f32 %v1666_v5  ;;  %v5245_v52 = vld [vmem:[#allocation65_spill] sm:$0xff]  ;;  %v5247_v5 = vld [vmem:[#allocation67_spill] sm:$0xff] }
 0x2cb   : > { %v4279_v14 = vpop.xlane.xlu1 %1328  ;;  %v2872_v37 = vpop.eup %2871  ;;  %2891 = vpow2.f32 %v1668_v40 }
 0x2cc   : > { %5240 = vst [vmem:[#allocation151_spill] sm:$0xff] %v4279_v14  ;;  %1862 = vadd.xlane.f32.xlu1 %v1861_v19  ;;  %v1490_v12 = vsub.f32 %v5243_v45, %v4279_v14  ;;  %v1670_v19 = vmul.f32 1.442695, %v1487_v54  ;;  %v1491_v0 = vsub.f32 %v5244_v10, %v4279_v14  ;;  %v2874_v26 = vpop.eup %2873  ;;  %v1674_v45 = vmul.f32 1.442695, %v1489_v29 }
 0x2cd   : > { %1427 = vmax.xlane.f32.xlu0 %v1426_v8  ;;  %v1672_v8 = vmul.f32 1.442695, %v1488_v35  ;;  %v2876_v36 = vpop.eup %2875  ;;  %v1876_v35 = vadd.f32 %v2866_v1, %v2864_v63  ;;  %v1879_v63 = vadd.f32 %v2870_v33, %v2868_v59  ;;  %v1882_v50 = vadd.f32 %v2874_v26, %v2872_v37 }
 0x2ce   : > { %v1676_v54 = vmul.f32 1.442695, %v1490_v12  ;;  %2893 = vpow2.f32 %v1670_v19 }
 0x2cf   : > { %2895 = vpow2.f32 %v1672_v8  ;;  %v5249_v8 = vld [vmem:[#allocation69_spill] sm:$0xff] }
 0x2d0   : > { %1430 = vmax.xlane.f32.xlu1 %v1429_v48  ;;  %v2878_v48 = vpop.eup %2877  ;;  %2897 = vpow2.f32 %v1674_v45  ;;  %v5250_v45 = vld [vmem:[#allocation70_spill] sm:$0xff] }
 0x2d1   : > { %1871 = vadd.xlane.f32.xlu0 %v1870_v25  ;;  %v4293_v9 = vpop.xlane.xlu0 %1331  ;;  %v1678_v25 = vmul.f32 1.442695, %v1491_v0  ;;  %v2880_v40 = vpop.eup %2879  ;;  %2899 = vpow2.f32 %v1676_v54  ;;  %v1885_v37 = vadd.f32 %v2878_v48, %v2876_v36 }
 0x2d2   : > { %v1492_v34 = vsub.f32 %v5245_v52, %v4293_v9  ;;  %v1493_v23 = vsub.f32 %v5246_v43, %v4293_v9  ;;  %v5248_v52 = vld [vmem:[#allocation68_spill] sm:$0xff]  ;;  %v2882_v43 = vpop.eup %2881 }
 0x2d3   : > { %v4299_v38 = vpop.xlane.xlu1 %1334  ;;  %v2884_v1 = vpop.eup %2883  ;;  %2901 = vpow2.f32 %v1678_v25  ;;  %v1888_v26 = vadd.f32 %v2882_v43, %v2880_v40 }
 0x2d4   : > { %v1494_v29 = vsub.f32 %v5247_v5, %v4299_v38  ;;  %v1680_v10 = vmul.f32 1.442695, %v1492_v34  ;;  %v1495_v14 = vsub.f32 %v5248_v52, %v4299_v38  ;;  %1874 = vadd.xlane.f32.xlu1 %v1873_v44  ;;  %v1682_v12 = vmul.f32 1.442695, %v1493_v23  ;;  %v2886_v0 = vpop.eup %2885 }
 0x2d5   : > { %1877 = vadd.xlane.f32.xlu0 %v1876_v35  ;;  %v2888_v54 = vpop.eup %2887  ;;  %v5251_v35 = vld [vmem:[#allocation71_spill] sm:$0xff]  ;;  %v1891_v43 = vadd.f32 %v2886_v0, %v2884_v1 }
 0x2d6   : > { %v1684_v3 = vmul.f32 1.442695, %v1494_v29  ;;  %2903 = vpow2.f32 %v1680_v10  ;;  %v1686_v19 = vmul.f32 1.442695, %v1495_v14  ;;  %v2890_v33 = vpop.eup %2889  ;;  %v5252_v29 = vld [vmem:[#allocation72_spill] sm:$0xff] }
 0x2d7   : > { %2905 = vpow2.f32 %v1682_v12  ;;  %v1894_v36 = vadd.f32 %v2890_v33, %v2888_v54 }
 0x2d8   : > { %1880 = vadd.xlane.f32.xlu1 %v1879_v63  ;;  %2907 = vpow2.f32 %v1684_v3  ;;  %v2892_v63 = vpop.eup %2891 }
 0x2d9   : > { %1883 = vadd.xlane.f32.xlu0 %v1882_v50  ;;  %v4306_v34 = vpop.xlane.xlu0 %1337  ;;  %2909 = vpow2.f32 %v1686_v19  ;;  %v2894_v50 = vpop.eup %2893  ;;  %v5254_v19 = vld [vmem:[#allocation73_spill] sm:$0xff] }
 0x2da   : > { %v1496_v44 = vsub.f32 %v5249_v8, %v4306_v34  ;;  %v1497_v23 = vsub.f32 %v5250_v45, %v4306_v34  ;;  %v2896_v8 = vpop.eup %2895  ;;  %v1897_v1 = vadd.f32 %v2894_v50, %v2892_v63 }
 0x2db   : > { %v4312_v59 = vpop.xlane.xlu1 %1340  ;;  %v2898_v48 = vpop.eup %2897 }
 0x2dc   : > { %v1688_v14 = vmul.f32 1.442695, %v1496_v44  ;;  %v1690_v10 = vmul.f32 1.442695, %v1497_v23  ;;  %v1498_v25 = vsub.f32 %v5251_v35, %v4312_v59  ;;  %v1499_v12 = vsub.f32 %v5252_v29, %v4312_v59  ;;  %1886 = vadd.xlane.f32.xlu1 %v1885_v37  ;;  %v2900_v40 = vpop.eup %2899 }
 0x2dd   : > { %1889 = vadd.xlane.f32.xlu0 %v1888_v26  ;;  %v2902_v23 = vpop.eup %2901  ;;  %v5255_v26 = vld [vmem:[#allocation74_spill] sm:$0xff]  ;;  %v1900_v0 = vadd.f32 %v2898_v48, %v2896_v8 }
 0x2de   : > { %2911 = vpow2.f32 %v1688_v14  ;;  %v1692_v3 = vmul.f32 1.442695, %v1498_v25  ;;  %v1694_v45 = vmul.f32 1.442695, %v1499_v12  ;;  %v1903_v35 = vadd.f32 %v2902_v23, %v2900_v40 }
 0x2df   : > { %2913 = vpow2.f32 %v1690_v10 }
 0x2e0   : > { %2915 = vpow2.f32 %v1692_v3  ;;  %1892 = vadd.xlane.f32.xlu1 %v1891_v43  ;;  %v2904_v25 = vpop.eup %2903  ;;  %v5256_v3 = vld [vmem:[#allocation75_spill] sm:$0xff] }
 0x2e1   : > { %1895 = vadd.xlane.f32.xlu0 %v1894_v36  ;;  %v4318_v44 = vpop.xlane.xlu0 %1343  ;;  %2917 = vpow2.f32 %v1694_v45  ;;  %v2906_v54 = vpop.eup %2905  ;;  %v5257_v36 = vld [vmem:[#allocation76_spill] sm:$0xff] }
 0x2e2   : > { %5253 = vst [vmem:[#allocation67_spill] sm:$0xff] %v4318_v44  ;;  %v1500_v37 = vsub.f32 %v5254_v19, %v4318_v44  ;;  %v1501_v14 = vsub.f32 %v5255_v26, %v4318_v44  ;;  %v2908_v29 = vpop.eup %2907  ;;  %v1906_v63 = vadd.f32 %v2906_v54, %v2904_v25  ;;  %v5261_v54 = vld [vmem:[#allocation80_spill] sm:$0xff] }
 0x2e3   : > { %v4324_v12 = vpop.xlane.xlu1 %1346  ;;  %v2910_v44 = vpop.eup %2909 }
 0x2e4   : > { %v1696_v33 = vmul.f32 1.442695, %v1500_v37  ;;  %v1698_v10 = vmul.f32 1.442695, %v1501_v14  ;;  %v1502_v43 = vsub.f32 %v5256_v3, %v4324_v12  ;;  %v1503_v45 = vsub.f32 %v5257_v36, %v4324_v12  ;;  %1898 = vadd.xlane.f32.xlu1 %v1897_v1  ;;  %v5258_v37 = vld [vmem:[#allocation77_spill] sm:$0xff]  ;;  %v5259_v1 = vld [vmem:[#allocation78_spill] sm:$0xff] }
 0x2e5   : > { %1901 = vadd.xlane.f32.xlu0 %v1900_v0  ;;  %v1909_v40 = vadd.f32 %v2910_v44, %v2908_v29 }
 0x2e6   : > { %2919 = vpow2.f32 %v1696_v33  ;;  %v1700_v19 = vmul.f32 1.442695, %v1502_v43  ;;  %v1702_v26 = vmul.f32 1.442695, %v1503_v45 }
 0x2e7   : > { %2921 = vpow2.f32 %v1698_v10 }
 0x2e8   : > { %v2912_v8 = vpop.eup %2911  ;;  %2923 = vpow2.f32 %v1700_v19  ;;  %1904 = vadd.xlane.f32.xlu1 %v1903_v35 }
 0x2e9   : > { %v2914_v50 = vpop.eup %2913  ;;  %2925 = vpow2.f32 %v1702_v26  ;;  %1907 = vadd.xlane.f32.xlu0 %v1906_v63  ;;  %v4330_v48 = vpop.xlane.xlu0 %1349  ;;  %v5260_v26 = vld [vmem:[#allocation79_spill] sm:$0xff] }
 0x2ea   : > { %v1504_v14 = vsub.f32 %v5258_v37, %v4330_v48  ;;  %v1505_v0 = vsub.f32 %v5259_v1, %v4330_v48  ;;  %v1912_v33 = vadd.f32 %v2914_v50, %v2912_v8  ;;  %v2916_v43 = vpop.eup %2915 }
 0x2eb   : > { %v4336_v45 = vpop.xlane.xlu1 %1352  ;;  %v2918_v23 = vpop.eup %2917 }
 0x2ec   : > { %v1704_v25 = vmul.f32 1.442695, %v1504_v14  ;;  %v1706_v19 = vmul.f32 1.442695, %v1505_v0  ;;  %v1506_v35 = vsub.f32 %v5260_v26, %v4336_v45  ;;  %v1507_v10 = vsub.f32 %v5261_v54, %v4336_v45  ;;  %1910 = vadd.xlane.f32.xlu1 %v1909_v40  ;;  %v5263_v14 = vld [vmem:[#allocation81_spill] sm:$0xff]  ;;  %v5264_v54 = vld [vmem:[#allocation82_spill] sm:$0xff] }
 0x2ed   : > { %1913 = vadd.xlane.f32.xlu0 %v1912_v33  ;;  %v1915_v8 = vadd.f32 %v2918_v23, %v2916_v43  ;;  %v5266_v23 = vld [vmem:[#allocation83_spill] sm:$0xff] }
 0x2ee   : > { %2927 = vpow2.f32 %v1704_v25  ;;  %v1708_v63 = vmul.f32 1.442695, %v1506_v35  ;;  %v1710_v37 = vmul.f32 1.442695, %v1507_v10 }
 0x2ef   : > { %2929 = vpow2.f32 %v1706_v19 }
 0x2f0   : > { %v2920_v50 = vpop.eup %2919  ;;  %2931 = vpow2.f32 %v1708_v63  ;;  %1916 = vadd.xlane.f32.xlu1 %v1915_v8 }
 0x2f1   : > { %v2922_v1 = vpop.eup %2921  ;;  %2933 = vpow2.f32 %v1710_v37  ;;  %v4342_v29 = vpop.xlane.xlu0 %1355  ;;  %v5267_v37 = vld [vmem:[#allocation84_spill] sm:$0xff] }
 0x2f2   : > { %5262 = vst [vmem:[#allocation68_spill] sm:$0xff] %v4342_v29  ;;  %v2924_v44 = vpop.eup %2923  ;;  %v1508_v0 = vsub.f32 %v5263_v14, %v4342_v29  ;;  %v1509_v40 = vsub.f32 %v5264_v54, %v4342_v29  ;;  %v1918_v33 = vadd.f32 %v2922_v1, %v2920_v50  ;;  %v5270_v29 = vld [vmem:[#allocation86_spill] sm:$0xff] }
 0x2f3   : > { %v2926_v25 = vpop.eup %2925  ;;  %v4348_v35 = vpop.xlane.xlu1 %1358 }
 0x2f4   : > { %5265 = vst [vmem:[#allocation75_spill] sm:$0xff] %v4348_v35  ;;  %v1712_v19 = vmul.f32 1.442695, %v1508_v0  ;;  %v1714_v43 = vmul.f32 1.442695, %v1509_v40  ;;  %v1510_v10 = vsub.f32 %v5266_v23, %v4348_v35  ;;  %v1511_v63 = vsub.f32 %v5267_v37, %v4348_v35  ;;  %1919 = vadd.xlane.f32.xlu0 %v1918_v33  ;;  %v5269_v40 = vld [vmem:[#allocation85_spill] sm:$0xff] }
 0x2f5   : > { %v1921_v8 = vadd.f32 %v2926_v25, %v2924_v44 }
 0x2f6   : > { %2935 = vpow2.f32 %v1712_v19  ;;  %v1716_v26 = vmul.f32 1.442695, %v1510_v10  ;;  %v1718_v14 = vmul.f32 1.442695, %v1511_v63  ;;  %v5272_v10 = vld [vmem:[#allocation87_spill] sm:$0xff] }
 0x2f7   : > { %2937 = vpow2.f32 %v1714_v43  ;;  %1922 = vadd.xlane.f32.xlu1 %v1921_v8 }
 0x2f8   : > { %v2928_v54 = vpop.eup %2927  ;;  %2939 = vpow2.f32 %v1716_v26 }
 0x2f9   : > { %v2930_v1 = vpop.eup %2929  ;;  %2941 = vpow2.f32 %v1718_v14  ;;  %v4354_v50 = vpop.xlane.xlu0 %1361  ;;  %v5273_v14 = vld [vmem:[#allocation88_spill] sm:$0xff] }
 0x2fa   : > { %5268 = vst [vmem:[#allocation76_spill] sm:$0xff] %v4354_v50  ;;  %v2932_v0 = vpop.eup %2931  ;;  %v1512_v23 = vsub.f32 %v5269_v40, %v4354_v50  ;;  %v1513_v37 = vsub.f32 %v5270_v29, %v4354_v50  ;;  %v1924_v33 = vadd.f32 %v2930_v1, %v2928_v54  ;;  %v5275_v50 = vld [vmem:[#allocation90_spill] sm:$0xff] }
 0x2fb   : > { %v2934_v44 = vpop.eup %2933  ;;  %v4360_v25 = vpop.xlane.xlu1 %1364 }
 0x2fc   : > { %5271 = vst [vmem:[#allocation152_spill] sm:$0xff] %v4360_v25  ;;  %v1720_v19 = vmul.f32 1.442695, %v1512_v23  ;;  %v1722_v43 = vmul.f32 1.442695, %v1513_v37  ;;  %v1514_v26 = vsub.f32 %v5272_v10, %v4360_v25  ;;  %v1515_v63 = vsub.f32 %v5273_v14, %v4360_v25  ;;  %1925 = vadd.xlane.f32.xlu0 %v1924_v33  ;;  %v5274_v37 = vld [vmem:[#allocation89_spill] sm:$0xff] }
 0x2fd   : > { %v1927_v8 = vadd.f32 %v2934_v44, %v2932_v0 }
 0x2fe   : > { %2943 = vpow2.f32 %v1720_v19  ;;  %v1724_v35 = vmul.f32 1.442695, %v1514_v26  ;;  %v1726_v40 = vmul.f32 1.442695, %v1515_v63  ;;  %v5276_v26 = vld [vmem:[#allocation91_spill] sm:$0xff] }
 0x2ff   : > { %2945 = vpow2.f32 %v1722_v43  ;;  %1928 = vadd.xlane.f32.xlu1 %v1927_v8 }
 0x300   : > { %v2936_v29 = vpop.eup %2935  ;;  %2947 = vpow2.f32 %v1724_v35 }
 0x301   : > { %v2938_v54 = vpop.eup %2937  ;;  %2949 = vpow2.f32 %v1726_v40  ;;  %v4366_v1 = vpop.xlane.xlu0 %1367  ;;  %v5277_v40 = vld [vmem:[#allocation92_spill] sm:$0xff] }
 0x302   : > { %v2940_v23 = vpop.eup %2939  ;;  %v1516_v10 = vsub.f32 %v5274_v37, %v4366_v1  ;;  %v1517_v14 = vsub.f32 %v5275_v50, %v4366_v1  ;;  %v1930_v33 = vadd.f32 %v2938_v54, %v2936_v29 }
 0x303   : > { %v2942_v0 = vpop.eup %2941  ;;  %v4372_v44 = vpop.xlane.xlu1 %1370 }
 0x304   : > { %v1728_v19 = vmul.f32 1.442695, %v1516_v10  ;;  %v1730_v43 = vmul.f32 1.442695, %v1517_v14  ;;  %v1518_v35 = vsub.f32 %v5276_v26, %v4372_v44  ;;  %v1519_v63 = vsub.f32 %v5277_v40, %v4372_v44  ;;  %1931 = vadd.xlane.f32.xlu0 %v1930_v33 }
 0x305   : > { %v1933_v8 = vadd.f32 %v2942_v0, %v2940_v23 }
 0x306   : > { %2951 = vpow2.f32 %v1728_v19  ;;  %v1732_v25 = vmul.f32 1.442695, %v1518_v35  ;;  %v1734_v37 = vmul.f32 1.442695, %v1519_v63  ;;  %v5279_v35 = vld [vmem:[#allocation95_spill] sm:$0xff] }
 0x307   : > { %2953 = vpow2.f32 %v1730_v43  ;;  %1934 = vadd.xlane.f32.xlu1 %v1933_v8 }
 0x308   : > { %v2944_v50 = vpop.eup %2943  ;;  %2955 = vpow2.f32 %v1732_v25 }
 0x309   : > { %v2946_v29 = vpop.eup %2945  ;;  %2957 = vpow2.f32 %v1734_v37  ;;  %v5280_v37 = vld [vmem:[#allocation97_spill] sm:$0xff] }
 0x30a   : > { %v4378_v54 = vpop.xlane.xlu0 %1373  ;;  %v2948_v10 = vpop.eup %2947  ;;  %v1936_v33 = vadd.f32 %v2946_v29, %v2944_v50 }
 0x30b   : > { %5278 = vst [vmem:[#allocation153_spill] sm:$0xff] %v4378_v54  ;;  %v1520_v14 = vsub.f32 %v3946_v41, %v4378_v54  ;;  %v1521_v40 = vsub.f32 %v3949_v61, %v4378_v54  ;;  %v2950_v23 = vpop.eup %2949  ;;  %v4384_v0 = vpop.xlane.xlu1 %1376 }
 0x30c   : > { %v1522_v25 = vsub.f32 %v5279_v35, %v4384_v0  ;;  %v1523_v63 = vsub.f32 %v5280_v37, %v4384_v0  ;;  %1937 = vadd.xlane.f32.xlu0 %v1936_v33  ;;  %v1939_v8 = vadd.f32 %v2950_v23, %v2948_v10  ;;  %v5282_v23 = vld [vmem:[#allocation101_spill] sm:$0xff] }
 0x30d   : > { %v1736_v19 = vmul.f32 1.442695, %v1520_v14  ;;  %v1738_v43 = vmul.f32 1.442695, %v1521_v40 }
 0x30e   : > { %v1740_v26 = vmul.f32 1.442695, %v1522_v25  ;;  %v1742_v41 = vmul.f32 1.442695, %v1523_v63  ;;  %1940 = vadd.xlane.f32.xlu1 %v1939_v8 }
 0x30f   : > { %2959 = vpow2.f32 %v1736_v19 }
 0x310   : > { %2961 = vpow2.f32 %v1738_v43  ;;  %v2952_v61 = vpop.eup %2951 }
 0x311   : > { %2963 = vpow2.f32 %v1740_v26  ;;  %v2954_v50 = vpop.eup %2953  ;;  %v5283_v26 = vld [vmem:[#allocation103_spill] sm:$0xff] }
 0x312   : > { %2965 = vpow2.f32 %v1742_v41  ;;  %v2956_v29 = vpop.eup %2955  ;;  %v4390_v14 = vpop.xlane.xlu0 %1379  ;;  %v1942_v40 = vadd.f32 %v2954_v50, %v2952_v61 }
 0x313   : > { %5281 = vst [vmem:[#allocation154_spill] sm:$0xff] %v4390_v14  ;;  %v2958_v54 = vpop.eup %2957  ;;  %v1524_v35 = vsub.f32 %v3974_v42, %v4390_v14  ;;  %v1525_v10 = vsub.f32 %v3977_v22, %v4390_v14  ;;  %v4396_v33 = vpop.xlane.xlu1 %1382 }
 0x314   : > { %v1526_v19 = vsub.f32 %v5282_v23, %v4396_v33  ;;  %v1527_v43 = vsub.f32 %v5283_v26, %v4396_v33  ;;  %1943 = vadd.xlane.f32.xlu0 %v1942_v40  ;;  %v1945_v41 = vadd.f32 %v2958_v54, %v2956_v29 }
 0x315   : > { %v1744_v25 = vmul.f32 1.442695, %v1524_v35  ;;  %v1746_v63 = vmul.f32 1.442695, %v1525_v10 }
 0x316   : > { %v1748_v61 = vmul.f32 1.442695, %v1526_v19  ;;  %v1750_v8 = vmul.f32 1.442695, %v1527_v43  ;;  %1946 = vadd.xlane.f32.xlu1 %v1945_v41 }
 0x317   : > { %2967 = vpow2.f32 %v1744_v25 }
 0x318   : > { %2969 = vpow2.f32 %v1746_v63 }
 0x319   : > { %v2960_v50 = vpop.eup %2959  ;;  %2971 = vpow2.f32 %v1748_v61  ;;  %v1818_v14 = vpop.xlane.xlu0 %1817 }
 0x31a   : > { %v2962_v42 = vpop.eup %2961  ;;  %2973 = vpow2.f32 %v1750_v8 }
 0x31b   : > { %v2964_v22 = vpop.eup %2963  ;;  %v1948_v37 = vadd.f32 %v2962_v42, %v2960_v50  ;;  %2975 = vlog2.f32 %v1818_v14 }
 0x31c   : > { %v2966_v23 = vpop.eup %2965 }
 0x31d   : > { %1949 = vadd.xlane.f32.xlu0 %v1948_v37  ;;  %v1951_v40 = vadd.f32 %v2966_v23, %v2964_v22  ;;  %v1821_v54 = vpop.xlane.xlu1 %1820  ;;  %v4402_v35 = vpop.xlane.xlu0 %1385 }
 0x31e   : > { %2977 = vlog2.f32 %v1821_v54  ;;  %v1528_v29 = vsub.f32 %v4008_v7, %v4402_v35  ;;  %v1529_v10 = vsub.f32 %v4011_v6, %v4402_v35 }
 0x31f   : > { %1952 = vadd.xlane.f32.xlu1 %v1951_v40 }
 0x320   : > { %v1752_v43 = vmul.f32 1.442695, %v1528_v29  ;;  %v1754_v42 = vmul.f32 1.442695, %v1529_v10 }
 0x321   : > { %v2968_v19 = vpop.eup %2967  ;;  %v4408_v41 = vpop.xlane.xlu1 %1388 }
 0x322   : > { %5284 = vst [vmem:[#allocation103_spill] sm:$0xff] %v4408_v41  ;;  %v2970_v14 = vpop.eup %2969  ;;  %v1530_v22 = vsub.f32 %v4020_v39, %v4408_v41  ;;  %v1531_v37 = vsub.f32 %v4023_v53, %v4408_v41  ;;  %v1824_v23 = vpop.xlane.xlu0 %1823  ;;  %2979 = vpow2.f32 %v1752_v43  ;;  %v5289_v53 = vld [vmem:[#allocation113_spill] sm:$0xff] }
 0x323   : > { %v2972_v25 = vpop.eup %2971  ;;  %v1954_v63 = vadd.f32 %v2970_v14, %v2968_v19  ;;  %2981 = vpow2.f32 %v1754_v42  ;;  %v5286_v14 = vld [vmem:[#allocation96_spill] sm:$0xff] }
 0x324   : > { %v2974_v61 = vpop.eup %2973  ;;  %v1756_v8 = vmul.f32 1.442695, %v1530_v22  ;;  %v1758_v50 = vmul.f32 1.442695, %v1531_v37  ;;  %2983 = vlog2.f32 %v1824_v23 }
 0x325   : > { %v2976_v40 = vpop.eup %2975  ;;  %1955 = vadd.xlane.f32.xlu0 %v1954_v63  ;;  %v1827_v54 = vpop.xlane.xlu1 %1826  ;;  %v1957_v29 = vadd.f32 %v2974_v61, %v2972_v25  ;;  %v5287_v61 = vld [vmem:[#allocation5_spill] sm:$0xff] }
 0x326   : > { %v2009_v10 = vmul.f32 0.6931472, %v2976_v40  ;;  %2985 = vpow2.f32 %v1756_v8  ;;  %v4417_v39 = vpop.xlane.xlu0 %1391  ;;  %v5288_v40 = vld [vmem:[#allocation6_spill] sm:$0xff] }
 0x327   : > { %5285 = vst [vmem:[#allocation155_spill] sm:$0xff] %v4417_v39  ;;  %2987 = vpow2.f32 %v1758_v50  ;;  %v1532_v43 = vsub.f32 %v4036_v18, %v4417_v39  ;;  %v1533_v19 = vsub.f32 %v4039_v46, %v4417_v39  ;;  %1958 = vadd.xlane.f32.xlu1 %v1957_v29  ;;  %v5290_v39 = vld [vmem:[#allocation98_spill] sm:$0xff] }
 0x328   : > { %v2978_v42 = vpop.eup %2977  ;;  %v2136_v22 = vadd.f32 %v2009_v10, %v5286_v14  ;;  %2989 = vlog2.f32 %v1827_v54  ;;  %v5292_v14 = vld [vmem:[#allocation8_spill] sm:$0xff] }
 0x329   : > { %v2011_v37 = vmul.f32 0.6931472, %v2978_v42  ;;  %v1760_v23 = vmul.f32 1.442695, %v1532_v43  ;;  %v1762_v63 = vmul.f32 1.442695, %v1533_v19  ;;  %v4424_v25 = vpop.xlane.xlu1 %1394 }
 0x32a   : > { %v2200_v8 = vsub.f32 %v5287_v61, %v2136_v22  ;;  %v2201_v50 = vsub.f32 %v5288_v40, %v2136_v22  ;;  %v1534_v18 = vsub.f32 %v4048_v11, %v4424_v25  ;;  %v1535_v46 = vsub.f32 %v5289_v53, %v4424_v25  ;;  %v1830_v29 = vpop.xlane.xlu0 %1829  ;;  %v5291_v19 = vld [vmem:[#allocation7_spill] sm:$0xff] }
 0x32b   : > { %v2137_v41 = vadd.f32 %v2011_v37, %v5290_v39  ;;  %2991 = vpow2.f32 %v1760_v23 }
 0x32c   : > { %2328 = vst [vmem:[%s4433_s23] sm:$0xff] %v2200_v8  ;;  %2329 = vst [vmem:[%s4433_s23 + $0x8] sm:$0xff] %v2201_v50  ;;  %2993 = vpow2.f32 %v1762_v63  ;;  %v1764_v54 = vmul.f32 1.442695, %v1534_v18  ;;  %v1766_v10 = vmul.f32 1.442695, %v1535_v46  ;;  %v2980_v43 = vpop.eup %2979 }
 0x32d   : > { %v2202_v42 = vsub.f32 %v5291_v19, %v2137_v41  ;;  %v2203_v22 = vsub.f32 %v5292_v14, %v2137_v41  ;;  %2995 = vlog2.f32 %v1830_v29  ;;  %v1833_v61 = vpop.xlane.xlu1 %1832  ;;  %v2982_v39 = vpop.eup %2981 }
 0x32e   : > { %2997 = vpow2.f32 %v1764_v54  ;;  %v4439_v37 = vpop.xlane.xlu0 %1397  ;;  %v2984_v23 = vpop.eup %2983  ;;  %v1960_v46 = vadd.f32 %v2982_v39, %v2980_v43 }
 0x32f   : > { %5293 = vst [vmem:[#allocation96_spill] sm:$0xff] %v4439_v37  ;;  %2330 = vst [vmem:[%s4433_s23 + $0x10] sm:$0xff] %v2202_v42  ;;  %2999 = vpow2.f32 %v1766_v10  ;;  %v1536_v63 = vsub.f32 %v4064_v47, %v4439_v37  ;;  %v1537_v18 = vsub.f32 %v4067_v60, %v4439_v37  ;;  %v2013_v40 = vmul.f32 0.6931472, %v2984_v23  ;;  %v5294_v42 = vld [vmem:[#allocation102_spill] sm:$0xff]  ;;  %v5295_v23 = vld [vmem:[#allocation9_spill] sm:$0xff] }
 0x330   : > { %2331 = vst [vmem:[%s4433_s23 + $0x18] sm:$0xff] %v2203_v22  ;;  %v2986_v8 = vpop.eup %2985  ;;  %3001 = vlog2.f32 %v1833_v61  ;;  %1961 = vadd.xlane.f32.xlu0 %v1960_v46 }
 0x331   : > { %v2988_v41 = vpop.eup %2987  ;;  %v1768_v50 = vmul.f32 1.442695, %v1536_v63  ;;  %v1770_v29 = vmul.f32 1.442695, %v1537_v18  ;;  %v4447_v54 = vpop.xlane.xlu1 %1400  ;;  %v2138_v14 = vadd.f32 %v2013_v40, %v5294_v42  ;;  %v5296_v18 = vld [vmem:[#allocation10_spill] sm:$0xff]  ;;  %v5297_v42 = vld [vmem:[#allocation104_spill] sm:$0xff] }
 0x332   : > { %v2990_v19 = vpop.eup %2989  ;;  %v1538_v10 = vsub.f32 %v4070_v13, %v4447_v54  ;;  %v1539_v22 = vsub.f32 %v4073_v56, %v4447_v54  ;;  %v1836_v43 = vpop.xlane.xlu0 %1835  ;;  %v1963_v39 = vadd.f32 %v2988_v41, %v2986_v8 }
 0x333   : > { %v2015_v61 = vmul.f32 0.6931472, %v2990_v19  ;;  %3003 = vpow2.f32 %v1768_v50  ;;  %v2204_v63 = vsub.f32 %v5295_v23, %v2138_v14  ;;  %v2205_v46 = vsub.f32 %v5296_v18, %v2138_v14  ;;  %v5298_v50 = vld [vmem:[#allocation11_spill] sm:$0xff] }
 0x334   : > { %3005 = vpow2.f32 %v1770_v29  ;;  %v1772_v60 = vmul.f32 1.442695, %v1538_v10  ;;  %1964 = vadd.xlane.f32.xlu1 %v1963_v39  ;;  %v1774_v13 = vmul.f32 1.442695, %v1539_v22  ;;  %v5299_v29 = vld [vmem:[#allocation12_spill] sm:$0xff] }
 0x335   : > { %v2992_v40 = vpop.eup %2991  ;;  %v2139_v47 = vadd.f32 %v2015_v61, %v5297_v42  ;;  %3007 = vlog2.f32 %v1836_v43  ;;  %v1839_v37 = vpop.xlane.xlu1 %1838  ;;  %2332 = vst [vmem:[%s4433_s23 + $0x20] sm:$0xff] %v2204_v63  ;;  %2333 = vst [vmem:[%s4433_s23 + $0x28] sm:$0xff] %v2205_v46  ;;  %v5300_v46 = vld [vmem:[#allocation105_spill] sm:$0xff] }
 0x336   : > { %v2994_v56 = vpop.eup %2993  ;;  %3009 = vpow2.f32 %v1772_v60  ;;  %v4459_v8 = vpop.xlane.xlu0 %1403 }
 0x337   : > { %v2996_v41 = vpop.eup %2995  ;;  %v2206_v19 = vsub.f32 %v5298_v50, %v2139_v47  ;;  %v2207_v14 = vsub.f32 %v5299_v29, %v2139_v47  ;;  %3011 = vpow2.f32 %v1774_v13  ;;  %v1540_v10 = vsub.f32 %v4096_v31, %v4459_v8 }
 0x338   : > { %v2998_v22 = vpop.eup %2997  ;;  %v2017_v43 = vmul.f32 0.6931472, %v2996_v41  ;;  %3013 = vlog2.f32 %v1839_v37  ;;  %v1541_v39 = vsub.f32 %v4103_v4, %v4459_v8  ;;  %v1966_v61 = vadd.f32 %v2994_v56, %v2992_v40  ;;  %v5301_v37 = vld [vmem:[#allocation126_spill] sm:$0xff] }
 0x339   : > { %v3000_v23 = vpop.eup %2999  ;;  %2334 = vst [vmem:[%s4433_s23 + $0x30] sm:$0xff] %v2206_v19  ;;  %2335 = vst [vmem:[%s4433_s23 + $0x38] sm:$0xff] %v2207_v14  ;;  %v1776_v60 = vmul.f32 1.442695, %v1540_v10  ;;  %v4469_v63 = vpop.xlane.xlu1 %1406  ;;  %v5302_v19 = vld [vmem:[#allocation13_spill] sm:$0xff]  ;;  %v5303_v14 = vld [vmem:[#allocation14_spill] sm:$0xff] }
 0x33a   : > { %v3002_v18 = vpop.eup %3001  ;;  %v2140_v47 = vadd.f32 %v2017_v43, %v5300_v46  ;;  %v1778_v13 = vmul.f32 1.442695, %v1541_v39  ;;  %1967 = vadd.xlane.f32.xlu0 %v1966_v61  ;;  %v1542_v42 = vsub.f32 %v4112_v27, %v4469_v63  ;;  %v1543_v41 = vsub.f32 %v5301_v37, %v4469_v63  ;;  %v1842_v50 = vpop.xlane.xlu0 %1841  ;;  %v5304_v61 = vld [vmem:[#allocation106_spill] sm:$0xff] }
 0x33b   : > { %v2019_v56 = vmul.f32 0.6931472, %v3002_v18  ;;  %3015 = vpow2.f32 %v1776_v60  ;;  %v1969_v40 = vadd.f32 %v3000_v23, %v2998_v22  ;;  %v5305_v60 = vld [vmem:[#allocation15_spill] sm:$0xff] }
 0x33c   : > { %v2208_v29 = vsub.f32 %v5302_v19, %v2140_v47  ;;  %v2209_v10 = vsub.f32 %v5303_v14, %v2140_v47  ;;  %3017 = vpow2.f32 %v1778_v13  ;;  %v1780_v43 = vmul.f32 1.442695, %v1542_v42  ;;  %v5306_v47 = vld [vmem:[#allocation16_spill] sm:$0xff] }
 0x33d   : > { %v3004_v39 = vpop.eup %3003  ;;  %v2141_v46 = vadd.f32 %v2019_v56, %v5304_v61  ;;  %v1782_v4 = vmul.f32 1.442695, %v1543_v41  ;;  %3019 = vlog2.f32 %v1842_v50  ;;  %1970 = vadd.xlane.f32.xlu1 %v1969_v40  ;;  %v1845_v37 = vpop.xlane.xlu1 %1844  ;;  %v5307_v40 = vld [vmem:[#allocation109_spill] sm:$0xff] }
 0x33e   : > { %v3006_v27 = vpop.eup %3005  ;;  %2336 = vst [vmem:[%s4433_s23 + $0x40] sm:$0xff] %v2208_v29  ;;  %2337 = vst [vmem:[%s4433_s23 + $0x48] sm:$0xff] %v2209_v10  ;;  %3021 = vpow2.f32 %v1780_v43  ;;  %v1866_v22 = vpop.xlane.xlu0 %1865 }
 0x33f   : > { %v3008_v23 = vpop.eup %3007  ;;  %v2210_v18 = vsub.f32 %v5305_v60, %v2141_v46  ;;  %v2211_v13 = vsub.f32 %v5306_v47, %v2141_v46  ;;  %3023 = vpow2.f32 %v1782_v4  ;;  %v1972_v42 = vadd.f32 %v3006_v27, %v3004_v39  ;;  %v5309_v46 = vld [vmem:[#allocation18_spill] sm:$0xff]  ;;  %v5310_v60 = vld [vmem:[#allocation112_spill] sm:$0xff] }
 0x340   : > { %v3010_v19 = vpop.eup %3009  ;;  %v2021_v56 = vmul.f32 0.6931472, %v3008_v23  ;;  %3025 = vlog2.f32 %v1845_v37  ;;  %v5308_v37 = vld [vmem:[#allocation17_spill] sm:$0xff] }
 0x341   : > { %v3012_v41 = vpop.eup %3011  ;;  %2338 = vst [vmem:[%s4433_s23 + $0x50] sm:$0xff] %v2210_v18  ;;  %2339 = vst [vmem:[%s4433_s23 + $0x58] sm:$0xff] %v2211_v13  ;;  %3027 = vlog2.f32 %v1866_v22  ;;  %1973 = vadd.xlane.f32.xlu0 %v1972_v42  ;;  %v1869_v14 = vpop.xlane.xlu1 %1868 }
 0x342   : > { %v3014_v50 = vpop.eup %3013  ;;  %v2142_v29 = vadd.f32 %v2021_v56, %v5307_v40  ;;  %v4486_v10 = vpop.xlane.xlu0 %1409  ;;  %v1975_v43 = vadd.f32 %v3012_v41, %v3010_v19  ;;  %3029 = vlog2.f32 %v1869_v14  ;;  %v5312_v14 = vld [vmem:[#allocation20_spill] sm:$0xff] }
 0x343   : > { %v2023_v61 = vmul.f32 0.6931472, %v3014_v50  ;;  %v1544_v27 = vsub.f32 %v4146_v55, %v4486_v10  ;;  %v1545_v4 = vsub.f32 %v4149_v49, %v4486_v10  ;;  %v5311_v50 = vld [vmem:[#allocation19_spill] sm:$0xff] }
 0x344   : > { %v2212_v39 = vsub.f32 %v5308_v37, %v2142_v29  ;;  %v2213_v22 = vsub.f32 %v5309_v46, %v2142_v29  ;;  %1976 = vadd.xlane.f32.xlu1 %v1975_v43 }
 0x345   : > { %v3016_v23 = vpop.eup %3015  ;;  %v2143_v18 = vadd.f32 %v2023_v61, %v5310_v60  ;;  %v1784_v47 = vmul.f32 1.442695, %v1544_v27  ;;  %v1786_v13 = vmul.f32 1.442695, %v1545_v4  ;;  %v4497_v19 = vpop.xlane.xlu1 %1412  ;;  %v5313_v60 = vld [vmem:[#allocation114_spill] sm:$0xff] }
 0x346   : > { %v3018_v42 = vpop.eup %3017  ;;  %2340 = vst [vmem:[%s4433_s23 + $0x60] sm:$0xff] %v2212_v39  ;;  %2341 = vst [vmem:[%s4433_s23 + $0x68] sm:$0xff] %v2213_v22  ;;  %v1848_v56 = vpop.xlane.xlu0 %1847  ;;  %v1546_v29 = vsub.f32 %v4158_v20, %v4497_v19  ;;  %v1547_v27 = vsub.f32 %v4163_v58, %v4497_v19 }
 0x347   : > { %v3020_v41 = vpop.eup %3019  ;;  %v2214_v40 = vsub.f32 %v5311_v50, %v2143_v18  ;;  %v2215_v37 = vsub.f32 %v5312_v14, %v2143_v18  ;;  %3031 = vpow2.f32 %v1784_v47  ;;  %v1978_v4 = vadd.f32 %v3018_v42, %v3016_v23 }
 0x348   : > { %v3022_v43 = vpop.eup %3021  ;;  %v2025_v61 = vmul.f32 0.6931472, %v3020_v41  ;;  %3033 = vpow2.f32 %v1786_v13  ;;  %v1788_v46 = vmul.f32 1.442695, %v1546_v29  ;;  %v1790_v18 = vmul.f32 1.442695, %v1547_v27 }
 0x349   : > { %v3024_v39 = vpop.eup %3023  ;;  %2342 = vst [vmem:[%s4433_s23 + $0x70] sm:$0xff] %v2214_v40  ;;  %2343 = vst [vmem:[%s4433_s23 + $0x78] sm:$0xff] %v2215_v37  ;;  %3035 = vlog2.f32 %v1848_v56  ;;  %1979 = vadd.xlane.f32.xlu0 %v1978_v4  ;;  %v1851_v47 = vpop.xlane.xlu1 %1850  ;;  %v5314_v56 = vld [vmem:[#allocation21_spill] sm:$0xff]  ;;  %v5315_v37 = vld [vmem:[#allocation22_spill] sm:$0xff] }
 0x34a   : > { %v3026_v22 = vpop.eup %3025  ;;  %v2144_v50 = vadd.f32 %v2025_v61, %v5313_v60  ;;  %v4508_v14 = vpop.xlane.xlu0 %1415  ;;  %v1981_v20 = vadd.f32 %v3024_v39, %v3022_v43  ;;  %3037 = vpow2.f32 %v1788_v46  ;;  %v5316_v43 = vld [vmem:[#allocation119_spill] sm:$0xff]  ;;  %v5317_v46 = vld [vmem:[#allocation120_spill] sm:$0xff] }
 0x34b   : > { %v3028_v13 = vpop.eup %3027  ;;  %v2027_v41 = vmul.f32 0.6931472, %v3026_v22  ;;  %v1548_v23 = vsub.f32 %v4178_v15, %v4508_v14  ;;  %v1549_v42 = vsub.f32 %v4181_v32, %v4508_v14  ;;  %3039 = vpow2.f32 %v1790_v18 }
 0x34c   : > { %v2216_v40 = vsub.f32 %v5314_v56, %v2144_v50  ;;  %v2217_v29 = vsub.f32 %v5315_v37, %v2144_v50  ;;  %v2041_v61 = vmul.f32 0.6931472, %v3028_v13  ;;  %1982 = vadd.xlane.f32.xlu1 %v1981_v20  ;;  %v3030_v27 = vpop.eup %3029  ;;  %3041 = vlog2.f32 %v1851_v47  ;;  %v5318_v50 = vld [vmem:[#allocation23_spill] sm:$0xff]  ;;  %v5319_v20 = vld [vmem:[#allocation26_spill] sm:$0xff]  ;;  %v5322_v37 = vld [vmem:[#allocation121_spill] sm:$0xff] }
 0x34d   : > { %v2145_v4 = vadd.f32 %v2027_v41, %v5316_v43  ;;  %v1792_v39 = vmul.f32 1.442695, %v1548_v23  ;;  %v1794_v22 = vmul.f32 1.442695, %v1549_v42  ;;  %v2043_v32 = vmul.f32 0.6931472, %v3030_v27  ;;  %v4520_v15 = vpop.xlane.xlu1 %1418 }
 0x34e   : > { %2344 = vst [vmem:[%s4433_s23 + $0x80] sm:$0xff] %v2216_v40  ;;  %2345 = vst [vmem:[%s4433_s23 + $0x88] sm:$0xff] %v2217_v29  ;;  %v2152_v60 = vadd.f32 %v2041_v61, %v5317_v46  ;;  %v1854_v56 = vpop.xlane.xlu0 %1853  ;;  %v1550_v47 = vsub.f32 %v4192_v2, %v4520_v15  ;;  %v5320_v41 = vld [vmem:[#allocation24_spill] sm:$0xff]  ;;  %v5321_v42 = vld [vmem:[#allocation25_spill] sm:$0xff]  ;;  %v1551_v27 = vsub.f32 %v4195_v16, %v4520_v15 }
 0x34f   : > { %v2218_v18 = vsub.f32 %v5318_v50, %v2145_v4  ;;  %v2219_v13 = vsub.f32 %v5319_v20, %v2145_v4  ;;  %3043 = vpow2.f32 %v1792_v39  ;;  %v2153_v29 = vadd.f32 %v2043_v32, %v5322_v37  ;;  %v5323_v39 = vld [vmem:[#allocation27_spill] sm:$0xff]  ;;  %v5324_v50 = vld [vmem:[#allocation28_spill] sm:$0xff] }
 0x350   : > { %v2232_v23 = vsub.f32 %v5320_v41, %v2152_v60  ;;  %v2233_v40 = vsub.f32 %v5321_v42, %v2152_v60  ;;  %3045 = vpow2.f32 %v1794_v22  ;;  %v1796_v43 = vmul.f32 1.442695, %v1550_v47 }
 0x351   : > { %v3032_v61 = vpop.eup %3031  ;;  %2346 = vst [vmem:[%s4433_s23 + $0x90] sm:$0xff] %v2218_v18  ;;  %2347 = vst [vmem:[%s4433_s23 + $0x98] sm:$0xff] %v2219_v13  ;;  %3047 = vlog2.f32 %v1854_v56  ;;  %v2234_v46 = vsub.f32 %v5323_v39, %v2153_v29  ;;  %v2235_v60 = vsub.f32 %v5324_v50, %v2153_v29  ;;  %v1857_v20 = vpop.xlane.xlu1 %1856  ;;  %v1798_v18 = vmul.f32 1.442695, %v1551_v27  ;;  %v5325_v29 = vld [vmem:[#allocation122_spill] sm:$0xff] }
 0x352   : > { %v3034_v4 = vpop.eup %3033  ;;  %2360 = vst [vmem:[%s4433_s23 + $0x100] sm:$0xff] %v2232_v23  ;;  %2361 = vst [vmem:[%s4433_s23 + $0x108] sm:$0xff] %v2233_v40  ;;  %v4537_v32 = vpop.xlane.xlu0 %1421  ;;  %3049 = vpow2.f32 %v1796_v43 }
 0x353   : > { %v3036_v22 = vpop.eup %3035  ;;  %v1552_v13 = vsub.f32 %v4212_v57, %v4537_v32  ;;  %v1553_v47 = vsub.f32 %v4215_v17, %v4537_v32  ;;  %2362 = vst [vmem:[%s4433_s23 + $0x110] sm:$0xff] %v2234_v46  ;;  %2363 = vst [vmem:[%s4433_s23 + $0x118] sm:$0xff] %v2235_v60  ;;  %3051 = vlog2.f32 %v1857_v20  ;;  %v1984_v41 = vadd.f32 %v3034_v4, %v3032_v61  ;;  %v5326_v60 = vld [vmem:[#allocation29_spill] sm:$0xff] }
 0x354   : > { %v2029_v56 = vmul.f32 0.6931472, %v3036_v22  ;;  %v3038_v23 = vpop.eup %3037  ;;  %3053 = vpow2.f32 %v1798_v18  ;;  %v5327_v22 = vld [vmem:[#allocation30_spill] sm:$0xff] }
 0x355   : > { %v1800_v42 = vmul.f32 1.442695, %v1552_v13  ;;  %v1802_v40 = vmul.f32 1.442695, %v1553_v47  ;;  %v3040_v37 = vpop.eup %3039  ;;  %1985 = vadd.xlane.f32.xlu0 %v1984_v41  ;;  %v4546_v27 = vpop.xlane.xlu1 %1424 }
 0x356   : > { %v2146_v39 = vadd.f32 %v2029_v56, %v5325_v29  ;;  %v1860_v43 = vpop.xlane.xlu0 %1859  ;;  %v3042_v50 = vpop.eup %3041  ;;  %v1554_v46 = vsub.f32 %v4230_v30, %v4546_v27  ;;  %v1555_v61 = vsub.f32 %v4233_v21, %v4546_v27  ;;  %v1987_v4 = vadd.f32 %v3040_v37, %v3038_v23 }
 0x357   : > { %3055 = vpow2.f32 %v1800_v42  ;;  %v2031_v13 = vmul.f32 0.6931472, %v3042_v50  ;;  %v5328_v42 = vld [vmem:[#allocation124_spill] sm:$0xff] }
 0x358   : > { %v2220_v20 = vsub.f32 %v5326_v60, %v2146_v39  ;;  %v2221_v18 = vsub.f32 %v5327_v22, %v2146_v39  ;;  %3057 = vpow2.f32 %v1802_v40  ;;  %v1804_v56 = vmul.f32 1.442695, %v1554_v46  ;;  %1988 = vadd.xlane.f32.xlu1 %v1987_v4  ;;  %v5330_v46 = vld [vmem:[#allocation34_spill] sm:$0xff] }
 0x359   : > { %v3044_v47 = vpop.eup %3043  ;;  %v1806_v41 = vmul.f32 1.442695, %v1555_v61  ;;  %3059 = vlog2.f32 %v1860_v43  ;;  %v2147_v30 = vadd.f32 %v2031_v13, %v5328_v42  ;;  %v1863_v17 = vpop.xlane.xlu1 %1862  ;;  %v5329_v43 = vld [vmem:[#allocation31_spill] sm:$0xff]  ;;  %v5331_v13 = vld [vmem:[#allocation129_spill] sm:$0xff] }
 0x35a   : > { %v3046_v29 = vpop.eup %3045  ;;  %2348 = vst [vmem:[%s4433_s23 + $0xa0] sm:$0xff] %v2220_v20  ;;  %2349 = vst [vmem:[%s4433_s23 + $0xa8] sm:$0xff] %v2221_v18  ;;  %v4557_v57 = vpop.xlane.xlu0 %1427  ;;  %3061 = vpow2.f32 %v1804_v56 }
 0x35b   : > { %v3048_v23 = vpop.eup %3047  ;;  %v1556_v40 = vsub.f32 %v4250_v62, %v4557_v57  ;;  %v1557_v37 = vsub.f32 %v4253_v28, %v4557_v57  ;;  %v1990_v39 = vadd.f32 %v3046_v29, %v3044_v47  ;;  %v2222_v50 = vsub.f32 %v5329_v43, %v2147_v30 }
 0x35c   : > { %v2223_v61 = vsub.f32 %v5330_v46, %v2147_v30  ;;  %v2033_v4 = vmul.f32 0.6931472, %v3048_v23  ;;  %3063 = vpow2.f32 %v1806_v41  ;;  %v3050_v60 = vpop.eup %3049  ;;  %v5332_v41 = vld [vmem:[#allocation37_spill] sm:$0xff] }
 0x35d   : > { %3065 = vlog2.f32 %v1863_v17  ;;  %v1808_v20 = vmul.f32 1.442695, %v1556_v40  ;;  %v1810_v22 = vmul.f32 1.442695, %v1557_v37  ;;  %1991 = vadd.xlane.f32.xlu0 %v1990_v39  ;;  %v3052_v18 = vpop.eup %3051  ;;  %2350 = vst [vmem:[%s4433_s23 + $0xb0] sm:$0xff] %v2222_v50  ;;  %v4568_v42 = vpop.xlane.xlu1 %1430  ;;  %v5333_v40 = vld [vmem:[#allocation38_spill] sm:$0xff] }
 0x35e   : > { %2351 = vst [vmem:[%s4433_s23 + $0xb8] sm:$0xff] %v2223_v61  ;;  %v2148_v56 = vadd.f32 %v2033_v4, %v5331_v13  ;;  %v1872_v28 = vpop.xlane.xlu0 %1871  ;;  %v3054_v47 = vpop.eup %3053  ;;  %v2035_v29 = vmul.f32 0.6931472, %v3052_v18  ;;  %v1558_v30 = vsub.f32 %v4264_v51, %v4568_v42  ;;  %v1559_v17 = vsub.f32 %v4271_v24, %v4568_v42  ;;  %v5334_v50 = vld [vmem:[#allocation130_spill] sm:$0xff] }
 0x35f   : > { %3067 = vpow2.f32 %v1808_v20  ;;  %v1993_v39 = vadd.f32 %v3054_v47, %v3050_v60 }
 0x360   : > { %v2224_v23 = vsub.f32 %v5332_v41, %v2148_v56  ;;  %v2225_v37 = vsub.f32 %v5333_v40, %v2148_v56  ;;  %3069 = vpow2.f32 %v1810_v22  ;;  %v2149_v46 = vadd.f32 %v2035_v29, %v5334_v50  ;;  %v5335_v41 = vld [vmem:[#allocation39_spill] sm:$0xff]  ;;  %v5336_v56 = vld [vmem:[#allocation42_spill] sm:$0xff]  ;;  %v5338_v50 = vld [vmem:[#allocation45_spill] sm:$0xff] }
 0x361   : > { %v3056_v43 = vpop.eup %3055  ;;  %v1812_v61 = vmul.f32 1.442695, %v1558_v30  ;;  %v1814_v4 = vmul.f32 1.442695, %v1559_v17  ;;  %3071 = vlog2.f32 %v1872_v28  ;;  %1994 = vadd.xlane.f32.xlu1 %v1993_v39  ;;  %v1875_v18 = vpop.xlane.xlu1 %1874  ;;  %v5337_v30 = vld [vmem:[#allocation133_spill] sm:$0xff] }
 0x362   : > { %v3058_v20 = vpop.eup %3057  ;;  %2352 = vst [vmem:[%s4433_s23 + $0xc0] sm:$0xff] %v2224_v23  ;;  %2353 = vst [vmem:[%s4433_s23 + $0xc8] sm:$0xff] %v2225_v37  ;;  %v1878_v13 = vpop.xlane.xlu0 %1877  ;;  %v2226_v51 = vsub.f32 %v5335_v41, %v2149_v46  ;;  %v2227_v22 = vsub.f32 %v5336_v56, %v2149_v46 }
 0x363   : > { %v3060_v24 = vpop.eup %3059  ;;  %3073 = vpow2.f32 %v1812_v61  ;;  %v1996_v60 = vadd.f32 %v3058_v20, %v3056_v43  ;;  %v5340_v20 = vld [vmem:[#allocation135_spill] sm:$0xff] }
 0x364   : > { %v2037_v47 = vmul.f32 0.6931472, %v3060_v24  ;;  %3075 = vpow2.f32 %v1814_v4  ;;  %v3062_v29 = vpop.eup %3061  ;;  %2354 = vst [vmem:[%s4433_s23 + $0xd0] sm:$0xff] %v2226_v51  ;;  %2355 = vst [vmem:[%s4433_s23 + $0xd8] sm:$0xff] %v2227_v22  ;;  %v5339_v24 = vld [vmem:[#allocation46_spill] sm:$0xff] }
 0x365   : > { %3077 = vlog2.f32 %v1875_v18  ;;  %1997 = vadd.xlane.f32.xlu0 %v1996_v60  ;;  %v1881_v23 = vpop.xlane.xlu1 %1880  ;;  %v5341_v60 = vld [vmem:[#allocation47_spill] sm:$0xff] }
 0x366   : > { %v3064_v28 = vpop.eup %3063  ;;  %v2150_v17 = vadd.f32 %v2037_v47, %v5337_v30  ;;  %3079 = vlog2.f32 %v1878_v13  ;;  %v1884_v40 = vpop.xlane.xlu0 %1883 }
 0x367   : > { %v3066_v37 = vpop.eup %3065  ;;  %3081 = vlog2.f32 %v1881_v23  ;;  %v1999_v39 = vadd.f32 %v3064_v28, %v3062_v29  ;;  %v5342_v29 = vld [vmem:[#allocation50_spill] sm:$0xff] }
 0x368   : > { %v2228_v43 = vsub.f32 %v5338_v50, %v2150_v17  ;;  %v2229_v46 = vsub.f32 %v5339_v24, %v2150_v17  ;;  %v2039_v61 = vmul.f32 0.6931472, %v3066_v37  ;;  %3083 = vlog2.f32 %v1884_v40  ;;  %v5343_v40 = vld [vmem:[#allocation127_spill] sm:$0xff] }
 0x369   : > { %v3068_v51 = vpop.eup %3067  ;;  %2000 = vadd.xlane.f32.xlu1 %v1999_v39  ;;  %v1887_v13 = vpop.xlane.xlu1 %1886 }
 0x36a   : > { %v3070_v4 = vpop.eup %3069  ;;  %2356 = vst [vmem:[%s4433_s23 + $0xe0] sm:$0xff] %v2228_v43  ;;  %2357 = vst [vmem:[%s4433_s23 + $0xe8] sm:$0xff] %v2229_v46  ;;  %v2151_v18 = vadd.f32 %v2039_v61, %v5340_v20  ;;  %v1890_v41 = vpop.xlane.xlu0 %1889  ;;  %3085 = vlog2.f32 %v1887_v13  ;;  %v5344_v61 = vld [vmem:[#allocation32_spill] sm:$0xff] }
 0x36b   : > { %v3072_v56 = vpop.eup %3071  ;;  %v2002_v22 = vadd.f32 %v3070_v4, %v3068_v51  ;;  %3087 = vlog2.f32 %v1890_v41  ;;  %v5345_v4 = vld [vmem:[#allocation33_spill] sm:$0xff] }
 0x36c   : > { %v2230_v47 = vsub.f32 %v5341_v60, %v2151_v18  ;;  %v2231_v28 = vsub.f32 %v5342_v29, %v2151_v18  ;;  %v2045_v30 = vmul.f32 0.6931472, %v3072_v56 }
 0x36d   : > { %v3074_v17 = vpop.eup %3073  ;;  %2003 = vadd.xlane.f32.xlu0 %v2002_v22  ;;  %v1893_v39 = vpop.xlane.xlu1 %1892  ;;  %v5346_v22 = vld [vmem:[#allocation128_spill] sm:$0xff] }
 0x36e   : > { %v3076_v23 = vpop.eup %3075  ;;  %2358 = vst [vmem:[%s4433_s23 + $0xf0] sm:$0xff] %v2230_v47  ;;  %2359 = vst [vmem:[%s4433_s23 + $0xf8] sm:$0xff] %v2231_v28  ;;  %v2154_v37 = vadd.f32 %v2045_v30, %v5343_v40  ;;  %v1896_v50 = vpop.xlane.xlu0 %1895  ;;  %3089 = vlog2.f32 %v1893_v39  ;;  %v5347_v30 = vld [vmem:[#allocation131_spill] sm:$0xff]  ;;  %v5349_v39 = vld [vmem:[#allocation36_spill] sm:$0xff] }
 0x36f   : > { %v3078_v43 = vpop.eup %3077  ;;  %v2005_v24 = vadd.f32 %v3076_v23, %v3074_v17  ;;  %3091 = vlog2.f32 %v1896_v50  ;;  %v5348_v40 = vld [vmem:[#allocation35_spill] sm:$0xff] }
 0x370   : > { %v3080_v46 = vpop.eup %3079  ;;  %v2236_v51 = vsub.f32 %v5344_v61, %v2154_v37  ;;  %v2237_v20 = vsub.f32 %v5345_v4, %v2154_v37  ;;  %v2047_v18 = vmul.f32 0.6931472, %v3078_v43  ;;  %v5350_v43 = vld [vmem:[#allocation132_spill] sm:$0xff]  ;;  %v5352_v4 = vld [vmem:[#allocation41_spill] sm:$0xff] }
 0x371   : > { %v3082_v13 = vpop.eup %3081  ;;  %v2049_v41 = vmul.f32 0.6931472, %v3080_v46  ;;  %2006 = vadd.xlane.f32.xlu1 %v2005_v24  ;;  %v1899_v29 = vpop.xlane.xlu1 %1898  ;;  %v5351_v61 = vld [vmem:[#allocation40_spill] sm:$0xff] }
 0x372   : > { %v3084_v56 = vpop.eup %3083  ;;  %2364 = vst [vmem:[%s4433_s23 + $0x120] sm:$0xff] %v2236_v51  ;;  %2365 = vst [vmem:[%s4433_s23 + $0x128] sm:$0xff] %v2237_v20  ;;  %v2155_v60 = vadd.f32 %v2047_v18, %v5346_v22  ;;  %v2051_v47 = vmul.f32 0.6931472, %v3082_v13  ;;  %v1902_v28 = vpop.xlane.xlu0 %1901  ;;  %3093 = vlog2.f32 %v1899_v29  ;;  %v5353_v18 = vld [vmem:[#allocation138_spill] sm:$0xff]  ;;  %v5355_v29 = vld [vmem:[#allocation44_spill] sm:$0xff] }
 0x373   : > { %v2156_v17 = vadd.f32 %v2049_v41, %v5347_v30  ;;  %v2053_v23 = vmul.f32 0.6931472, %v3084_v56  ;;  %3095 = vlog2.f32 %v1902_v28  ;;  %v5354_v56 = vld [vmem:[#allocation43_spill] sm:$0xff] }
 0x374   : > { %v2238_v37 = vsub.f32 %v5348_v40, %v2155_v60  ;;  %v2239_v50 = vsub.f32 %v5349_v39, %v2155_v60  ;;  %v2157_v24 = vadd.f32 %v2051_v47, %v5350_v43  ;;  %v3086_v46 = vpop.eup %3085  ;;  %v5356_v40 = vld [vmem:[#allocation48_spill] sm:$0xff]  ;;  %v5357_v39 = vld [vmem:[#allocation49_spill] sm:$0xff] }
 0x375   : > { %v2240_v51 = vsub.f32 %v5351_v61, %v2156_v17  ;;  %v2241_v20 = vsub.f32 %v5352_v4, %v2156_v17  ;;  %v2158_v13 = vadd.f32 %v2053_v23, %v5353_v18  ;;  %v3088_v41 = vpop.eup %3087  ;;  %v2055_v47 = vmul.f32 0.6931472, %v3086_v46  ;;  %v1905_v28 = vpop.xlane.xlu1 %1904  ;;  %v5359_v46 = vld [vmem:[#allocation142_spill] sm:$0xff]  ;;  %v5360_v4 = vld [vmem:[#allocation51_spill] sm:$0xff]  ;;  %v5361_v18 = vld [vmem:[#allocation52_spill] sm:$0xff] }
 0x376   : > { %2366 = vst [vmem:[%s4433_s23 + $0x130] sm:$0xff] %v2238_v37  ;;  %2367 = vst [vmem:[%s4433_s23 + $0x138] sm:$0xff] %v2239_v50  ;;  %v2242_v22 = vsub.f32 %v5354_v56, %v2157_v24  ;;  %v2243_v60 = vsub.f32 %v5355_v29, %v2157_v24  ;;  %v1908_v30 = vpop.xlane.xlu0 %1907  ;;  %v2057_v23 = vmul.f32 0.6931472, %v3088_v41  ;;  %3097 = vlog2.f32 %v1905_v28  ;;  %v5358_v37 = vld [vmem:[#allocation139_spill] sm:$0xff]  ;;  %v5362_v29 = vld [vmem:[#allocation53_spill] sm:$0xff] }
 0x377   : > { %2368 = vst [vmem:[%s4433_s23 + $0x140] sm:$0xff] %v2240_v51  ;;  %2369 = vst [vmem:[%s4433_s23 + $0x148] sm:$0xff] %v2241_v20  ;;  %v2244_v17 = vsub.f32 %v5356_v40, %v2158_v13  ;;  %v2245_v43 = vsub.f32 %v5357_v39, %v2158_v13  ;;  %v2159_v50 = vadd.f32 %v2055_v47, %v5358_v37  ;;  %3099 = vlog2.f32 %v1908_v30  ;;  %v5363_v47 = vld [vmem:[#allocation54_spill] sm:$0xff]  ;;  %v5364_v40 = vld [vmem:[#allocation144_spill] sm:$0xff] }
 0x378   : > { %2370 = vst [vmem:[%s4433_s23 + $0x150] sm:$0xff] %v2242_v22  ;;  %2371 = vst [vmem:[%s4433_s23 + $0x158] sm:$0xff] %v2243_v60  ;;  %v3090_v24 = vpop.eup %3089  ;;  %v2160_v61 = vadd.f32 %v2057_v23, %v5359_v46  ;;  %v5367_v46 = vld [vmem:[#allocation56_spill] sm:$0xff] }
 0x379   : > { %2372 = vst [vmem:[%s4433_s23 + $0x160] sm:$0xff] %v2244_v17  ;;  %2373 = vst [vmem:[%s4433_s23 + $0x168] sm:$0xff] %v2245_v43  ;;  %v3092_v51 = vpop.eup %3091  ;;  %v2246_v20 = vsub.f32 %v5360_v4, %v2159_v50  ;;  %v2247_v13 = vsub.f32 %v5361_v18, %v2159_v50  ;;  %v2059_v41 = vmul.f32 0.6931472, %v3090_v24  ;;  %v1911_v56 = vpop.xlane.xlu1 %1910  ;;  %v5365_v43 = vld [vmem:[#allocation145_spill] sm:$0xff]  ;;  %v5366_v50 = vld [vmem:[#allocation55_spill] sm:$0xff] }
 0x37a   : > { %v1914_v22 = vpop.xlane.xlu0 %1913  ;;  %v2248_v60 = vsub.f32 %v5362_v29, %v2160_v61  ;;  %v2249_v28 = vsub.f32 %v5363_v47, %v2160_v61  ;;  %v2061_v30 = vmul.f32 0.6931472, %v3092_v51  ;;  %3101 = vlog2.f32 %v1911_v56  ;;  %v5371_v47 = vld [vmem:[#allocation149_spill] sm:$0xff] }
 0x37b   : > { %2374 = vst [vmem:[%s4433_s23 + $0x170] sm:$0xff] %v2246_v20  ;;  %2375 = vst [vmem:[%s4433_s23 + $0x178] sm:$0xff] %v2247_v13  ;;  %v2161_v17 = vadd.f32 %v2059_v41, %v5364_v40  ;;  %3103 = vlog2.f32 %v1914_v22  ;;  %v5368_v20 = vld [vmem:[#allocation57_spill] sm:$0xff]  ;;  %v5369_v13 = vld [vmem:[#allocation58_spill] sm:$0xff] }
 0x37c   : > { %v3094_v39 = vpop.eup %3093  ;;  %2376 = vst [vmem:[%s4433_s23 + $0x180] sm:$0xff] %v2248_v60  ;;  %2377 = vst [vmem:[%s4433_s23 + $0x188] sm:$0xff] %v2249_v28  ;;  %v2162_v23 = vadd.f32 %v2061_v30, %v5365_v43  ;;  %v5370_v22 = vld [vmem:[#allocation147_spill] sm:$0xff]  ;;  %v5373_v43 = vld [vmem:[#allocation60_spill] sm:$0xff] }
 0x37d   : > { %v3096_v37 = vpop.eup %3095  ;;  %v2250_v24 = vsub.f32 %v5366_v50, %v2161_v17  ;;  %v2251_v61 = vsub.f32 %v5367_v46, %v2161_v17  ;;  %v2063_v51 = vmul.f32 0.6931472, %v3094_v39  ;;  %v1917_v4 = vpop.xlane.xlu1 %1916  ;;  %v5372_v17 = vld [vmem:[#allocation59_spill] sm:$0xff]  ;;  %v5374_v50 = vld [vmem:[#allocation61_spill] sm:$0xff]  ;;  %v5375_v46 = vld [vmem:[#allocation62_spill] sm:$0xff] }
 0x37e   : > { %v2252_v18 = vsub.f32 %v5368_v20, %v2162_v23  ;;  %v2253_v41 = vsub.f32 %v5369_v13, %v2162_v23  ;;  %v2065_v56 = vmul.f32 0.6931472, %v3096_v37  ;;  %3105 = vlog2.f32 %v1917_v4  ;;  %v5376_v4 = vld [vmem:[#allocation151_spill] sm:$0xff] }
 0x37f   : > { %2378 = vst [vmem:[%s4433_s23 + $0x190] sm:$0xff] %v2250_v24  ;;  %2379 = vst [vmem:[%s4433_s23 + $0x198] sm:$0xff] %v2251_v61  ;;  %v2163_v29 = vadd.f32 %v2063_v51, %v5370_v22  ;;  %v5377_v22 = vld [vmem:[#allocation63_spill] sm:$0xff] }
 0x380   : > { %v3098_v60 = vpop.eup %3097  ;;  %2380 = vst [vmem:[%s4433_s23 + $0x1a0] sm:$0xff] %v2252_v18  ;;  %2381 = vst [vmem:[%s4433_s23 + $0x1a8] sm:$0xff] %v2253_v41  ;;  %v2164_v28 = vadd.f32 %v2065_v56, %v5371_v47 }
 0x381   : > { %v1920_v30 = vpop.xlane.xlu0 %1919  ;;  %v3100_v40 = vpop.eup %3099  ;;  %v2254_v39 = vsub.f32 %v5372_v17, %v2163_v29  ;;  %v2255_v23 = vsub.f32 %v5373_v43, %v2163_v29  ;;  %v2067_v37 = vmul.f32 0.6931472, %v3098_v60  ;;  %v5378_v60 = vld [vmem:[#allocation64_spill] sm:$0xff]  ;;  %v5380_v17 = vld [vmem:[#allocation66_spill] sm:$0xff] }
 0x382   : > { %3107 = vlog2.f32 %v1920_v30  ;;  %v2256_v24 = vsub.f32 %v5374_v50, %v2164_v28  ;;  %v2257_v61 = vsub.f32 %v5375_v46, %v2164_v28  ;;  %v2069_v51 = vmul.f32 0.6931472, %v3100_v40  ;;  %v5379_v30 = vld [vmem:[#allocation65_spill] sm:$0xff] }
 0x383   : > { %2382 = vst [vmem:[%s4433_s23 + $0x1b0] sm:$0xff] %v2254_v39  ;;  %2383 = vst [vmem:[%s4433_s23 + $0x1b8] sm:$0xff] %v2255_v23  ;;  %v2165_v20 = vadd.f32 %v2067_v37, %v5376_v4 }
 0x384   : > { %v1923_v18 = vpop.xlane.xlu1 %1922  ;;  %v3102_v13 = vpop.eup %3101  ;;  %2384 = vst [vmem:[%s4433_s23 + $0x1c0] sm:$0xff] %v2256_v24  ;;  %2385 = vst [vmem:[%s4433_s23 + $0x1c8] sm:$0xff] %v2257_v61  ;;  %v2166_v41 = vadd.f32 %v2069_v51, %v4293_v9  ;;  %v5381_v51 = vld [vmem:[#allocation69_spill] sm:$0xff] }
 0x385   : > { %3109 = vlog2.f32 %v1923_v18  ;;  %v3104_v56 = vpop.eup %3103  ;;  %v2258_v29 = vsub.f32 %v5377_v22, %v2165_v20  ;;  %v2259_v47 = vsub.f32 %v5378_v60, %v2165_v20  ;;  %v2071_v28 = vmul.f32 0.6931472, %v3102_v13  ;;  %v5382_v20 = vld [vmem:[#allocation70_spill] sm:$0xff]  ;;  %v5385_v60 = vld [vmem:[#allocation67_spill] sm:$0xff] }
 0x386   : > { %v2260_v40 = vsub.f32 %v5379_v30, %v2166_v41  ;;  %v2261_v39 = vsub.f32 %v5380_v17, %v2166_v41  ;;  %v2073_v43 = vmul.f32 0.6931472, %v3104_v56  ;;  %v5384_v56 = vld [vmem:[#allocation72_spill] sm:$0xff] }
 0x387   : > { %2386 = vst [vmem:[%s4433_s23 + $0x1d0] sm:$0xff] %v2258_v29  ;;  %2387 = vst [vmem:[%s4433_s23 + $0x1d8] sm:$0xff] %v2259_v47  ;;  %v2167_v23 = vadd.f32 %v2071_v28, %v4299_v38 }
 0x388   : > { %v3106_v37 = vpop.eup %3105  ;;  %2388 = vst [vmem:[%s4433_s23 + $0x1e0] sm:$0xff] %v2260_v40  ;;  %2389 = vst [vmem:[%s4433_s23 + $0x1e8] sm:$0xff] %v2261_v39  ;;  %v2168_v9 = vadd.f32 %v2073_v43, %v4306_v34  ;;  %v5387_v40 = vld [vmem:[#allocation74_spill] sm:$0xff] }
 0x389   : > { %v1926_v50 = vpop.xlane.xlu0 %1925  ;;  %v2262_v24 = vsub.f32 %v5247_v5, %v2167_v23  ;;  %v2263_v46 = vsub.f32 %v5248_v52, %v2167_v23  ;;  %v2075_v61 = vmul.f32 0.6931472, %v3106_v37  ;;  %v5383_v52 = vld [vmem:[#allocation71_spill] sm:$0xff] }
 0x38a   : > { %3111 = vlog2.f32 %v1926_v50  ;;  %v2264_v4 = vsub.f32 %v5381_v51, %v2168_v9  ;;  %v2265_v38 = vsub.f32 %v5382_v20, %v2168_v9  ;;  %v5388_v51 = vld [vmem:[#allocation77_spill] sm:$0xff]  ;;  %v5389_v20 = vld [vmem:[#allocation78_spill] sm:$0xff] }
 0x38b   : > { %2390 = vst [vmem:[%s4433_s23 + $0x1f0] sm:$0xff] %v2262_v24  ;;  %2391 = vst [vmem:[%s4433_s23 + $0x1f8] sm:$0xff] %v2263_v46  ;;  %v2169_v13 = vadd.f32 %v2075_v61, %v4312_v59  ;;  %v5386_v59 = vld [vmem:[#allocation73_spill] sm:$0xff] }
 0x38c   : > { %v3108_v18 = vpop.eup %3107  ;;  %v1929_v41 = vpop.xlane.xlu1 %1928  ;;  %2392 = vst [vmem:[%s4433_s23 + $0x200] sm:$0xff] %v2264_v4  ;;  %2393 = vst [vmem:[%s4433_s23 + $0x208] sm:$0xff] %v2265_v38 }
 0x38d   : > { %v2077_v5 = vmul.f32 0.6931472, %v3108_v18  ;;  %3113 = vlog2.f32 %v1929_v41  ;;  %v2266_v34 = vsub.f32 %v5383_v52, %v2169_v13  ;;  %v2267_v22 = vsub.f32 %v5384_v56, %v2169_v13  ;;  %v5390_v13 = vld [vmem:[#allocation79_spill] sm:$0xff] }
 0x38f   : > { %v3110_v29 = vpop.eup %3109  ;;  %v2170_v47 = vadd.f32 %v2077_v5, %v5385_v60  ;;  %2394 = vst [vmem:[%s4433_s23 + $0x210] sm:$0xff] %v2266_v34  ;;  %2395 = vst [vmem:[%s4433_s23 + $0x218] sm:$0xff] %v2267_v22  ;;  %v5391_v5 = vld [vmem:[#allocation80_spill] sm:$0xff]  ;;  %v5393_v60 = vld [vmem:[#allocation81_spill] sm:$0xff] }
 0x390   : > { %v2079_v28 = vmul.f32 0.6931472, %v3110_v29  ;;  %v5392_v22 = vld [vmem:[#allocation68_spill] sm:$0xff] }
 0x391   : > { %v2268_v30 = vsub.f32 %v5386_v59, %v2170_v47  ;;  %v2269_v17 = vsub.f32 %v5387_v40, %v2170_v47  ;;  %v1932_v39 = vpop.xlane.xlu0 %1931  ;;  %v5395_v40 = vld [vmem:[#allocation75_spill] sm:$0xff] }
 0x392   : > { %v2171_v43 = vadd.f32 %v2079_v28, %v4324_v12  ;;  %3115 = vlog2.f32 %v1932_v39  ;;  %v5394_v28 = vld [vmem:[#allocation82_spill] sm:$0xff] }
 0x393   : > { %2396 = vst [vmem:[%s4433_s23 + $0x220] sm:$0xff] %v2268_v30  ;;  %2397 = vst [vmem:[%s4433_s23 + $0x228] sm:$0xff] %v2269_v17 }
 0x394   : > { %v3112_v23 = vpop.eup %3111  ;;  %v2270_v37 = vsub.f32 %v5256_v3, %v2171_v43  ;;  %v2271_v9 = vsub.f32 %v5257_v36, %v2171_v43  ;;  %v1935_v50 = vpop.xlane.xlu1 %1934 }
 0x395   : > { %v2081_v24 = vmul.f32 0.6931472, %v3112_v23  ;;  %3117 = vlog2.f32 %v1935_v50  ;;  %v5396_v23 = vld [vmem:[#allocation83_spill] sm:$0xff] }
 0x396   : > { %2398 = vst [vmem:[%s4433_s23 + $0x230] sm:$0xff] %v2270_v37  ;;  %2399 = vst [vmem:[%s4433_s23 + $0x238] sm:$0xff] %v2271_v9  ;;  %v5397_v9 = vld [vmem:[#allocation84_spill] sm:$0xff] }
 0x397   : > { %v3114_v46 = vpop.eup %3113  ;;  %v2172_v61 = vadd.f32 %v2081_v24, %v4330_v48 }
 0x398   : > { %v2083_v12 = vmul.f32 0.6931472, %v3114_v46 }
 0x399   : > { %v2272_v4 = vsub.f32 %v5388_v51, %v2172_v61  ;;  %v2273_v38 = vsub.f32 %v5389_v20, %v2172_v61  ;;  %v1938_v18 = vpop.xlane.xlu0 %1937  ;;  %v5398_v61 = vld [vmem:[#allocation76_spill] sm:$0xff] }
 0x39a   : > { %v2173_v3 = vadd.f32 %v2083_v12, %v4336_v45  ;;  %3119 = vlog2.f32 %v1938_v18 }
 0x39b   : > { %2400 = vst [vmem:[%s4433_s23 + $0x240] sm:$0xff] %v2272_v4  ;;  %2401 = vst [vmem:[%s4433_s23 + $0x248] sm:$0xff] %v2273_v38  ;;  %v1941_v48 = vpop.xlane.xlu1 %1940  ;;  %v5399_v4 = vld [vmem:[#allocation85_spill] sm:$0xff]  ;;  %v5400_v38 = vld [vmem:[#allocation86_spill] sm:$0xff] }
 0x39c   : > { %v3116_v36 = vpop.eup %3115  ;;  %v2274_v41 = vsub.f32 %v5390_v13, %v2173_v3  ;;  %v2275_v52 = vsub.f32 %v5391_v5, %v2173_v3  ;;  %3121 = vlog2.f32 %v1941_v48 }
 0x39d   : > { %v2085_v34 = vmul.f32 0.6931472, %v3116_v36  ;;  %v5401_v36 = vld [vmem:[#allocation152_spill] sm:$0xff] }
 0x39e   : > { %2402 = vst [vmem:[%s4433_s23 + $0x250] sm:$0xff] %v2274_v41  ;;  %2403 = vst [vmem:[%s4433_s23 + $0x258] sm:$0xff] %v2275_v52  ;;  %v5402_v52 = vld [vmem:[#allocation87_spill] sm:$0xff] }
 0x39f   : > { %v3118_v56 = vpop.eup %3117  ;;  %v2174_v29 = vadd.f32 %v2085_v34, %v5392_v22  ;;  %v5403_v34 = vld [vmem:[#allocation88_spill] sm:$0xff] }
 0x3a0   : > { %v2087_v45 = vmul.f32 0.6931472, %v3118_v56 }
 0x3a1   : > { %v2276_v47 = vsub.f32 %v5393_v60, %v2174_v29  ;;  %v2277_v59 = vsub.f32 %v5394_v28, %v2174_v29  ;;  %v1944_v30 = vpop.xlane.xlu0 %1943 }
 0x3a2   : > { %v2175_v17 = vadd.f32 %v2087_v45, %v5395_v40  ;;  %3123 = vlog2.f32 %v1944_v30 }
 0x3a3   : > { %2404 = vst [vmem:[%s4433_s23 + $0x260] sm:$0xff] %v2276_v47  ;;  %2405 = vst [vmem:[%s4433_s23 + $0x268] sm:$0xff] %v2277_v59  ;;  %v1947_v39 = vpop.xlane.xlu1 %1946  ;;  %v5404_v47 = vld [vmem:[#allocation89_spill] sm:$0xff]  ;;  %v5405_v59 = vld [vmem:[#allocation90_spill] sm:$0xff] }
 0x3a4   : > { %v3120_v43 = vpop.eup %3119  ;;  %v2278_v37 = vsub.f32 %v5396_v23, %v2175_v17  ;;  %v2279_v50 = vsub.f32 %v5397_v9, %v2175_v17  ;;  %3125 = vlog2.f32 %v1947_v39  ;;  %v5406_v39 = vld [vmem:[#allocation91_spill] sm:$0xff]  ;;  %v5407_v23 = vld [vmem:[#allocation92_spill] sm:$0xff] }
 0x3a5   : > { %v2089_v24 = vmul.f32 0.6931472, %v3120_v43 }
 0x3a6   : > { %2406 = vst [vmem:[%s4433_s23 + $0x270] sm:$0xff] %v2278_v37  ;;  %2407 = vst [vmem:[%s4433_s23 + $0x278] sm:$0xff] %v2279_v50  ;;  %v3122_v46 = vpop.eup %3121 }
 0x3a7   : > { %v2176_v12 = vadd.f32 %v2089_v24, %v5398_v61  ;;  %v2091_v51 = vmul.f32 0.6931472, %v3122_v46 }
 0x3a9   : > { %v2280_v20 = vsub.f32 %v5399_v4, %v2176_v12  ;;  %v2281_v18 = vsub.f32 %v5400_v38, %v2176_v12  ;;  %v2177_v13 = vadd.f32 %v2091_v51, %v5401_v36  ;;  %v5409_v12 = vld [vmem:[#allocation93_spill] sm:$0xff]  ;;  %v5410_v4 = vld [vmem:[#allocation94_spill] sm:$0xff] }
 0x3aa   : > { %v1950_v3 = vpop.xlane.xlu0 %1949  ;;  %v5412_v36 = vld [vmem:[#allocation97_spill] sm:$0xff] }
 0x3ab   : > { %3127 = vlog2.f32 %v1950_v3  ;;  %2408 = vst [vmem:[%s4433_s23 + $0x280] sm:$0xff] %v2280_v20  ;;  %2409 = vst [vmem:[%s4433_s23 + $0x288] sm:$0xff] %v2281_v18  ;;  %v2282_v48 = vsub.f32 %v5402_v52, %v2177_v13  ;;  %v2283_v56 = vsub.f32 %v5403_v34, %v2177_v13  ;;  %v5411_v18 = vld [vmem:[#allocation95_spill] sm:$0xff]  ;;  %v5413_v34 = vld [vmem:[#allocation154_spill] sm:$0xff] }
 0x3ac   : > { %v1953_v41 = vpop.xlane.xlu1 %1952  ;;  %v3124_v5 = vpop.eup %3123 }
 0x3ad   : > { %3129 = vlog2.f32 %v1953_v41  ;;  %v2093_v22 = vmul.f32 0.6931472, %v3124_v5  ;;  %2410 = vst [vmem:[%s4433_s23 + $0x290] sm:$0xff] %v2282_v48  ;;  %2411 = vst [vmem:[%s4433_s23 + $0x298] sm:$0xff] %v2283_v56 }
 0x3ae   : > { %v3126_v29 = vpop.eup %3125 }
 0x3af   : > { %v2178_v45 = vadd.f32 %v2093_v22, %v4366_v1  ;;  %v2095_v60 = vmul.f32 0.6931472, %v3126_v29  ;;  %v5414_v29 = vld [vmem:[#allocation99_spill] sm:$0xff] }
 0x3b1   : > { %v2284_v28 = vsub.f32 %v5404_v47, %v2178_v45  ;;  %v2285_v30 = vsub.f32 %v5405_v59, %v2178_v45  ;;  %v2179_v40 = vadd.f32 %v2095_v60, %v4372_v44  ;;  %v5408_v44 = vld [vmem:[#allocation153_spill] sm:$0xff]  ;;  %v5415_v60 = vld [vmem:[#allocation100_spill] sm:$0xff] }
 0x3b2   : > { %v1956_v17 = vpop.xlane.xlu0 %1955  ;;  %v5416_v59 = vld [vmem:[#allocation101_spill] sm:$0xff] }
 0x3b3   : > { %2412 = vst [vmem:[%s4433_s23 + $0x2a0] sm:$0xff] %v2284_v28  ;;  %2413 = vst [vmem:[%s4433_s23 + $0x2a8] sm:$0xff] %v2285_v30  ;;  %v2286_v43 = vsub.f32 %v5406_v39, %v2179_v40  ;;  %v2287_v37 = vsub.f32 %v5407_v23, %v2179_v40  ;;  %3131 = vlog2.f32 %v1956_v17 }
 0x3b4   : > { %v1959_v50 = vpop.xlane.xlu1 %1958 }
 0x3b5   : > { %v3128_v9 = vpop.eup %3127  ;;  %2414 = vst [vmem:[%s4433_s23 + $0x2b0] sm:$0xff] %v2286_v43  ;;  %2415 = vst [vmem:[%s4433_s23 + $0x2b8] sm:$0xff] %v2287_v37  ;;  %3133 = vlog2.f32 %v1959_v50 }
 0x3b6   : > { %v2097_v1 = vmul.f32 0.6931472, %v3128_v9 }
 0x3b7   : > { %v3130_v24 = vpop.eup %3129 }
 0x3b8   : > { %v2180_v46 = vadd.f32 %v2097_v1, %v5408_v44  ;;  %v2099_v61 = vmul.f32 0.6931472, %v3130_v24  ;;  %v5417_v24 = vld [vmem:[#allocation103_spill] sm:$0xff] }
 0x3ba   : > { %v2288_v51 = vsub.f32 %v5409_v12, %v2180_v46  ;;  %v2289_v20 = vsub.f32 %v5410_v4, %v2180_v46  ;;  %v2181_v38 = vadd.f32 %v2099_v61, %v4384_v0  ;;  %v5418_v46 = vld [vmem:[#allocation107_spill] sm:$0xff]  ;;  %v5419_v12 = vld [vmem:[#allocation108_spill] sm:$0xff] }
 0x3bc   : > { %2416 = vst [vmem:[%s4433_s23 + $0x2c0] sm:$0xff] %v2288_v51  ;;  %2417 = vst [vmem:[%s4433_s23 + $0x2c8] sm:$0xff] %v2289_v20  ;;  %v2290_v3 = vsub.f32 %v5411_v18, %v2181_v38  ;;  %v2291_v13 = vsub.f32 %v5412_v36, %v2181_v38 }
 0x3bd   : > { %v3132_v41 = vpop.eup %3131  ;;  %v1962_v52 = vpop.xlane.xlu0 %1961 }
 0x3be   : > { %2418 = vst [vmem:[%s4433_s23 + $0x2d0] sm:$0xff] %v2290_v3  ;;  %2419 = vst [vmem:[%s4433_s23 + $0x2d8] sm:$0xff] %v2291_v13  ;;  %v2101_v5 = vmul.f32 0.6931472, %v3132_v41  ;;  %3135 = vlog2.f32 %v1962_v52  ;;  %v5421_v3 = vld [vmem:[#allocation110_spill] sm:$0xff]  ;;  %v5422_v13 = vld [vmem:[#allocation111_spill] sm:$0xff] }
 0x3bf   : > { %v3134_v48 = vpop.eup %3133 }
 0x3c0   : > { %v2182_v56 = vadd.f32 %v2101_v5, %v5413_v34  ;;  %v2103_v0 = vmul.f32 0.6931472, %v3134_v48 }
 0x3c1   : > { %v1965_v22 = vpop.xlane.xlu1 %1964 }
 0x3c2   : > { %v2292_v45 = vsub.f32 %v5414_v29, %v2182_v56  ;;  %v2293_v47 = vsub.f32 %v5415_v60, %v2182_v56  ;;  %v2183_v28 = vadd.f32 %v2103_v0, %v4396_v33  ;;  %3137 = vlog2.f32 %v1965_v22 }
 0x3c4   : > { %2420 = vst [vmem:[%s4433_s23 + $0x2e0] sm:$0xff] %v2292_v45  ;;  %2421 = vst [vmem:[%s4433_s23 + $0x2e8] sm:$0xff] %v2293_v47  ;;  %v2294_v30 = vsub.f32 %v5416_v59, %v2183_v28  ;;  %v2295_v40 = vsub.f32 %v5283_v26, %v2183_v28  ;;  %v5423_v45 = vld [vmem:[#allocation96_spill] sm:$0xff]  ;;  %v5424_v47 = vld [vmem:[#allocation115_spill] sm:$0xff] }
 0x3c5   : > { %v5425_v59 = vld [vmem:[#allocation116_spill] sm:$0xff] }
 0x3c6   : > { %2422 = vst [vmem:[%s4433_s23 + $0x2f0] sm:$0xff] %v2294_v30  ;;  %2423 = vst [vmem:[%s4433_s23 + $0x2f8] sm:$0xff] %v2295_v40 }
 0x3c7   : > { %v1968_v17 = vpop.xlane.xlu0 %1967 }
 0x3c8   : > { %3139 = vlog2.f32 %v1968_v17  ;;  %v3136_v39 = vpop.eup %3135  ;;  %v5427_v17 = vld [vmem:[#allocation118_spill] sm:$0xff] }
 0x3c9   : > { %v2105_v43 = vmul.f32 0.6931472, %v3136_v39 }
 0x3ca   : > { %v1971_v23 = vpop.xlane.xlu1 %1970 }
 0x3cb   : > { %3141 = vlog2.f32 %v1971_v23  ;;  %v2184_v33 = vadd.f32 %v2105_v43, %v4402_v35 }
 0x3cc   : > { %v3138_v37 = vpop.eup %3137 }
 0x3cd   : > { %v2107_v9 = vmul.f32 0.6931472, %v3138_v37  ;;  %v2296_v50 = vsub.f32 %v4008_v7, %v2184_v33  ;;  %v2297_v26 = vsub.f32 %v4011_v6, %v2184_v33  ;;  %v5420_v6 = vld [vmem:[#allocation155_spill] sm:$0xff] }
 0x3ce   : > { %v1974_v1 = vpop.xlane.xlu0 %1973 }
 0x3cf   : > { %v2185_v44 = vadd.f32 %v2107_v9, %v5417_v24  ;;  %3143 = vlog2.f32 %v1974_v1  ;;  %2424 = vst [vmem:[%s4433_s23 + $0x300] sm:$0xff] %v2296_v50  ;;  %2425 = vst [vmem:[%s4433_s23 + $0x308] sm:$0xff] %v2297_v26  ;;  %v5428_v1 = vld [vmem:[#allocation123_spill] sm:$0xff] }
 0x3d1   : > { %v2298_v61 = vsub.f32 %v5418_v46, %v2185_v44  ;;  %v2299_v51 = vsub.f32 %v5419_v12, %v2185_v44  ;;  %v1977_v4 = vpop.xlane.xlu1 %1976  ;;  %v5429_v46 = vld [vmem:[#allocation125_spill] sm:$0xff]  ;;  %v5430_v12 = vld [vmem:[#allocation126_spill] sm:$0xff] }
 0x3d2   : > { %v3140_v20 = vpop.eup %3139  ;;  %3145 = vlog2.f32 %v1977_v4 }
 0x3d3   : > { %2426 = vst [vmem:[%s4433_s23 + $0x310] sm:$0xff] %v2298_v61  ;;  %2427 = vst [vmem:[%s4433_s23 + $0x318] sm:$0xff] %v2299_v51  ;;  %v2109_v7 = vmul.f32 0.6931472, %v3140_v20 }
 0x3d5   : > { %v3142_v35 = vpop.eup %3141  ;;  %v2186_v38 = vadd.f32 %v2109_v7, %v5420_v6 }
 0x3d6   : > { %v2111_v18 = vmul.f32 0.6931472, %v3142_v35  ;;  %v1980_v5 = vpop.xlane.xlu0 %1979 }
 0x3d7   : > { %v2300_v36 = vsub.f32 %v5421_v3, %v2186_v38  ;;  %v2301_v41 = vsub.f32 %v5422_v13, %v2186_v38  ;;  %3147 = vlog2.f32 %v1980_v5  ;;  %v5431_v13 = vld [vmem:[#allocation134_spill] sm:$0xff] }
 0x3d8   : > { %v2187_v52 = vadd.f32 %v2111_v18, %v4424_v25 }
 0x3d9   : > { %v3144_v48 = vpop.eup %3143  ;;  %2428 = vst [vmem:[%s4433_s23 + $0x320] sm:$0xff] %v2300_v36  ;;  %2429 = vst [vmem:[%s4433_s23 + $0x328] sm:$0xff] %v2301_v41  ;;  %v1983_v34 = vpop.xlane.xlu1 %1982 }
 0x3da   : > { %v2302_v56 = vsub.f32 %v4048_v11, %v2187_v52  ;;  %v2303_v0 = vsub.f32 %v5289_v53, %v2187_v52  ;;  %v2113_v22 = vmul.f32 0.6931472, %v3144_v48  ;;  %3149 = vlog2.f32 %v1983_v34  ;;  %v5426_v11 = vld [vmem:[#allocation117_spill] sm:$0xff]  ;;  %v5432_v48 = vld [vmem:[#allocation136_spill] sm:$0xff] }
 0x3dc   : > { %v3146_v29 = vpop.eup %3145  ;;  %2430 = vst [vmem:[%s4433_s23 + $0x330] sm:$0xff] %v2302_v56  ;;  %2431 = vst [vmem:[%s4433_s23 + $0x338] sm:$0xff] %v2303_v0  ;;  %v2188_v25 = vadd.f32 %v2113_v22, %v5423_v45 }
 0x3dd   : > { %v2115_v60 = vmul.f32 0.6931472, %v3146_v29 }
 0x3de   : > { %v2304_v28 = vsub.f32 %v5424_v47, %v2188_v25  ;;  %v2305_v30 = vsub.f32 %v5425_v59, %v2188_v25  ;;  %v5434_v59 = vld [vmem:[#allocation140_spill] sm:$0xff] }
 0x3df   : > { %v2189_v40 = vadd.f32 %v2115_v60, %v4447_v54 }
 0x3e0   : > { %2432 = vst [vmem:[%s4433_s23 + $0x340] sm:$0xff] %v2304_v28  ;;  %2433 = vst [vmem:[%s4433_s23 + $0x348] sm:$0xff] %v2305_v30 }
 0x3e1   : > { %v2306_v53 = vsub.f32 %v5426_v11, %v2189_v40  ;;  %v2307_v39 = vsub.f32 %v5427_v17, %v2189_v40  ;;  %v3148_v43 = vpop.eup %3147  ;;  %v5435_v40 = vld [vmem:[#allocation141_spill] sm:$0xff] }
 0x3e2   : > { %v2117_v23 = vmul.f32 0.6931472, %v3148_v43  ;;  %v1986_v37 = vpop.xlane.xlu0 %1985 }
 0x3e3   : > { %2434 = vst [vmem:[%s4433_s23 + $0x350] sm:$0xff] %v2306_v53  ;;  %2435 = vst [vmem:[%s4433_s23 + $0x358] sm:$0xff] %v2307_v39  ;;  %3151 = vlog2.f32 %v1986_v37  ;;  %v5436_v53 = vld [vmem:[#allocation143_spill] sm:$0xff] }
 0x3e4   : > { %v3150_v33 = vpop.eup %3149  ;;  %v2190_v9 = vadd.f32 %v2117_v23, %v4459_v8 }
 0x3e5   : > { %v2119_v54 = vmul.f32 0.6931472, %v3150_v33  ;;  %v1989_v50 = vpop.xlane.xlu1 %1988  ;;  %v5437_v33 = vld [vmem:[#allocation146_spill] sm:$0xff] }
 0x3e6   : > { %v2308_v26 = vsub.f32 %v4096_v31, %v2190_v9  ;;  %v2309_v24 = vsub.f32 %v5428_v1, %v2190_v9  ;;  %3153 = vlog2.f32 %v1989_v50 }
 0x3e7   : > { %v2191_v44 = vadd.f32 %v2119_v54, %v4469_v63  ;;  %v5439_v54 = vld [vmem:[#allocation150_spill] sm:$0xff] }
 0x3e8   : > { %2436 = vst [vmem:[%s4433_s23 + $0x360] sm:$0xff] %v2308_v26  ;;  %2437 = vst [vmem:[%s4433_s23 + $0x368] sm:$0xff] %v2309_v24 }
 0x3e9   : > { %v2310_v61 = vsub.f32 %v5429_v46, %v2191_v44  ;;  %v2311_v51 = vsub.f32 %v5430_v12, %v2191_v44 }
 0x3ea   : > { %v1992_v4 = vpop.xlane.xlu0 %1991 }
 0x3eb   : > { %2438 = vst [vmem:[%s4433_s23 + $0x370] sm:$0xff] %v2310_v61  ;;  %2439 = vst [vmem:[%s4433_s23 + $0x378] sm:$0xff] %v2311_v51  ;;  %3155 = vlog2.f32 %v1992_v4 }
 0x3ed   : > { %v3152_v8 = vpop.eup %3151 }
 0x3ee   : > { %v2121_v20 = vmul.f32 0.6931472, %v3152_v8  ;;  %v1995_v31 = vpop.xlane.xlu1 %1994 }
 0x3ef   : > { %3157 = vlog2.f32 %v1995_v31 }
 0x3f0   : > { %v3154_v7 = vpop.eup %3153  ;;  %v2192_v63 = vadd.f32 %v2121_v20, %v4486_v10 }
 0x3f1   : > { %v2123_v35 = vmul.f32 0.6931472, %v3154_v7 }
 0x3f2   : > { %v1998_v6 = vpop.xlane.xlu0 %1997  ;;  %v2312_v38 = vsub.f32 %v4146_v55, %v2192_v63  ;;  %v2313_v18 = vsub.f32 %v4149_v49, %v2192_v63 }
 0x3f3   : > { %3159 = vlog2.f32 %v1998_v6  ;;  %v2193_v3 = vadd.f32 %v2123_v35, %v4497_v19  ;;  %v5433_v19 = vld [vmem:[#allocation137_spill] sm:$0xff] }
 0x3f4   : > { %2440 = vst [vmem:[%s4433_s23 + $0x380] sm:$0xff] %v2312_v38  ;;  %2441 = vst [vmem:[%s4433_s23 + $0x388] sm:$0xff] %v2313_v18 }
 0x3f5   : > { %v3156_v36 = vpop.eup %3155  ;;  %v2314_v41 = vsub.f32 %v5431_v13, %v2193_v3  ;;  %v2315_v5 = vsub.f32 %v4163_v58, %v2193_v3 }
 0x3f6   : > { %v2125_v10 = vmul.f32 0.6931472, %v3156_v36  ;;  %v2001_v52 = vpop.xlane.xlu1 %2000 }
 0x3f7   : > { %3161 = vlog2.f32 %v2001_v52  ;;  %2442 = vst [vmem:[%s4433_s23 + $0x390] sm:$0xff] %v2314_v41  ;;  %2443 = vst [vmem:[%s4433_s23 + $0x398] sm:$0xff] %v2315_v5 }
 0x3f8   : > { %v2194_v55 = vadd.f32 %v2125_v10, %v4508_v14 }
 0x3f9   : > { %v3158_v49 = vpop.eup %3157 }
 0x3fa   : > { %v2316_v34 = vsub.f32 %v5432_v48, %v2194_v55  ;;  %v2317_v56 = vsub.f32 %v5433_v19, %v2194_v55  ;;  %v2004_v0 = vpop.xlane.xlu0 %2003  ;;  %v2127_v22 = vmul.f32 0.6931472, %v3158_v49 }
 0x3fb   : > { %3163 = vlog2.f32 %v2004_v0 }
 0x3fc   : > { %2444 = vst [vmem:[%s4433_s23 + $0x3a0] sm:$0xff] %v2316_v34  ;;  %2445 = vst [vmem:[%s4433_s23 + $0x3a8] sm:$0xff] %v2317_v56  ;;  %v2195_v29 = vadd.f32 %v2127_v22, %v4520_v15 }
 0x3fd   : > { %v3160_v58 = vpop.eup %3159 }
 0x3fe   : > { %v2129_v45 = vmul.f32 0.6931472, %v3160_v58  ;;  %v2007_v25 = vpop.xlane.xlu1 %2006  ;;  %v2318_v14 = vsub.f32 %v4192_v2, %v2195_v29  ;;  %v2319_v60 = vsub.f32 %v4195_v16, %v2195_v29 }
 0x3ff   : > { %3165 = vlog2.f32 %v2007_v25 }
 0x400   : > { %v2196_v47 = vadd.f32 %v2129_v45, %v4537_v32  ;;  %2446 = vst [vmem:[%s4433_s23 + $0x3b0] sm:$0xff] %v2318_v14  ;;  %2447 = vst [vmem:[%s4433_s23 + $0x3b8] sm:$0xff] %v2319_v60 }
 0x401   : > { %v3162_v28 = vpop.eup %3161 }
 0x402   : > { %v2320_v30 = vsub.f32 %v5434_v59, %v2196_v47  ;;  %v2321_v11 = vsub.f32 %v5435_v40, %v2196_v47  ;;  %v2131_v15 = vmul.f32 0.6931472, %v3162_v28 }
 0x404   : > { %2448 = vst [vmem:[%s4433_s23 + $0x3c0] sm:$0xff] %v2320_v30  ;;  %2449 = vst [vmem:[%s4433_s23 + $0x3c8] sm:$0xff] %v2321_v11  ;;  %v2197_v2 = vadd.f32 %v2131_v15, %v4546_v27 }
 0x405   : > { %v3164_v16 = vpop.eup %3163 }
 0x406   : > { %v2322_v17 = vsub.f32 %v5436_v53, %v2197_v2  ;;  %v2323_v32 = vsub.f32 %v4233_v21, %v2197_v2  ;;  %v2133_v39 = vmul.f32 0.6931472, %v3164_v16 }
 0x408   : > { %2450 = vst [vmem:[%s4433_s23 + $0x3d0] sm:$0xff] %v2322_v17  ;;  %2451 = vst [vmem:[%s4433_s23 + $0x3d8] sm:$0xff] %v2323_v32  ;;  %v2198_v43 = vadd.f32 %v2133_v39, %v4557_v57  ;;  %v5438_v57 = vld [vmem:[#allocation148_spill] sm:$0xff] }
 0x409   : > { %v3166_v23 = vpop.eup %3165 }
 0x40a   : > { %v2324_v37 = vsub.f32 %v4250_v62, %v2198_v43  ;;  %v2325_v9 = vsub.f32 %v5437_v33, %v2198_v43  ;;  %v2135_v27 = vmul.f32 0.6931472, %v3166_v23 }
 0x40c   : > { %2452 = vst [vmem:[%s4433_s23 + $0x3e0] sm:$0xff] %v2324_v37  ;;  %2453 = vst [vmem:[%s4433_s23 + $0x3e8] sm:$0xff] %v2325_v9  ;;  %v2199_v21 = vadd.f32 %v2135_v27, %v4568_v42 }
 0x40e   : > { %v2326_v62 = vsub.f32 %v5438_v57, %v2199_v21  ;;  %v2327_v50 = vsub.f32 %v5439_v54, %v2199_v21 }
 0x410   : > { %2454 = vst [vmem:[%s4433_s23 + $0x3f0] sm:$0xff] %v2326_v62  ;;  %2455 = vst [vmem:[%s4433_s23 + $0x3f8] sm:$0xff] %v2327_v50 }
 0x411   : > { %3180 = shalt.err (!%p3177_p3)
}
 0x412   : > { %s3181_s12 = scalar_lea.hbm %s4824_s7, 16384  ;;  %s3185_s14 = scalar_lea.hbm %s4880_s5, 32768 }
 0x413   : > { %p3182_p4 = scmp.ne.s32.totalorder %s4824_s7, %s3181_s12  ;;  %p3186_p9 = scmp.lt.u32.totalorder %s4824_s7, %s4880_s5 }
 0x414   : > { %p3187_p10 = scmp.lt.u32.totalorder %s3185_s14, %s3181_s12  ;;  %p3189_p12 = scmp.lt.u32.totalorder %s3181_s12, %s4824_s7 }
 0x415   : > { %p3183_p7 = pnand %p3182_p4, %p3303_p5 }
 0x416   : > { %p3188_p11 = por %p3187_p10, %p3186_p9 }
 0x417   : > { %p3184_p8 = pneg %p3183_p7 }
 0x418   : > { %p3190_p13 = por %p3189_p12, %p3188_p11 }
 0x41a   : > { %p3191_p0 = pnand %p3190_p13, %p3184_p8 }
 0x41c   : > { %3194 = shalt.err (!%p3191_p0)
}
 0x41d   : > { %s3233_s23 = smov 256   ;;  %s3234_s25 = smov 16  }
 0x41e   : > { %2709 = dma.vmem_to_hbm [thread:$0]  (%p3303_p5), %s4826_s26, 16384, %s4824_s7, %s4834_s22, %s3233_s23, %s3233_s23, %s3234_s25  }
 0x41f PF: > { %p2715_p1 = scmp.ge.s32.totalorder %s3229_s21, 2  ;;  %s2486_s30 = sand.u32 1, %s3217_s18  }
 0x420   : > { %s2487_s6 = scalar_lea.sflag [#allocation3], %s2486_s30 }
 0x421   : > { %p2712_p2 = pnand %p2715_p1, %p3307_p6 }
 0x423   : > { %3212 = dma.done.wait (!%p2712_p2), %s2487_s6, 16384  }
 0x424   : > { %3214 = vsyncadd (!%p2712_p2), %s2487_s6, 4294950912  ;;  %p15_p3 = scmp.ge.s32.totalorder %s3290_s24, 4   ;;  %s5440_s18 = smov %s3221_s19 }
 0x425   : > { %s5441_s19 = smov %s3225_s20  ;;  %s5442_s20 = smov %s3301_s27 }
 0x426   : > { %s5443_s21 = smov %s3290_s24  ;;  %17 = sbr.rel (!%p15_p3) target bundleno = 3 (0x3), region = 75 }
 0x42d   :  { %2492 = vsyncpa [#allocation3], 1 }
 0x42e   :  { %2494 = vsyncpa [#allocation3 + $0x1], 1 }

</bundles_post_ra>
